<compile_context>
chip_gen: v7x
topology: tpu7x:2x2x1
jax: 0.10.0
libtpu: 0.0.40
codegen_flags: <defaults>
</compile_context>

<pallas_src>
import jax
import jax.numpy as jnp
from jax.experimental import pallas as pl
from jax.experimental.pallas import tpu as pltpu


# ----------------------------------------------------------------------------
# Fused kernel
# ----------------------------------------------------------------------------
def _gru_cell(xp_t, hp_t, h, H):
    """One GRU update from pre-projected gates.

    xp_t = x_t @ [W_ir|W_iz|W_in]^T + [b_ir+b_hr, b_iz+b_hz, b_in]   (B, 3H)
    hp_t = h   @ [W_hr|W_hz|W_hn]^T + [0,        0,          b_hn]   (B, 3H)
    """
    rz = jax.nn.sigmoid(xp_t[:, :2 * H] + hp_t[:, :2 * H])
    r = rz[:, :H]
    z = rz[:, H:]
    n = jnp.tanh(xp_t[:, 2 * H:] + r * hp_t[:, 2 * H:])
    return (1.0 - z) * n + z * h


def make_signature_kernel(T, B, H, L):
    """Builds the fused kernel: L bidirectional GRU layers + linear head."""

    def kernel(*refs):
        x_ref = refs[0]                       # (T*B, I) time-major, flattened
        w_refs = refs[1:1 + 8 * L]            # per layer, per dir: wi, wh, bi, bh
        fc_w_ref = refs[1 + 8 * L]            # (2H, C)
        fc_b_ref = refs[2 + 8 * L]            # (1, C)
        out_ref = refs[3 + 8 * L]             # (B, C)
        seq_f_scr = refs[4 + 8 * L]           # (T*B, H) fwd outputs of prev layer
        seq_b_scr = refs[5 + 8 * L]           # (T*B, H) bwd outputs of prev layer

        h_f = jnp.zeros((B, H), jnp.float32)
        h_b = jnp.zeros((B, H), jnp.float32)

        for l in range(L):
            wi_f, wh_f, bi_f, bh_f = w_refs[8 * l:8 * l + 4]
            wi_b, wh_b, bi_b, bh_b = w_refs[8 * l + 4:8 * l + 8]

            # ---- Hoisted input projection: big MXU matmuls, once per layer. ----
            if l == 0:
                xin = x_ref[...]                                           # (T*B, I)
                xp_f = (jnp.dot(xin, wi_f[...],
                                preferred_element_type=jnp.float32) + bi_f[...])
                xp_b = (jnp.dot(xin, wi_b[...],
                                preferred_element_type=jnp.float32) + bi_b[...])
            else:
                s_f = seq_f_scr[...]                                       # (T*B, H)
                s_b = seq_b_scr[...]                                       # (T*B, H)
                xp_f = (jnp.dot(s_f, wi_f[0:H, :], preferred_element_type=jnp.float32)
                        + jnp.dot(s_b, wi_f[H:2 * H, :], preferred_element_type=jnp.float32)
                        + bi_f[...])
                xp_b = (jnp.dot(s_f, wi_b[0:H, :], preferred_element_type=jnp.float32)
                        + jnp.dot(s_b, wi_b[H:2 * H, :], preferred_element_type=jnp.float32)
                        + bi_b[...])

            wh_f_v, wh_b_v = wh_f[...], wh_b[...]
            bh_f_v, bh_b_v = bh_f[...], bh_b[...]

            h_f = jnp.zeros((B, H), jnp.float32)
            h_b = jnp.zeros((B, H), jnp.float32)
            last_layer = (l == L - 1)

            # ---- Recurrence: T fully-unrolled steps, fwd & bwd in lockstep. ----
            for t in range(T):
                tb = T - 1 - t                                 # backward time index
                xf = xp_f[t * B:(t + 1) * B, :]
                xb = xp_b[tb * B:(tb + 1) * B, :]

                hp_f = jnp.dot(h_f, wh_f_v, preferred_element_type=jnp.float32) + bh_f_v
                hp_b = jnp.dot(h_b, wh_b_v, preferred_element_type=jnp.float32) + bh_b_v

                h_f = _gru_cell(xf, hp_f, h_f, H)
                h_b = _gru_cell(xb, hp_b, h_b, H)

                if not last_layer:
                    seq_f_scr[t * B:(t + 1) * B, :] = h_f
                    seq_b_scr[tb * B:(tb + 1) * B, :] = h_b
            # TODO(synk): inter-layer dropout is identity in eval mode (not applied).

        # ---- Linear head fused as epilogue: [h_f | h_b] @ W^T + b. ----
        # TODO(synk): dropout_head is identity in eval mode (not applied).
        logits = (jnp.dot(h_f, fc_w_ref[0:H, :], preferred_element_type=jnp.float32)
                  + jnp.dot(h_b, fc_w_ref[H:2 * H, :], preferred_element_type=jnp.float32)
                  + fc_b_ref[...])
        out_ref[...] = logits.astype(out_ref.dtype)

    return kernel


# ----------------------------------------------------------------------------
# One-time parameter preparation (transpose, gate fusion, bias folding)
# ----------------------------------------------------------------------------
def prepare_params(params, hidden_size):
    H = hidden_size
    flat = []
    for layer_p in params["gru"]:
        for d in ("fwd", "bwd"):
            w_ih, w_hh, b_ih, b_hh = layer_p[d]
            wi = jnp.asarray(w_ih, jnp.float32).T                       # (F, 3H)
            wh = jnp.asarray(w_hh, jnp.float32).T                       # (H, 3H)
            # b_i* + b_h* for r,z gates; b_in alone (b_hn stays with hidden proj).
            bi = (b_ih + jnp.concatenate(
                [b_hh[:2 * H], jnp.zeros((H,), jnp.float32)])).reshape(1, 3 * H)
            bh = jnp.concatenate(
                [jnp.zeros((2 * H,), jnp.float32), b_hh[2 * H:]]).reshape(1, 3 * H)
            flat += [wi, wh, bi, bh]
    fc_w_t = jnp.asarray(params["fc_w"], jnp.float32).T                 # (2H, C)
    fc_b = jnp.asarray(params["fc_b"], jnp.float32).reshape(1, -1)      # (1, C)
    return {"gru_flat": flat, "fc_w_t": fc_w_t, "fc_b": fc_b,
            "num_layers": len(params["gru"])}


# ----------------------------------------------------------------------------
# Forward pass (single fused pallas_call)
# ----------------------------------------------------------------------------
def signature_model_forward(x_bti, prepped, hidden_size):
    B, T, I = x_bti.shape
    H = hidden_size
    L = prepped["num_layers"]
    C = prepped["fc_w_t"].shape[1]

    # (B,T,I) -> time-major flattened (T*B, I) so each layer's input projection
    # is a single MXU matmul over all time steps.
    x_flat = jnp.transpose(x_bti, (1, 0, 2)).reshape(T * B, I)

    kernel = make_signature_kernel(T, B, H, L)
    out = pl.pallas_call(
        kernel,
        out_shape=jax.ShapeDtypeStruct((B, C), jnp.float32),
        scratch_shapes=[pltpu.VMEM((T * B, H), jnp.float32),
                        pltpu.VMEM((T * B, H), jnp.float32)],
    )(x_flat, *prepped["gru_flat"], prepped["fc_w_t"], prepped["fc_b"])
    return out


# ----------------------------------------------------------------------------
# Parameter init (deterministic, PyTorch-style U(-1/sqrt(H), 1/sqrt(H)))
# ----------------------------------------------------------------------------
def init_params(key, input_size, hidden_size, num_layers, num_classes):
    H = hidden_size
    k = 1.0 / jnp.sqrt(jnp.float32(H))
    params = {"gru": []}
    for layer in range(num_layers):
        in_size = input_size if layer == 0 else 2 * H
        layer_p = {}
        for d in ("fwd", "bwd"):
            key, k1, k2, k3, k4 = jax.random.split(key, 5)
            layer_p[d] = (
                jax.random.uniform(k1, (3 * H, in_size), jnp.float32, -k, k),  # w_ih
                jax.random.uniform(k2, (3 * H, H), jnp.float32, -k, k),        # w_hh
                jax.random.uniform(k3, (3 * H,), jnp.float32, -k, k),          # b_ih
                jax.random.uniform(k4, (3 * H,), jnp.float32, -k, k),          # b_hh
            )
        params["gru"].append(layer_p)
    kf = 1.0 / jnp.sqrt(jnp.float32(2 * H))
    key, k1, k2 = jax.random.split(key, 3)
    params["fc_w"] = jax.random.uniform(k1, (num_classes, 2 * H), jnp.float32, -kf, kf)
    params["fc_b"] = jax.random.uniform(k2, (num_classes,), jnp.float32, -kf, kf)
    return params


# ----------------------------------------------------------------------------
# Pure-JAX reference (PyTorch GRU semantics) for correctness checking
# ----------------------------------------------------------------------------
def _gru_cell_ref(x, h, w_ih, w_hh, b_ih, b_hh, H):
    gi = x @ w_ih.T + b_ih
    gh = h @ w_hh.T + b_hh
    r = jax.nn.sigmoid(gi[:, :H] + gh[:, :H])
    z = jax.nn.sigmoid(gi[:, H:2 * H] + gh[:, H:2 * H])
    n = jnp.tanh(gi[:, 2 * H:] + r * gh[:, 2 * H:])
    return (1.0 - z) * n + z * h


def signature_model_reference(x_bti, params, H):
    B, T, _ = x_bti.shape
    layer_in = x_bti
    h_f = h_b = None
    for layer_p in params["gru"]:
        h_f = jnp.zeros((B, H), jnp.float32)
        h_b = jnp.zeros((B, H), jnp.float32)
        fwd, bwd = [], [None] * T
        for t in range(T):
            h_f = _gru_cell_ref(layer_in[:, t, :], h_f, *layer_p["fwd"], H)
            fwd.append(h_f)
        for t in range(T - 1, -1, -1):
            h_b = _gru_cell_ref(layer_in[:, t, :], h_b, *layer_p["bwd"], H)
            bwd[t] = h_b
        layer_in = jnp.stack(
            [jnp.concatenate([f, b], axis=-1) for f, b in zip(fwd, bwd)], axis=1)
    out = jnp.concatenate([h_f, h_b], axis=1)         # h_n[-2], h_n[-1]
    return out @ params["fc_w"].T + params["fc_b"]


if __name__ == "__main__":
    # batch=2, seq=8, input=16, hidden=32, layers=2, classes=5
    B, T, I, H, L, C = 2, 8, 16, 32, 2, 5

    key = jax.random.PRNGKey(0)
    key, kx, kp = jax.random.split(key, 3)
    x = jax.random.normal(kx, (B, T, I), jnp.float32)
    params = init_params(kp, I, H, L, C)

    prepped = prepare_params(params, H)               # one-time weight prep
    logits = signature_model_forward(x, prepped, H)
    jax.block_until_ready(logits)
    assert logits.shape == (B, C)

    ref = signature_model_reference(x, params, H)
    err = float(jnp.max(jnp.abs(logits - ref)))
    assert err < 1e-3, f"mismatch vs reference: {err}"
    print("KERNEL_OK")
</pallas_src>

<mosaic_0001>
module attributes {stable_mosaic.version = 11 : i64} {
  func.func @kernel(%arg0: memref<16x16xf32, #tpu.memory_space<vmem>>, %arg1: memref<16x96xf32, #tpu.memory_space<vmem>>, %arg2: memref<32x96xf32, #tpu.memory_space<vmem>>, %arg3: memref<1x96xf32, #tpu.memory_space<vmem>>, %arg4: memref<1x96xf32, #tpu.memory_space<vmem>>, %arg5: memref<16x96xf32, #tpu.memory_space<vmem>>, %arg6: memref<32x96xf32, #tpu.memory_space<vmem>>, %arg7: memref<1x96xf32, #tpu.memory_space<vmem>>, %arg8: memref<1x96xf32, #tpu.memory_space<vmem>>, %arg9: memref<64x96xf32, #tpu.memory_space<vmem>>, %arg10: memref<32x96xf32, #tpu.memory_space<vmem>>, %arg11: memref<1x96xf32, #tpu.memory_space<vmem>>, %arg12: memref<1x96xf32, #tpu.memory_space<vmem>>, %arg13: memref<64x96xf32, #tpu.memory_space<vmem>>, %arg14: memref<32x96xf32, #tpu.memory_space<vmem>>, %arg15: memref<1x96xf32, #tpu.memory_space<vmem>>, %arg16: memref<1x96xf32, #tpu.memory_space<vmem>>, %arg17: memref<64x5xf32, #tpu.memory_space<vmem>>, %arg18: memref<1x5xf32, #tpu.memory_space<vmem>>, %arg19: memref<2x5xf32, #tpu.memory_space<vmem>>, %arg20: memref<16x32xf32, #tpu.memory_space<vmem>>, %arg21: memref<16x32xf32, #tpu.memory_space<vmem>>) attributes {dimension_semantics = [], scalar_prefetch = 0 : i64, scratch_operands = 2 : i64, tpu.core_type = #tpu.core_type<tc>} {
    %c0 = arith.constant 0 : index
    %c0_0 = arith.constant 0 : index
    %0 = vector.load %arg0[%c0, %c0_0] : memref<16x16xf32, #tpu.memory_space<vmem>>, vector<16x16xf32>
    %c0_1 = arith.constant 0 : index
    %c0_2 = arith.constant 0 : index
    %1 = vector.load %arg1[%c0_1, %c0_2] : memref<16x96xf32, #tpu.memory_space<vmem>>, vector<16x96xf32>
    %cst = arith.constant dense<0.000000e+00> : vector<16x96xf32>
    %2 = tpu.matmul %0, %1, %cst {dimension_numbers = #tpu.dot_dimension_numbers<[1], [0], [0], [1], [0, 0, 1, 1], [], []>} : vector<16x16xf32>, vector<16x96xf32>, vector<16x96xf32> -> vector<16x96xf32>
    %c0_3 = arith.constant 0 : index
    %c0_4 = arith.constant 0 : index
    %3 = vector.load %arg3[%c0_3, %c0_4] : memref<1x96xf32, #tpu.memory_space<vmem>>, vector<1x96xf32>
    %4 = vector.broadcast %3 : vector<1x96xf32> to vector<16x96xf32>
    %5 = arith.addf %2, %4 : vector<16x96xf32>
    %c0_5 = arith.constant 0 : index
    %c0_6 = arith.constant 0 : index
    %6 = vector.load %arg5[%c0_5, %c0_6] : memref<16x96xf32, #tpu.memory_space<vmem>>, vector<16x96xf32>
    %cst_7 = arith.constant dense<0.000000e+00> : vector<16x96xf32>
    %7 = tpu.matmul %0, %6, %cst_7 {dimension_numbers = #tpu.dot_dimension_numbers<[1], [0], [0], [1], [0, 0, 1, 1], [], []>} : vector<16x16xf32>, vector<16x96xf32>, vector<16x96xf32> -> vector<16x96xf32>
    %c0_8 = arith.constant 0 : index
    %c0_9 = arith.constant 0 : index
    %8 = vector.load %arg7[%c0_8, %c0_9] : memref<1x96xf32, #tpu.memory_space<vmem>>, vector<1x96xf32>
    %9 = vector.broadcast %8 : vector<1x96xf32> to vector<16x96xf32>
    %10 = arith.addf %7, %9 : vector<16x96xf32>
    %c0_10 = arith.constant 0 : index
    %c0_11 = arith.constant 0 : index
    %11 = vector.load %arg2[%c0_10, %c0_11] : memref<32x96xf32, #tpu.memory_space<vmem>>, vector<32x96xf32>
    %c0_12 = arith.constant 0 : index
    %c0_13 = arith.constant 0 : index
    %12 = vector.load %arg6[%c0_12, %c0_13] : memref<32x96xf32, #tpu.memory_space<vmem>>, vector<32x96xf32>
    %c0_14 = arith.constant 0 : index
    %c0_15 = arith.constant 0 : index
    %13 = vector.load %arg4[%c0_14, %c0_15] : memref<1x96xf32, #tpu.memory_space<vmem>>, vector<1x96xf32>
    %c0_16 = arith.constant 0 : index
    %c0_17 = arith.constant 0 : index
    %14 = vector.load %arg8[%c0_16, %c0_17] : memref<1x96xf32, #tpu.memory_space<vmem>>, vector<1x96xf32>
    %cst_18 = arith.constant 0.000000e+00 : f32
    %15 = vector.broadcast %cst_18 : f32 to vector<2x32xf32>
    %cst_19 = arith.constant 0.000000e+00 : f32
    %16 = vector.broadcast %cst_19 : f32 to vector<2x32xf32>
    %17 = vector.extract_strided_slice %5 {offsets = [0, 0], sizes = [2, 96], strides = [1, 1]} : vector<16x96xf32> to vector<2x96xf32>
    %18 = vector.extract_strided_slice %10 {offsets = [14, 0], sizes = [2, 96], strides = [1, 1]} : vector<16x96xf32> to vector<2x96xf32>
    %cst_20 = arith.constant dense<0.000000e+00> : vector<2x96xf32>
    %19 = tpu.matmul %15, %11, %cst_20 {dimension_numbers = #tpu.dot_dimension_numbers<[1], [0], [0], [1], [0, 0, 1, 1], [], []>} : vector<2x32xf32>, vector<32x96xf32>, vector<2x96xf32> -> vector<2x96xf32>
    %20 = vector.broadcast %13 : vector<1x96xf32> to vector<2x96xf32>
    %21 = arith.addf %19, %20 : vector<2x96xf32>
    %cst_21 = arith.constant dense<0.000000e+00> : vector<2x96xf32>
    %22 = tpu.matmul %16, %12, %cst_21 {dimension_numbers = #tpu.dot_dimension_numbers<[1], [0], [0], [1], [0, 0, 1, 1], [], []>} : vector<2x32xf32>, vector<32x96xf32>, vector<2x96xf32> -> vector<2x96xf32>
    %23 = vector.broadcast %14 : vector<1x96xf32> to vector<2x96xf32>
    %24 = arith.addf %22, %23 : vector<2x96xf32>
    %25 = vector.extract_strided_slice %17 {offsets = [0, 0], sizes = [2, 64], strides = [1, 1]} : vector<2x96xf32> to vector<2x64xf32>
    %26 = vector.extract_strided_slice %21 {offsets = [0, 0], sizes = [2, 64], strides = [1, 1]} : vector<2x96xf32> to vector<2x64xf32>
    %27 = arith.addf %25, %26 : vector<2x64xf32>
    %28 = arith.negf %27 : vector<2x64xf32>
    %29 = math.exp %28 : vector<2x64xf32>
    %cst_22 = arith.constant 1.000000e+00 : f32
    %30 = vector.broadcast %cst_22 : f32 to vector<2x64xf32>
    %31 = arith.addf %30, %29 : vector<2x64xf32>
    %32 = arith.divf %30, %31 : vector<2x64xf32>
    %33 = vector.extract_strided_slice %32 {offsets = [0, 0], sizes = [2, 32], strides = [1, 1]} : vector<2x64xf32> to vector<2x32xf32>
    %34 = vector.extract_strided_slice %32 {offsets = [0, 32], sizes = [2, 32], strides = [1, 1]} : vector<2x64xf32> to vector<2x32xf32>
    %35 = vector.extract_strided_slice %17 {offsets = [0, 64], sizes = [2, 32], strides = [1, 1]} : vector<2x96xf32> to vector<2x32xf32>
    %36 = vector.extract_strided_slice %21 {offsets = [0, 64], sizes = [2, 32], strides = [1, 1]} : vector<2x96xf32> to vector<2x32xf32>
    %37 = arith.mulf %33, %36 : vector<2x32xf32>
    %38 = arith.addf %35, %37 : vector<2x32xf32>
    %39 = math.tanh %38 : vector<2x32xf32>
    %cst_23 = arith.constant 1.000000e+00 : f32
    %40 = vector.broadcast %cst_23 : f32 to vector<2x32xf32>
    %41 = arith.subf %40, %34 : vector<2x32xf32>
    %42 = arith.mulf %41, %39 : vector<2x32xf32>
    %43 = arith.mulf %34, %15 : vector<2x32xf32>
    %44 = arith.addf %42, %43 : vector<2x32xf32>
    %45 = vector.extract_strided_slice %18 {offsets = [0, 0], sizes = [2, 64], strides = [1, 1]} : vector<2x96xf32> to vector<2x64xf32>
    %46 = vector.extract_strided_slice %24 {offsets = [0, 0], sizes = [2, 64], strides = [1, 1]} : vector<2x96xf32> to vector<2x64xf32>
    %47 = arith.addf %45, %46 : vector<2x64xf32>
    %48 = arith.negf %47 : vector<2x64xf32>
    %49 = math.exp %48 : vector<2x64xf32>
    %cst_24 = arith.constant 1.000000e+00 : f32
    %50 = vector.broadcast %cst_24 : f32 to vector<2x64xf32>
    %51 = arith.addf %50, %49 : vector<2x64xf32>
    %52 = arith.divf %50, %51 : vector<2x64xf32>
    %53 = vector.extract_strided_slice %52 {offsets = [0, 0], sizes = [2, 32], strides = [1, 1]} : vector<2x64xf32> to vector<2x32xf32>
    %54 = vector.extract_strided_slice %52 {offsets = [0, 32], sizes = [2, 32], strides = [1, 1]} : vector<2x64xf32> to vector<2x32xf32>
    %55 = vector.extract_strided_slice %18 {offsets = [0, 64], sizes = [2, 32], strides = [1, 1]} : vector<2x96xf32> to vector<2x32xf32>
    %56 = vector.extract_strided_slice %24 {offsets = [0, 64], sizes = [2, 32], strides = [1, 1]} : vector<2x96xf32> to vector<2x32xf32>
    %57 = arith.mulf %53, %56 : vector<2x32xf32>
    %58 = arith.addf %55, %57 : vector<2x32xf32>
    %59 = math.tanh %58 : vector<2x32xf32>
    %cst_25 = arith.constant 1.000000e+00 : f32
    %60 = vector.broadcast %cst_25 : f32 to vector<2x32xf32>
    %61 = arith.subf %60, %54 : vector<2x32xf32>
    %62 = arith.mulf %61, %59 : vector<2x32xf32>
    %63 = arith.mulf %54, %16 : vector<2x32xf32>
    %64 = arith.addf %62, %63 : vector<2x32xf32>
    %c0_26 = arith.constant 0 : index
    %c0_27 = arith.constant 0 : index
    %65 = vector.load %arg20[%c0_26, %c0_27] : memref<16x32xf32, #tpu.memory_space<vmem>>, vector<2x32xf32>
    tpu.vector_store %arg20[%c0_26, %c0_27], %44 {strides = array<i32>} : memref<16x32xf32, #tpu.memory_space<vmem>>, vector<2x32xf32>,
    %c14 = arith.constant 14 : index
    %c0_28 = arith.constant 0 : index
    %66 = vector.load %arg21[%c14, %c0_28] : memref<16x32xf32, #tpu.memory_space<vmem>>, vector<2x32xf32>
    tpu.vector_store %arg21[%c14, %c0_28], %64 {strides = array<i32>} : memref<16x32xf32, #tpu.memory_space<vmem>>, vector<2x32xf32>,
    %67 = vector.extract_strided_slice %5 {offsets = [2, 0], sizes = [2, 96], strides = [1, 1]} : vector<16x96xf32> to vector<2x96xf32>
    %68 = vector.extract_strided_slice %10 {offsets = [12, 0], sizes = [2, 96], strides = [1, 1]} : vector<16x96xf32> to vector<2x96xf32>
    %cst_29 = arith.constant dense<0.000000e+00> : vector<2x96xf32>
    %69 = tpu.matmul %44, %11, %cst_29 {dimension_numbers = #tpu.dot_dimension_numbers<[1], [0], [0], [1], [0, 0, 1, 1], [], []>} : vector<2x32xf32>, vector<32x96xf32>, vector<2x96xf32> -> vector<2x96xf32>
    %70 = vector.broadcast %13 : vector<1x96xf32> to vector<2x96xf32>
    %71 = arith.addf %69, %70 : vector<2x96xf32>
    %cst_30 = arith.constant dense<0.000000e+00> : vector<2x96xf32>
    %72 = tpu.matmul %64, %12, %cst_30 {dimension_numbers = #tpu.dot_dimension_numbers<[1], [0], [0], [1], [0, 0, 1, 1], [], []>} : vector<2x32xf32>, vector<32x96xf32>, vector<2x96xf32> -> vector<2x96xf32>
    %73 = vector.broadcast %14 : vector<1x96xf32> to vector<2x96xf32>
    %74 = arith.addf %72, %73 : vector<2x96xf32>
    %75 = vector.extract_strided_slice %67 {offsets = [0, 0], sizes = [2, 64], strides = [1, 1]} : vector<2x96xf32> to vector<2x64xf32>
    %76 = vector.extract_strided_slice %71 {offsets = [0, 0], sizes = [2, 64], strides = [1, 1]} : vector<2x96xf32> to vector<2x64xf32>
    %77 = arith.addf %75, %76 : vector<2x64xf32>
    %78 = arith.negf %77 : vector<2x64xf32>
    %79 = math.exp %78 : vector<2x64xf32>
    %cst_31 = arith.constant 1.000000e+00 : f32
    %80 = vector.broadcast %cst_31 : f32 to vector<2x64xf32>
    %81 = arith.addf %80, %79 : vector<2x64xf32>
    %82 = arith.divf %80, %81 : vector<2x64xf32>
    %83 = vector.extract_strided_slice %82 {offsets = [0, 0], sizes = [2, 32], strides = [1, 1]} : vector<2x64xf32> to vector<2x32xf32>
    %84 = vector.extract_strided_slice %82 {offsets = [0, 32], sizes = [2, 32], strides = [1, 1]} : vector<2x64xf32> to vector<2x32xf32>
    %85 = vector.extract_strided_slice %67 {offsets = [0, 64], sizes = [2, 32], strides = [1, 1]} : vector<2x96xf32> to vector<2x32xf32>
    %86 = vector.extract_strided_slice %71 {offsets = [0, 64], sizes = [2, 32], strides = [1, 1]} : vector<2x96xf32> to vector<2x32xf32>
    %87 = arith.mulf %83, %86 : vector<2x32xf32>
    %88 = arith.addf %85, %87 : vector<2x32xf32>
    %89 = math.tanh %88 : vector<2x32xf32>
    %cst_32 = arith.constant 1.000000e+00 : f32
    %90 = vector.broadcast %cst_32 : f32 to vector<2x32xf32>
    %91 = arith.subf %90, %84 : vector<2x32xf32>
    %92 = arith.mulf %91, %89 : vector<2x32xf32>
    %93 = arith.mulf %84, %44 : vector<2x32xf32>
    %94 = arith.addf %92, %93 : vector<2x32xf32>
    %95 = vector.extract_strided_slice %68 {offsets = [0, 0], sizes = [2, 64], strides = [1, 1]} : vector<2x96xf32> to vector<2x64xf32>
    %96 = vector.extract_strided_slice %74 {offsets = [0, 0], sizes = [2, 64], strides = [1, 1]} : vector<2x96xf32> to vector<2x64xf32>
    %97 = arith.addf %95, %96 : vector<2x64xf32>
    %98 = arith.negf %97 : vector<2x64xf32>
    %99 = math.exp %98 : vector<2x64xf32>
    %cst_33 = arith.constant 1.000000e+00 : f32
    %100 = vector.broadcast %cst_33 : f32 to vector<2x64xf32>
    %101 = arith.addf %100, %99 : vector<2x64xf32>
    %102 = arith.divf %100, %101 : vector<2x64xf32>
    %103 = vector.extract_strided_slice %102 {offsets = [0, 0], sizes = [2, 32], strides = [1, 1]} : vector<2x64xf32> to vector<2x32xf32>
    %104 = vector.extract_strided_slice %102 {offsets = [0, 32], sizes = [2, 32], strides = [1, 1]} : vector<2x64xf32> to vector<2x32xf32>
    %105 = vector.extract_strided_slice %68 {offsets = [0, 64], sizes = [2, 32], strides = [1, 1]} : vector<2x96xf32> to vector<2x32xf32>
    %106 = vector.extract_strided_slice %74 {offsets = [0, 64], sizes = [2, 32], strides = [1, 1]} : vector<2x96xf32> to vector<2x32xf32>
    %107 = arith.mulf %103, %106 : vector<2x32xf32>
    %108 = arith.addf %105, %107 : vector<2x32xf32>
    %109 = math.tanh %108 : vector<2x32xf32>
    %cst_34 = arith.constant 1.000000e+00 : f32
    %110 = vector.broadcast %cst_34 : f32 to vector<2x32xf32>
    %111 = arith.subf %110, %104 : vector<2x32xf32>
    %112 = arith.mulf %111, %109 : vector<2x32xf32>
    %113 = arith.mulf %104, %64 : vector<2x32xf32>
    %114 = arith.addf %112, %113 : vector<2x32xf32>
    %c2 = arith.constant 2 : index
    %c0_35 = arith.constant 0 : index
    %115 = vector.load %arg20[%c2, %c0_35] : memref<16x32xf32, #tpu.memory_space<vmem>>, vector<2x32xf32>
    tpu.vector_store %arg20[%c2, %c0_35], %94 {strides = array<i32>} : memref<16x32xf32, #tpu.memory_space<vmem>>, vector<2x32xf32>,
    %c12 = arith.constant 12 : index
    %c0_36 = arith.constant 0 : index
    %116 = vector.load %arg21[%c12, %c0_36] : memref<16x32xf32, #tpu.memory_space<vmem>>, vector<2x32xf32>
    tpu.vector_store %arg21[%c12, %c0_36], %114 {strides = array<i32>} : memref<16x32xf32, #tpu.memory_space<vmem>>, vector<2x32xf32>,
    %117 = vector.extract_strided_slice %5 {offsets = [4, 0], sizes = [2, 96], strides = [1, 1]} : vector<16x96xf32> to vector<2x96xf32>
    %118 = vector.extract_strided_slice %10 {offsets = [10, 0], sizes = [2, 96], strides = [1, 1]} : vector<16x96xf32> to vector<2x96xf32>
    %cst_37 = arith.constant dense<0.000000e+00> : vector<2x96xf32>
    %119 = tpu.matmul %94, %11, %cst_37 {dimension_numbers = #tpu.dot_dimension_numbers<[1], [0], [0], [1], [0, 0, 1, 1], [], []>} : vector<2x32xf32>, vector<32x96xf32>, vector<2x96xf32> -> vector<2x96xf32>
    %120 = vector.broadcast %13 : vector<1x96xf32> to vector<2x96xf32>
    %121 = arith.addf %119, %120 : vector<2x96xf32>
    %cst_38 = arith.constant dense<0.000000e+00> : vector<2x96xf32>
    %122 = tpu.matmul %114, %12, %cst_38 {dimension_numbers = #tpu.dot_dimension_numbers<[1], [0], [0], [1], [0, 0, 1, 1], [], []>} : vector<2x32xf32>, vector<32x96xf32>, vector<2x96xf32> -> vector<2x96xf32>
    %123 = vector.broadcast %14 : vector<1x96xf32> to vector<2x96xf32>
    %124 = arith.addf %122, %123 : vector<2x96xf32>
    %125 = vector.extract_strided_slice %117 {offsets = [0, 0], sizes = [2, 64], strides = [1, 1]} : vector<2x96xf32> to vector<2x64xf32>
    %126 = vector.extract_strided_slice %121 {offsets = [0, 0], sizes = [2, 64], strides = [1, 1]} : vector<2x96xf32> to vector<2x64xf32>
    %127 = arith.addf %125, %126 : vector<2x64xf32>
    %128 = arith.negf %127 : vector<2x64xf32>
    %129 = math.exp %128 : vector<2x64xf32>
    %cst_39 = arith.constant 1.000000e+00 : f32
    %130 = vector.broadcast %cst_39 : f32 to vector<2x64xf32>
    %131 = arith.addf %130, %129 : vector<2x64xf32>
    %132 = arith.divf %130, %131 : vector<2x64xf32>
    %133 = vector.extract_strided_slice %132 {offsets = [0, 0], sizes = [2, 32], strides = [1, 1]} : vector<2x64xf32> to vector<2x32xf32>
    %134 = vector.extract_strided_slice %132 {offsets = [0, 32], sizes = [2, 32], strides = [1, 1]} : vector<2x64xf32> to vector<2x32xf32>
    %135 = vector.extract_strided_slice %117 {offsets = [0, 64], sizes = [2, 32], strides = [1, 1]} : vector<2x96xf32> to vector<2x32xf32>
    %136 = vector.extract_strided_slice %121 {offsets = [0, 64], sizes = [2, 32], strides = [1, 1]} : vector<2x96xf32> to vector<2x32xf32>
    %137 = arith.mulf %133, %136 : vector<2x32xf32>
    %138 = arith.addf %135, %137 : vector<2x32xf32>
    %139 = math.tanh %138 : vector<2x32xf32>
    %cst_40 = arith.constant 1.000000e+00 : f32
    %140 = vector.broadcast %cst_40 : f32 to vector<2x32xf32>
    %141 = arith.subf %140, %134 : vector<2x32xf32>
    %142 = arith.mulf %141, %139 : vector<2x32xf32>
    %143 = arith.mulf %134, %94 : vector<2x32xf32>
    %144 = arith.addf %142, %143 : vector<2x32xf32>
    %145 = vector.extract_strided_slice %118 {offsets = [0, 0], sizes = [2, 64], strides = [1, 1]} : vector<2x96xf32> to vector<2x64xf32>
    %146 = vector.extract_strided_slice %124 {offsets = [0, 0], sizes = [2, 64], strides = [1, 1]} : vector<2x96xf32> to vector<2x64xf32>
    %147 = arith.addf %145, %146 : vector<2x64xf32>
    %148 = arith.negf %147 : vector<2x64xf32>
    %149 = math.exp %148 : vector<2x64xf32>
    %cst_41 = arith.constant 1.000000e+00 : f32
    %150 = vector.broadcast %cst_41 : f32 to vector<2x64xf32>
    %151 = arith.addf %150, %149 : vector<2x64xf32>
    %152 = arith.divf %150, %151 : vector<2x64xf32>
    %153 = vector.extract_strided_slice %152 {offsets = [0, 0], sizes = [2, 32], strides = [1, 1]} : vector<2x64xf32> to vector<2x32xf32>
    %154 = vector.extract_strided_slice %152 {offsets = [0, 32], sizes = [2, 32], strides = [1, 1]} : vector<2x64xf32> to vector<2x32xf32>
    %155 = vector.extract_strided_slice %118 {offsets = [0, 64], sizes = [2, 32], strides = [1, 1]} : vector<2x96xf32> to vector<2x32xf32>
    %156 = vector.extract_strided_slice %124 {offsets = [0, 64], sizes = [2, 32], strides = [1, 1]} : vector<2x96xf32> to vector<2x32xf32>
    %157 = arith.mulf %153, %156 : vector<2x32xf32>
    %158 = arith.addf %155, %157 : vector<2x32xf32>
    %159 = math.tanh %158 : vector<2x32xf32>
    %cst_42 = arith.constant 1.000000e+00 : f32
    %160 = vector.broadcast %cst_42 : f32 to vector<2x32xf32>
    %161 = arith.subf %160, %154 : vector<2x32xf32>
    %162 = arith.mulf %161, %159 : vector<2x32xf32>
    %163 = arith.mulf %154, %114 : vector<2x32xf32>
    %164 = arith.addf %162, %163 : vector<2x32xf32>
    %c4 = arith.constant 4 : index
    %c0_43 = arith.constant 0 : index
    %165 = vector.load %arg20[%c4, %c0_43] : memref<16x32xf32, #tpu.memory_space<vmem>>, vector<2x32xf32>
    tpu.vector_store %arg20[%c4, %c0_43], %144 {strides = array<i32>} : memref<16x32xf32, #tpu.memory_space<vmem>>, vector<2x32xf32>,
    %c10 = arith.constant 10 : index
    %c0_44 = arith.constant 0 : index
    %166 = vector.load %arg21[%c10, %c0_44] : memref<16x32xf32, #tpu.memory_space<vmem>>, vector<2x32xf32>
    tpu.vector_store %arg21[%c10, %c0_44], %164 {strides = array<i32>} : memref<16x32xf32, #tpu.memory_space<vmem>>, vector<2x32xf32>,
    %167 = vector.extract_strided_slice %5 {offsets = [6, 0], sizes = [2, 96], strides = [1, 1]} : vector<16x96xf32> to vector<2x96xf32>
    %168 = vector.extract_strided_slice %10 {offsets = [8, 0], sizes = [2, 96], strides = [1, 1]} : vector<16x96xf32> to vector<2x96xf32>
    %cst_45 = arith.constant dense<0.000000e+00> : vector<2x96xf32>
    %169 = tpu.matmul %144, %11, %cst_45 {dimension_numbers = #tpu.dot_dimension_numbers<[1], [0], [0], [1], [0, 0, 1, 1], [], []>} : vector<2x32xf32>, vector<32x96xf32>, vector<2x96xf32> -> vector<2x96xf32>
    %170 = vector.broadcast %13 : vector<1x96xf32> to vector<2x96xf32>
    %171 = arith.addf %169, %170 : vector<2x96xf32>
    %cst_46 = arith.constant dense<0.000000e+00> : vector<2x96xf32>
    %172 = tpu.matmul %164, %12, %cst_46 {dimension_numbers = #tpu.dot_dimension_numbers<[1], [0], [0], [1], [0, 0, 1, 1], [], []>} : vector<2x32xf32>, vector<32x96xf32>, vector<2x96xf32> -> vector<2x96xf32>
    %173 = vector.broadcast %14 : vector<1x96xf32> to vector<2x96xf32>
    %174 = arith.addf %172, %173 : vector<2x96xf32>
    %175 = vector.extract_strided_slice %167 {offsets = [0, 0], sizes = [2, 64], strides = [1, 1]} : vector<2x96xf32> to vector<2x64xf32>
    %176 = vector.extract_strided_slice %171 {offsets = [0, 0], sizes = [2, 64], strides = [1, 1]} : vector<2x96xf32> to vector<2x64xf32>
    %177 = arith.addf %175, %176 : vector<2x64xf32>
    %178 = arith.negf %177 : vector<2x64xf32>
    %179 = math.exp %178 : vector<2x64xf32>
    %cst_47 = arith.constant 1.000000e+00 : f32
    %180 = vector.broadcast %cst_47 : f32 to vector<2x64xf32>
    %181 = arith.addf %180, %179 : vector<2x64xf32>
    %182 = arith.divf %180, %181 : vector<2x64xf32>
    %183 = vector.extract_strided_slice %182 {offsets = [0, 0], sizes = [2, 32], strides = [1, 1]} : vector<2x64xf32> to vector<2x32xf32>
    %184 = vector.extract_strided_slice %182 {offsets = [0, 32], sizes = [2, 32], strides = [1, 1]} : vector<2x64xf32> to vector<2x32xf32>
    %185 = vector.extract_strided_slice %167 {offsets = [0, 64], sizes = [2, 32], strides = [1, 1]} : vector<2x96xf32> to vector<2x32xf32>
    %186 = vector.extract_strided_slice %171 {offsets = [0, 64], sizes = [2, 32], strides = [1, 1]} : vector<2x96xf32> to vector<2x32xf32>
    %187 = arith.mulf %183, %186 : vector<2x32xf32>
    %188 = arith.addf %185, %187 : vector<2x32xf32>
    %189 = math.tanh %188 : vector<2x32xf32>
    %cst_48 = arith.constant 1.000000e+00 : f32
    %190 = vector.broadcast %cst_48 : f32 to vector<2x32xf32>
    %191 = arith.subf %190, %184 : vector<2x32xf32>
    %192 = arith.mulf %191, %189 : vector<2x32xf32>
    %193 = arith.mulf %184, %144 : vector<2x32xf32>
    %194 = arith.addf %192, %193 : vector<2x32xf32>
    %195 = vector.extract_strided_slice %168 {offsets = [0, 0], sizes = [2, 64], strides = [1, 1]} : vector<2x96xf32> to vector<2x64xf32>
    %196 = vector.extract_strided_slice %174 {offsets = [0, 0], sizes = [2, 64], strides = [1, 1]} : vector<2x96xf32> to vector<2x64xf32>
    %197 = arith.addf %195, %196 : vector<2x64xf32>
    %198 = arith.negf %197 : vector<2x64xf32>
    %199 = math.exp %198 : vector<2x64xf32>
    %cst_49 = arith.constant 1.000000e+00 : f32
    %200 = vector.broadcast %cst_49 : f32 to vector<2x64xf32>
    %201 = arith.addf %200, %199 : vector<2x64xf32>
    %202 = arith.divf %200, %201 : vector<2x64xf32>
    %203 = vector.extract_strided_slice %202 {offsets = [0, 0], sizes = [2, 32], strides = [1, 1]} : vector<2x64xf32> to vector<2x32xf32>
    %204 = vector.extract_strided_slice %202 {offsets = [0, 32], sizes = [2, 32], strides = [1, 1]} : vector<2x64xf32> to vector<2x32xf32>
    %205 = vector.extract_strided_slice %168 {offsets = [0, 64], sizes = [2, 32], strides = [1, 1]} : vector<2x96xf32> to vector<2x32xf32>
    %206 = vector.extract_strided_slice %174 {offsets = [0, 64], sizes = [2, 32], strides = [1, 1]} : vector<2x96xf32> to vector<2x32xf32>
    %207 = arith.mulf %203, %206 : vector<2x32xf32>
    %208 = arith.addf %205, %207 : vector<2x32xf32>
    %209 = math.tanh %208 : vector<2x32xf32>
    %cst_50 = arith.constant 1.000000e+00 : f32
    %210 = vector.broadcast %cst_50 : f32 to vector<2x32xf32>
    %211 = arith.subf %210, %204 : vector<2x32xf32>
    %212 = arith.mulf %211, %209 : vector<2x32xf32>
    %213 = arith.mulf %204, %164 : vector<2x32xf32>
    %214 = arith.addf %212, %213 : vector<2x32xf32>
    %c6 = arith.constant 6 : index
    %c0_51 = arith.constant 0 : index
    %215 = vector.load %arg20[%c6, %c0_51] : memref<16x32xf32, #tpu.memory_space<vmem>>, vector<2x32xf32>
    tpu.vector_store %arg20[%c6, %c0_51], %194 {strides = array<i32>} : memref<16x32xf32, #tpu.memory_space<vmem>>, vector<2x32xf32>,
    %c8 = arith.constant 8 : index
    %c0_52 = arith.constant 0 : index
    %216 = vector.load %arg21[%c8, %c0_52] : memref<16x32xf32, #tpu.memory_space<vmem>>, vector<2x32xf32>
    tpu.vector_store %arg21[%c8, %c0_52], %214 {strides = array<i32>} : memref<16x32xf32, #tpu.memory_space<vmem>>, vector<2x32xf32>,
    %217 = vector.extract_strided_slice %5 {offsets = [8, 0], sizes = [2, 96], strides = [1, 1]} : vector<16x96xf32> to vector<2x96xf32>
    %218 = vector.extract_strided_slice %10 {offsets = [6, 0], sizes = [2, 96], strides = [1, 1]} : vector<16x96xf32> to vector<2x96xf32>
    %cst_53 = arith.constant dense<0.000000e+00> : vector<2x96xf32>
    %219 = tpu.matmul %194, %11, %cst_53 {dimension_numbers = #tpu.dot_dimension_numbers<[1], [0], [0], [1], [0, 0, 1, 1], [], []>} : vector<2x32xf32>, vector<32x96xf32>, vector<2x96xf32> -> vector<2x96xf32>
    %220 = vector.broadcast %13 : vector<1x96xf32> to vector<2x96xf32>
    %221 = arith.addf %219, %220 : vector<2x96xf32>
    %cst_54 = arith.constant dense<0.000000e+00> : vector<2x96xf32>
    %222 = tpu.matmul %214, %12, %cst_54 {dimension_numbers = #tpu.dot_dimension_numbers<[1], [0], [0], [1], [0, 0, 1, 1], [], []>} : vector<2x32xf32>, vector<32x96xf32>, vector<2x96xf32> -> vector<2x96xf32>
    %223 = vector.broadcast %14 : vector<1x96xf32> to vector<2x96xf32>
    %224 = arith.addf %222, %223 : vector<2x96xf32>
    %225 = vector.extract_strided_slice %217 {offsets = [0, 0], sizes = [2, 64], strides = [1, 1]} : vector<2x96xf32> to vector<2x64xf32>
    %226 = vector.extract_strided_slice %221 {offsets = [0, 0], sizes = [2, 64], strides = [1, 1]} : vector<2x96xf32> to vector<2x64xf32>
    %227 = arith.addf %225, %226 : vector<2x64xf32>
    %228 = arith.negf %227 : vector<2x64xf32>
    %229 = math.exp %228 : vector<2x64xf32>
    %cst_55 = arith.constant 1.000000e+00 : f32
    %230 = vector.broadcast %cst_55 : f32 to vector<2x64xf32>
    %231 = arith.addf %230, %229 : vector<2x64xf32>
    %232 = arith.divf %230, %231 : vector<2x64xf32>
    %233 = vector.extract_strided_slice %232 {offsets = [0, 0], sizes = [2, 32], strides = [1, 1]} : vector<2x64xf32> to vector<2x32xf32>
    %234 = vector.extract_strided_slice %232 {offsets = [0, 32], sizes = [2, 32], strides = [1, 1]} : vector<2x64xf32> to vector<2x32xf32>
    %235 = vector.extract_strided_slice %217 {offsets = [0, 64], sizes = [2, 32], strides = [1, 1]} : vector<2x96xf32> to vector<2x32xf32>
    %236 = vector.extract_strided_slice %221 {offsets = [0, 64], sizes = [2, 32], strides = [1, 1]} : vector<2x96xf32> to vector<2x32xf32>
    %237 = arith.mulf %233, %236 : vector<2x32xf32>
    %238 = arith.addf %235, %237 : vector<2x32xf32>
    %239 = math.tanh %238 : vector<2x32xf32>
    %cst_56 = arith.constant 1.000000e+00 : f32
    %240 = vector.broadcast %cst_56 : f32 to vector<2x32xf32>
    %241 = arith.subf %240, %234 : vector<2x32xf32>
    %242 = arith.mulf %241, %239 : vector<2x32xf32>
    %243 = arith.mulf %234, %194 : vector<2x32xf32>
    %244 = arith.addf %242, %243 : vector<2x32xf32>
    %245 = vector.extract_strided_slice %218 {offsets = [0, 0], sizes = [2, 64], strides = [1, 1]} : vector<2x96xf32> to vector<2x64xf32>
    %246 = vector.extract_strided_slice %224 {offsets = [0, 0], sizes = [2, 64], strides = [1, 1]} : vector<2x96xf32> to vector<2x64xf32>
    %247 = arith.addf %245, %246 : vector<2x64xf32>
    %248 = arith.negf %247 : vector<2x64xf32>
    %249 = math.exp %248 : vector<2x64xf32>
    %cst_57 = arith.constant 1.000000e+00 : f32
    %250 = vector.broadcast %cst_57 : f32 to vector<2x64xf32>
    %251 = arith.addf %250, %249 : vector<2x64xf32>
    %252 = arith.divf %250, %251 : vector<2x64xf32>
    %253 = vector.extract_strided_slice %252 {offsets = [0, 0], sizes = [2, 32], strides = [1, 1]} : vector<2x64xf32> to vector<2x32xf32>
    %254 = vector.extract_strided_slice %252 {offsets = [0, 32], sizes = [2, 32], strides = [1, 1]} : vector<2x64xf32> to vector<2x32xf32>
    %255 = vector.extract_strided_slice %218 {offsets = [0, 64], sizes = [2, 32], strides = [1, 1]} : vector<2x96xf32> to vector<2x32xf32>
    %256 = vector.extract_strided_slice %224 {offsets = [0, 64], sizes = [2, 32], strides = [1, 1]} : vector<2x96xf32> to vector<2x32xf32>
    %257 = arith.mulf %253, %256 : vector<2x32xf32>
    %258 = arith.addf %255, %257 : vector<2x32xf32>
    %259 = math.tanh %258 : vector<2x32xf32>
    %cst_58 = arith.constant 1.000000e+00 : f32
    %260 = vector.broadcast %cst_58 : f32 to vector<2x32xf32>
    %261 = arith.subf %260, %254 : vector<2x32xf32>
    %262 = arith.mulf %261, %259 : vector<2x32xf32>
    %263 = arith.mulf %254, %214 : vector<2x32xf32>
    %264 = arith.addf %262, %263 : vector<2x32xf32>
    %c8_59 = arith.constant 8 : index
    %c0_60 = arith.constant 0 : index
    %265 = vector.load %arg20[%c8_59, %c0_60] : memref<16x32xf32, #tpu.memory_space<vmem>>, vector<2x32xf32>
    tpu.vector_store %arg20[%c8_59, %c0_60], %244 {strides = array<i32>} : memref<16x32xf32, #tpu.memory_space<vmem>>, vector<2x32xf32>,
    %c6_61 = arith.constant 6 : index
    %c0_62 = arith.constant 0 : index
    %266 = vector.load %arg21[%c6_61, %c0_62] : memref<16x32xf32, #tpu.memory_space<vmem>>, vector<2x32xf32>
    tpu.vector_store %arg21[%c6_61, %c0_62], %264 {strides = array<i32>} : memref<16x32xf32, #tpu.memory_space<vmem>>, vector<2x32xf32>,
    %267 = vector.extract_strided_slice %5 {offsets = [10, 0], sizes = [2, 96], strides = [1, 1]} : vector<16x96xf32> to vector<2x96xf32>
    %268 = vector.extract_strided_slice %10 {offsets = [4, 0], sizes = [2, 96], strides = [1, 1]} : vector<16x96xf32> to vector<2x96xf32>
    %cst_63 = arith.constant dense<0.000000e+00> : vector<2x96xf32>
    %269 = tpu.matmul %244, %11, %cst_63 {dimension_numbers = #tpu.dot_dimension_numbers<[1], [0], [0], [1], [0, 0, 1, 1], [], []>} : vector<2x32xf32>, vector<32x96xf32>, vector<2x96xf32> -> vector<2x96xf32>
    %270 = vector.broadcast %13 : vector<1x96xf32> to vector<2x96xf32>
    %271 = arith.addf %269, %270 : vector<2x96xf32>
    %cst_64 = arith.constant dense<0.000000e+00> : vector<2x96xf32>
    %272 = tpu.matmul %264, %12, %cst_64 {dimension_numbers = #tpu.dot_dimension_numbers<[1], [0], [0], [1], [0, 0, 1, 1], [], []>} : vector<2x32xf32>, vector<32x96xf32>, vector<2x96xf32> -> vector<2x96xf32>
    %273 = vector.broadcast %14 : vector<1x96xf32> to vector<2x96xf32>
    %274 = arith.addf %272, %273 : vector<2x96xf32>
    %275 = vector.extract_strided_slice %267 {offsets = [0, 0], sizes = [2, 64], strides = [1, 1]} : vector<2x96xf32> to vector<2x64xf32>
    %276 = vector.extract_strided_slice %271 {offsets = [0, 0], sizes = [2, 64], strides = [1, 1]} : vector<2x96xf32> to vector<2x64xf32>
    %277 = arith.addf %275, %276 : vector<2x64xf32>
    %278 = arith.negf %277 : vector<2x64xf32>
    %279 = math.exp %278 : vector<2x64xf32>
    %cst_65 = arith.constant 1.000000e+00 : f32
    %280 = vector.broadcast %cst_65 : f32 to vector<2x64xf32>
    %281 = arith.addf %280, %279 : vector<2x64xf32>
    %282 = arith.divf %280, %281 : vector<2x64xf32>
    %283 = vector.extract_strided_slice %282 {offsets = [0, 0], sizes = [2, 32], strides = [1, 1]} : vector<2x64xf32> to vector<2x32xf32>
    %284 = vector.extract_strided_slice %282 {offsets = [0, 32], sizes = [2, 32], strides = [1, 1]} : vector<2x64xf32> to vector<2x32xf32>
    %285 = vector.extract_strided_slice %267 {offsets = [0, 64], sizes = [2, 32], strides = [1, 1]} : vector<2x96xf32> to vector<2x32xf32>
    %286 = vector.extract_strided_slice %271 {offsets = [0, 64], sizes = [2, 32], strides = [1, 1]} : vector<2x96xf32> to vector<2x32xf32>
    %287 = arith.mulf %283, %286 : vector<2x32xf32>
    %288 = arith.addf %285, %287 : vector<2x32xf32>
    %289 = math.tanh %288 : vector<2x32xf32>
    %cst_66 = arith.constant 1.000000e+00 : f32
    %290 = vector.broadcast %cst_66 : f32 to vector<2x32xf32>
    %291 = arith.subf %290, %284 : vector<2x32xf32>
    %292 = arith.mulf %291, %289 : vector<2x32xf32>
    %293 = arith.mulf %284, %244 : vector<2x32xf32>
    %294 = arith.addf %292, %293 : vector<2x32xf32>
    %295 = vector.extract_strided_slice %268 {offsets = [0, 0], sizes = [2, 64], strides = [1, 1]} : vector<2x96xf32> to vector<2x64xf32>
    %296 = vector.extract_strided_slice %274 {offsets = [0, 0], sizes = [2, 64], strides = [1, 1]} : vector<2x96xf32> to vector<2x64xf32>
    %297 = arith.addf %295, %296 : vector<2x64xf32>
    %298 = arith.negf %297 : vector<2x64xf32>
    %299 = math.exp %298 : vector<2x64xf32>
    %cst_67 = arith.constant 1.000000e+00 : f32
    %300 = vector.broadcast %cst_67 : f32 to vector<2x64xf32>
    %301 = arith.addf %300, %299 : vector<2x64xf32>
    %302 = arith.divf %300, %301 : vector<2x64xf32>
    %303 = vector.extract_strided_slice %302 {offsets = [0, 0], sizes = [2, 32], strides = [1, 1]} : vector<2x64xf32> to vector<2x32xf32>
    %304 = vector.extract_strided_slice %302 {offsets = [0, 32], sizes = [2, 32], strides = [1, 1]} : vector<2x64xf32> to vector<2x32xf32>
    %305 = vector.extract_strided_slice %268 {offsets = [0, 64], sizes = [2, 32], strides = [1, 1]} : vector<2x96xf32> to vector<2x32xf32>
    %306 = vector.extract_strided_slice %274 {offsets = [0, 64], sizes = [2, 32], strides = [1, 1]} : vector<2x96xf32> to vector<2x32xf32>
    %307 = arith.mulf %303, %306 : vector<2x32xf32>
    %308 = arith.addf %305, %307 : vector<2x32xf32>
    %309 = math.tanh %308 : vector<2x32xf32>
    %cst_68 = arith.constant 1.000000e+00 : f32
    %310 = vector.broadcast %cst_68 : f32 to vector<2x32xf32>
    %311 = arith.subf %310, %304 : vector<2x32xf32>
    %312 = arith.mulf %311, %309 : vector<2x32xf32>
    %313 = arith.mulf %304, %264 : vector<2x32xf32>
    %314 = arith.addf %312, %313 : vector<2x32xf32>
    %c10_69 = arith.constant 10 : index
    %c0_70 = arith.constant 0 : index
    %315 = vector.load %arg20[%c10_69, %c0_70] : memref<16x32xf32, #tpu.memory_space<vmem>>, vector<2x32xf32>
    tpu.vector_store %arg20[%c10_69, %c0_70], %294 {strides = array<i32>} : memref<16x32xf32, #tpu.memory_space<vmem>>, vector<2x32xf32>,
    %c4_71 = arith.constant 4 : index
    %c0_72 = arith.constant 0 : index
    %316 = vector.load %arg21[%c4_71, %c0_72] : memref<16x32xf32, #tpu.memory_space<vmem>>, vector<2x32xf32>
    tpu.vector_store %arg21[%c4_71, %c0_72], %314 {strides = array<i32>} : memref<16x32xf32, #tpu.memory_space<vmem>>, vector<2x32xf32>,
    %317 = vector.extract_strided_slice %5 {offsets = [12, 0], sizes = [2, 96], strides = [1, 1]} : vector<16x96xf32> to vector<2x96xf32>
    %318 = vector.extract_strided_slice %10 {offsets = [2, 0], sizes = [2, 96], strides = [1, 1]} : vector<16x96xf32> to vector<2x96xf32>
    %cst_73 = arith.constant dense<0.000000e+00> : vector<2x96xf32>
    %319 = tpu.matmul %294, %11, %cst_73 {dimension_numbers = #tpu.dot_dimension_numbers<[1], [0], [0], [1], [0, 0, 1, 1], [], []>} : vector<2x32xf32>, vector<32x96xf32>, vector<2x96xf32> -> vector<2x96xf32>
    %320 = vector.broadcast %13 : vector<1x96xf32> to vector<2x96xf32>
    %321 = arith.addf %319, %320 : vector<2x96xf32>
    %cst_74 = arith.constant dense<0.000000e+00> : vector<2x96xf32>
    %322 = tpu.matmul %314, %12, %cst_74 {dimension_numbers = #tpu.dot_dimension_numbers<[1], [0], [0], [1], [0, 0, 1, 1], [], []>} : vector<2x32xf32>, vector<32x96xf32>, vector<2x96xf32> -> vector<2x96xf32>
    %323 = vector.broadcast %14 : vector<1x96xf32> to vector<2x96xf32>
    %324 = arith.addf %322, %323 : vector<2x96xf32>
    %325 = vector.extract_strided_slice %317 {offsets = [0, 0], sizes = [2, 64], strides = [1, 1]} : vector<2x96xf32> to vector<2x64xf32>
    %326 = vector.extract_strided_slice %321 {offsets = [0, 0], sizes = [2, 64], strides = [1, 1]} : vector<2x96xf32> to vector<2x64xf32>
    %327 = arith.addf %325, %326 : vector<2x64xf32>
    %328 = arith.negf %327 : vector<2x64xf32>
    %329 = math.exp %328 : vector<2x64xf32>
    %cst_75 = arith.constant 1.000000e+00 : f32
    %330 = vector.broadcast %cst_75 : f32 to vector<2x64xf32>
    %331 = arith.addf %330, %329 : vector<2x64xf32>
    %332 = arith.divf %330, %331 : vector<2x64xf32>
    %333 = vector.extract_strided_slice %332 {offsets = [0, 0], sizes = [2, 32], strides = [1, 1]} : vector<2x64xf32> to vector<2x32xf32>
    %334 = vector.extract_strided_slice %332 {offsets = [0, 32], sizes = [2, 32], strides = [1, 1]} : vector<2x64xf32> to vector<2x32xf32>
    %335 = vector.extract_strided_slice %317 {offsets = [0, 64], sizes = [2, 32], strides = [1, 1]} : vector<2x96xf32> to vector<2x32xf32>
    %336 = vector.extract_strided_slice %321 {offsets = [0, 64], sizes = [2, 32], strides = [1, 1]} : vector<2x96xf32> to vector<2x32xf32>
    %337 = arith.mulf %333, %336 : vector<2x32xf32>
    %338 = arith.addf %335, %337 : vector<2x32xf32>
    %339 = math.tanh %338 : vector<2x32xf32>
    %cst_76 = arith.constant 1.000000e+00 : f32
    %340 = vector.broadcast %cst_76 : f32 to vector<2x32xf32>
    %341 = arith.subf %340, %334 : vector<2x32xf32>
    %342 = arith.mulf %341, %339 : vector<2x32xf32>
    %343 = arith.mulf %334, %294 : vector<2x32xf32>
    %344 = arith.addf %342, %343 : vector<2x32xf32>
    %345 = vector.extract_strided_slice %318 {offsets = [0, 0], sizes = [2, 64], strides = [1, 1]} : vector<2x96xf32> to vector<2x64xf32>
    %346 = vector.extract_strided_slice %324 {offsets = [0, 0], sizes = [2, 64], strides = [1, 1]} : vector<2x96xf32> to vector<2x64xf32>
    %347 = arith.addf %345, %346 : vector<2x64xf32>
    %348 = arith.negf %347 : vector<2x64xf32>
    %349 = math.exp %348 : vector<2x64xf32>
    %cst_77 = arith.constant 1.000000e+00 : f32
    %350 = vector.broadcast %cst_77 : f32 to vector<2x64xf32>
    %351 = arith.addf %350, %349 : vector<2x64xf32>
    %352 = arith.divf %350, %351 : vector<2x64xf32>
    %353 = vector.extract_strided_slice %352 {offsets = [0, 0], sizes = [2, 32], strides = [1, 1]} : vector<2x64xf32> to vector<2x32xf32>
    %354 = vector.extract_strided_slice %352 {offsets = [0, 32], sizes = [2, 32], strides = [1, 1]} : vector<2x64xf32> to vector<2x32xf32>
    %355 = vector.extract_strided_slice %318 {offsets = [0, 64], sizes = [2, 32], strides = [1, 1]} : vector<2x96xf32> to vector<2x32xf32>
    %356 = vector.extract_strided_slice %324 {offsets = [0, 64], sizes = [2, 32], strides = [1, 1]} : vector<2x96xf32> to vector<2x32xf32>
    %357 = arith.mulf %353, %356 : vector<2x32xf32>
    %358 = arith.addf %355, %357 : vector<2x32xf32>
    %359 = math.tanh %358 : vector<2x32xf32>
    %cst_78 = arith.constant 1.000000e+00 : f32
    %360 = vector.broadcast %cst_78 : f32 to vector<2x32xf32>
    %361 = arith.subf %360, %354 : vector<2x32xf32>
    %362 = arith.mulf %361, %359 : vector<2x32xf32>
    %363 = arith.mulf %354, %314 : vector<2x32xf32>
    %364 = arith.addf %362, %363 : vector<2x32xf32>
    %c12_79 = arith.constant 12 : index
    %c0_80 = arith.constant 0 : index
    %365 = vector.load %arg20[%c12_79, %c0_80] : memref<16x32xf32, #tpu.memory_space<vmem>>, vector<2x32xf32>
    tpu.vector_store %arg20[%c12_79, %c0_80], %344 {strides = array<i32>} : memref<16x32xf32, #tpu.memory_space<vmem>>, vector<2x32xf32>,
    %c2_81 = arith.constant 2 : index
    %c0_82 = arith.constant 0 : index
    %366 = vector.load %arg21[%c2_81, %c0_82] : memref<16x32xf32, #tpu.memory_space<vmem>>, vector<2x32xf32>
    tpu.vector_store %arg21[%c2_81, %c0_82], %364 {strides = array<i32>} : memref<16x32xf32, #tpu.memory_space<vmem>>, vector<2x32xf32>,
    %367 = vector.extract_strided_slice %5 {offsets = [14, 0], sizes = [2, 96], strides = [1, 1]} : vector<16x96xf32> to vector<2x96xf32>
    %368 = vector.extract_strided_slice %10 {offsets = [0, 0], sizes = [2, 96], strides = [1, 1]} : vector<16x96xf32> to vector<2x96xf32>
    %cst_83 = arith.constant dense<0.000000e+00> : vector<2x96xf32>
    %369 = tpu.matmul %344, %11, %cst_83 {dimension_numbers = #tpu.dot_dimension_numbers<[1], [0], [0], [1], [0, 0, 1, 1], [], []>} : vector<2x32xf32>, vector<32x96xf32>, vector<2x96xf32> -> vector<2x96xf32>
    %370 = vector.broadcast %13 : vector<1x96xf32> to vector<2x96xf32>
    %371 = arith.addf %369, %370 : vector<2x96xf32>
    %cst_84 = arith.constant dense<0.000000e+00> : vector<2x96xf32>
    %372 = tpu.matmul %364, %12, %cst_84 {dimension_numbers = #tpu.dot_dimension_numbers<[1], [0], [0], [1], [0, 0, 1, 1], [], []>} : vector<2x32xf32>, vector<32x96xf32>, vector<2x96xf32> -> vector<2x96xf32>
    %373 = vector.broadcast %14 : vector<1x96xf32> to vector<2x96xf32>
    %374 = arith.addf %372, %373 : vector<2x96xf32>
    %375 = vector.extract_strided_slice %367 {offsets = [0, 0], sizes = [2, 64], strides = [1, 1]} : vector<2x96xf32> to vector<2x64xf32>
    %376 = vector.extract_strided_slice %371 {offsets = [0, 0], sizes = [2, 64], strides = [1, 1]} : vector<2x96xf32> to vector<2x64xf32>
    %377 = arith.addf %375, %376 : vector<2x64xf32>
    %378 = arith.negf %377 : vector<2x64xf32>
    %379 = math.exp %378 : vector<2x64xf32>
    %cst_85 = arith.constant 1.000000e+00 : f32
    %380 = vector.broadcast %cst_85 : f32 to vector<2x64xf32>
    %381 = arith.addf %380, %379 : vector<2x64xf32>
    %382 = arith.divf %380, %381 : vector<2x64xf32>
    %383 = vector.extract_strided_slice %382 {offsets = [0, 0], sizes = [2, 32], strides = [1, 1]} : vector<2x64xf32> to vector<2x32xf32>
    %384 = vector.extract_strided_slice %382 {offsets = [0, 32], sizes = [2, 32], strides = [1, 1]} : vector<2x64xf32> to vector<2x32xf32>
    %385 = vector.extract_strided_slice %367 {offsets = [0, 64], sizes = [2, 32], strides = [1, 1]} : vector<2x96xf32> to vector<2x32xf32>
    %386 = vector.extract_strided_slice %371 {offsets = [0, 64], sizes = [2, 32], strides = [1, 1]} : vector<2x96xf32> to vector<2x32xf32>
    %387 = arith.mulf %383, %386 : vector<2x32xf32>
    %388 = arith.addf %385, %387 : vector<2x32xf32>
    %389 = math.tanh %388 : vector<2x32xf32>
    %cst_86 = arith.constant 1.000000e+00 : f32
    %390 = vector.broadcast %cst_86 : f32 to vector<2x32xf32>
    %391 = arith.subf %390, %384 : vector<2x32xf32>
    %392 = arith.mulf %391, %389 : vector<2x32xf32>
    %393 = arith.mulf %384, %344 : vector<2x32xf32>
    %394 = arith.addf %392, %393 : vector<2x32xf32>
    %395 = vector.extract_strided_slice %368 {offsets = [0, 0], sizes = [2, 64], strides = [1, 1]} : vector<2x96xf32> to vector<2x64xf32>
    %396 = vector.extract_strided_slice %374 {offsets = [0, 0], sizes = [2, 64], strides = [1, 1]} : vector<2x96xf32> to vector<2x64xf32>
    %397 = arith.addf %395, %396 : vector<2x64xf32>
    %398 = arith.negf %397 : vector<2x64xf32>
    %399 = math.exp %398 : vector<2x64xf32>
    %cst_87 = arith.constant 1.000000e+00 : f32
    %400 = vector.broadcast %cst_87 : f32 to vector<2x64xf32>
    %401 = arith.addf %400, %399 : vector<2x64xf32>
    %402 = arith.divf %400, %401 : vector<2x64xf32>
    %403 = vector.extract_strided_slice %402 {offsets = [0, 0], sizes = [2, 32], strides = [1, 1]} : vector<2x64xf32> to vector<2x32xf32>
    %404 = vector.extract_strided_slice %402 {offsets = [0, 32], sizes = [2, 32], strides = [1, 1]} : vector<2x64xf32> to vector<2x32xf32>
    %405 = vector.extract_strided_slice %368 {offsets = [0, 64], sizes = [2, 32], strides = [1, 1]} : vector<2x96xf32> to vector<2x32xf32>
    %406 = vector.extract_strided_slice %374 {offsets = [0, 64], sizes = [2, 32], strides = [1, 1]} : vector<2x96xf32> to vector<2x32xf32>
    %407 = arith.mulf %403, %406 : vector<2x32xf32>
    %408 = arith.addf %405, %407 : vector<2x32xf32>
    %409 = math.tanh %408 : vector<2x32xf32>
    %cst_88 = arith.constant 1.000000e+00 : f32
    %410 = vector.broadcast %cst_88 : f32 to vector<2x32xf32>
    %411 = arith.subf %410, %404 : vector<2x32xf32>
    %412 = arith.mulf %411, %409 : vector<2x32xf32>
    %413 = arith.mulf %404, %364 : vector<2x32xf32>
    %414 = arith.addf %412, %413 : vector<2x32xf32>
    %c14_89 = arith.constant 14 : index
    %c0_90 = arith.constant 0 : index
    %415 = vector.load %arg20[%c14_89, %c0_90] : memref<16x32xf32, #tpu.memory_space<vmem>>, vector<2x32xf32>
    tpu.vector_store %arg20[%c14_89, %c0_90], %394 {strides = array<i32>} : memref<16x32xf32, #tpu.memory_space<vmem>>, vector<2x32xf32>,
    %c0_91 = arith.constant 0 : index
    %c0_92 = arith.constant 0 : index
    %416 = vector.load %arg21[%c0_91, %c0_92] : memref<16x32xf32, #tpu.memory_space<vmem>>, vector<2x32xf32>
    tpu.vector_store %arg21[%c0_91, %c0_92], %414 {strides = array<i32>} : memref<16x32xf32, #tpu.memory_space<vmem>>, vector<2x32xf32>,
    %c0_93 = arith.constant 0 : index
    %c0_94 = arith.constant 0 : index
    %417 = vector.load %arg20[%c0_93, %c0_94] : memref<16x32xf32, #tpu.memory_space<vmem>>, vector<16x32xf32>
    %c0_95 = arith.constant 0 : index
    %c0_96 = arith.constant 0 : index
    %418 = vector.load %arg21[%c0_95, %c0_96] : memref<16x32xf32, #tpu.memory_space<vmem>>, vector<16x32xf32>
    %c0_97 = arith.constant 0 : index
    %c0_98 = arith.constant 0 : index
    %419 = vector.load %arg9[%c0_97, %c0_98] : memref<64x96xf32, #tpu.memory_space<vmem>>, vector<32x96xf32>
    %cst_99 = arith.constant dense<0.000000e+00> : vector<16x96xf32>
    %420 = tpu.matmul %417, %419, %cst_99 {dimension_numbers = #tpu.dot_dimension_numbers<[1], [0], [0], [1], [0, 0, 1, 1], [], []>} : vector<16x32xf32>, vector<32x96xf32>, vector<16x96xf32> -> vector<16x96xf32>
    %c32 = arith.constant 32 : index
    %c0_100 = arith.constant 0 : index
    %421 = vector.load %arg9[%c32, %c0_100] : memref<64x96xf32, #tpu.memory_space<vmem>>, vector<32x96xf32>
    %cst_101 = arith.constant dense<0.000000e+00> : vector<16x96xf32>
    %422 = tpu.matmul %418, %421, %cst_101 {dimension_numbers = #tpu.dot_dimension_numbers<[1], [0], [0], [1], [0, 0, 1, 1], [], []>} : vector<16x32xf32>, vector<32x96xf32>, vector<16x96xf32> -> vector<16x96xf32>
    %423 = arith.addf %420, %422 : vector<16x96xf32>
    %c0_102 = arith.constant 0 : index
    %c0_103 = arith.constant 0 : index
    %424 = vector.load %arg11[%c0_102, %c0_103] : memref<1x96xf32, #tpu.memory_space<vmem>>, vector<1x96xf32>
    %425 = vector.broadcast %424 : vector<1x96xf32> to vector<16x96xf32>
    %426 = arith.addf %423, %425 : vector<16x96xf32>
    %c0_104 = arith.constant 0 : index
    %c0_105 = arith.constant 0 : index
    %427 = vector.load %arg13[%c0_104, %c0_105] : memref<64x96xf32, #tpu.memory_space<vmem>>, vector<32x96xf32>
    %cst_106 = arith.constant dense<0.000000e+00> : vector<16x96xf32>
    %428 = tpu.matmul %417, %427, %cst_106 {dimension_numbers = #tpu.dot_dimension_numbers<[1], [0], [0], [1], [0, 0, 1, 1], [], []>} : vector<16x32xf32>, vector<32x96xf32>, vector<16x96xf32> -> vector<16x96xf32>
    %c32_107 = arith.constant 32 : index
    %c0_108 = arith.constant 0 : index
    %429 = vector.load %arg13[%c32_107, %c0_108] : memref<64x96xf32, #tpu.memory_space<vmem>>, vector<32x96xf32>
    %cst_109 = arith.constant dense<0.000000e+00> : vector<16x96xf32>
    %430 = tpu.matmul %418, %429, %cst_109 {dimension_numbers = #tpu.dot_dimension_numbers<[1], [0], [0], [1], [0, 0, 1, 1], [], []>} : vector<16x32xf32>, vector<32x96xf32>, vector<16x96xf32> -> vector<16x96xf32>
    %431 = arith.addf %428, %430 : vector<16x96xf32>
    %c0_110 = arith.constant 0 : index
    %c0_111 = arith.constant 0 : index
    %432 = vector.load %arg15[%c0_110, %c0_111] : memref<1x96xf32, #tpu.memory_space<vmem>>, vector<1x96xf32>
    %433 = vector.broadcast %432 : vector<1x96xf32> to vector<16x96xf32>
    %434 = arith.addf %431, %433 : vector<16x96xf32>
    %c0_112 = arith.constant 0 : index
    %c0_113 = arith.constant 0 : index
    %435 = vector.load %arg10[%c0_112, %c0_113] : memref<32x96xf32, #tpu.memory_space<vmem>>, vector<32x96xf32>
    %c0_114 = arith.constant 0 : index
    %c0_115 = arith.constant 0 : index
    %436 = vector.load %arg14[%c0_114, %c0_115] : memref<32x96xf32, #tpu.memory_space<vmem>>, vector<32x96xf32>
    %c0_116 = arith.constant 0 : index
    %c0_117 = arith.constant 0 : index
    %437 = vector.load %arg12[%c0_116, %c0_117] : memref<1x96xf32, #tpu.memory_space<vmem>>, vector<1x96xf32>
    %c0_118 = arith.constant 0 : index
    %c0_119 = arith.constant 0 : index
    %438 = vector.load %arg16[%c0_118, %c0_119] : memref<1x96xf32, #tpu.memory_space<vmem>>, vector<1x96xf32>
    %cst_120 = arith.constant 0.000000e+00 : f32
    %439 = vector.broadcast %cst_120 : f32 to vector<2x32xf32>
    %cst_121 = arith.constant 0.000000e+00 : f32
    %440 = vector.broadcast %cst_121 : f32 to vector<2x32xf32>
    %441 = vector.extract_strided_slice %426 {offsets = [0, 0], sizes = [2, 96], strides = [1, 1]} : vector<16x96xf32> to vector<2x96xf32>
    %442 = vector.extract_strided_slice %434 {offsets = [14, 0], sizes = [2, 96], strides = [1, 1]} : vector<16x96xf32> to vector<2x96xf32>
    %cst_122 = arith.constant dense<0.000000e+00> : vector<2x96xf32>
    %443 = tpu.matmul %439, %435, %cst_122 {dimension_numbers = #tpu.dot_dimension_numbers<[1], [0], [0], [1], [0, 0, 1, 1], [], []>} : vector<2x32xf32>, vector<32x96xf32>, vector<2x96xf32> -> vector<2x96xf32>
    %444 = vector.broadcast %437 : vector<1x96xf32> to vector<2x96xf32>
    %445 = arith.addf %443, %444 : vector<2x96xf32>
    %cst_123 = arith.constant dense<0.000000e+00> : vector<2x96xf32>
    %446 = tpu.matmul %440, %436, %cst_123 {dimension_numbers = #tpu.dot_dimension_numbers<[1], [0], [0], [1], [0, 0, 1, 1], [], []>} : vector<2x32xf32>, vector<32x96xf32>, vector<2x96xf32> -> vector<2x96xf32>
    %447 = vector.broadcast %438 : vector<1x96xf32> to vector<2x96xf32>
    %448 = arith.addf %446, %447 : vector<2x96xf32>
    %449 = vector.extract_strided_slice %441 {offsets = [0, 0], sizes = [2, 64], strides = [1, 1]} : vector<2x96xf32> to vector<2x64xf32>
    %450 = vector.extract_strided_slice %445 {offsets = [0, 0], sizes = [2, 64], strides = [1, 1]} : vector<2x96xf32> to vector<2x64xf32>
    %451 = arith.addf %449, %450 : vector<2x64xf32>
    %452 = arith.negf %451 : vector<2x64xf32>
    %453 = math.exp %452 : vector<2x64xf32>
    %cst_124 = arith.constant 1.000000e+00 : f32
    %454 = vector.broadcast %cst_124 : f32 to vector<2x64xf32>
    %455 = arith.addf %454, %453 : vector<2x64xf32>
    %456 = arith.divf %454, %455 : vector<2x64xf32>
    %457 = vector.extract_strided_slice %456 {offsets = [0, 0], sizes = [2, 32], strides = [1, 1]} : vector<2x64xf32> to vector<2x32xf32>
    %458 = vector.extract_strided_slice %456 {offsets = [0, 32], sizes = [2, 32], strides = [1, 1]} : vector<2x64xf32> to vector<2x32xf32>
    %459 = vector.extract_strided_slice %441 {offsets = [0, 64], sizes = [2, 32], strides = [1, 1]} : vector<2x96xf32> to vector<2x32xf32>
    %460 = vector.extract_strided_slice %445 {offsets = [0, 64], sizes = [2, 32], strides = [1, 1]} : vector<2x96xf32> to vector<2x32xf32>
    %461 = arith.mulf %457, %460 : vector<2x32xf32>
    %462 = arith.addf %459, %461 : vector<2x32xf32>
    %463 = math.tanh %462 : vector<2x32xf32>
    %cst_125 = arith.constant 1.000000e+00 : f32
    %464 = vector.broadcast %cst_125 : f32 to vector<2x32xf32>
    %465 = arith.subf %464, %458 : vector<2x32xf32>
    %466 = arith.mulf %465, %463 : vector<2x32xf32>
    %467 = arith.mulf %458, %439 : vector<2x32xf32>
    %468 = arith.addf %466, %467 : vector<2x32xf32>
    %469 = vector.extract_strided_slice %442 {offsets = [0, 0], sizes = [2, 64], strides = [1, 1]} : vector<2x96xf32> to vector<2x64xf32>
    %470 = vector.extract_strided_slice %448 {offsets = [0, 0], sizes = [2, 64], strides = [1, 1]} : vector<2x96xf32> to vector<2x64xf32>
    %471 = arith.addf %469, %470 : vector<2x64xf32>
    %472 = arith.negf %471 : vector<2x64xf32>
    %473 = math.exp %472 : vector<2x64xf32>
    %cst_126 = arith.constant 1.000000e+00 : f32
    %474 = vector.broadcast %cst_126 : f32 to vector<2x64xf32>
    %475 = arith.addf %474, %473 : vector<2x64xf32>
    %476 = arith.divf %474, %475 : vector<2x64xf32>
    %477 = vector.extract_strided_slice %476 {offsets = [0, 0], sizes = [2, 32], strides = [1, 1]} : vector<2x64xf32> to vector<2x32xf32>
    %478 = vector.extract_strided_slice %476 {offsets = [0, 32], sizes = [2, 32], strides = [1, 1]} : vector<2x64xf32> to vector<2x32xf32>
    %479 = vector.extract_strided_slice %442 {offsets = [0, 64], sizes = [2, 32], strides = [1, 1]} : vector<2x96xf32> to vector<2x32xf32>
    %480 = vector.extract_strided_slice %448 {offsets = [0, 64], sizes = [2, 32], strides = [1, 1]} : vector<2x96xf32> to vector<2x32xf32>
    %481 = arith.mulf %477, %480 : vector<2x32xf32>
    %482 = arith.addf %479, %481 : vector<2x32xf32>
    %483 = math.tanh %482 : vector<2x32xf32>
    %cst_127 = arith.constant 1.000000e+00 : f32
    %484 = vector.broadcast %cst_127 : f32 to vector<2x32xf32>
    %485 = arith.subf %484, %478 : vector<2x32xf32>
    %486 = arith.mulf %485, %483 : vector<2x32xf32>
    %487 = arith.mulf %478, %440 : vector<2x32xf32>
    %488 = arith.addf %486, %487 : vector<2x32xf32>
    %489 = vector.extract_strided_slice %426 {offsets = [2, 0], sizes = [2, 96], strides = [1, 1]} : vector<16x96xf32> to vector<2x96xf32>
    %490 = vector.extract_strided_slice %434 {offsets = [12, 0], sizes = [2, 96], strides = [1, 1]} : vector<16x96xf32> to vector<2x96xf32>
    %cst_128 = arith.constant dense<0.000000e+00> : vector<2x96xf32>
    %491 = tpu.matmul %468, %435, %cst_128 {dimension_numbers = #tpu.dot_dimension_numbers<[1], [0], [0], [1], [0, 0, 1, 1], [], []>} : vector<2x32xf32>, vector<32x96xf32>, vector<2x96xf32> -> vector<2x96xf32>
    %492 = vector.broadcast %437 : vector<1x96xf32> to vector<2x96xf32>
    %493 = arith.addf %491, %492 : vector<2x96xf32>
    %cst_129 = arith.constant dense<0.000000e+00> : vector<2x96xf32>
    %494 = tpu.matmul %488, %436, %cst_129 {dimension_numbers = #tpu.dot_dimension_numbers<[1], [0], [0], [1], [0, 0, 1, 1], [], []>} : vector<2x32xf32>, vector<32x96xf32>, vector<2x96xf32> -> vector<2x96xf32>
    %495 = vector.broadcast %438 : vector<1x96xf32> to vector<2x96xf32>
    %496 = arith.addf %494, %495 : vector<2x96xf32>
    %497 = vector.extract_strided_slice %489 {offsets = [0, 0], sizes = [2, 64], strides = [1, 1]} : vector<2x96xf32> to vector<2x64xf32>
    %498 = vector.extract_strided_slice %493 {offsets = [0, 0], sizes = [2, 64], strides = [1, 1]} : vector<2x96xf32> to vector<2x64xf32>
    %499 = arith.addf %497, %498 : vector<2x64xf32>
    %500 = arith.negf %499 : vector<2x64xf32>
    %501 = math.exp %500 : vector<2x64xf32>
    %cst_130 = arith.constant 1.000000e+00 : f32
    %502 = vector.broadcast %cst_130 : f32 to vector<2x64xf32>
    %503 = arith.addf %502, %501 : vector<2x64xf32>
    %504 = arith.divf %502, %503 : vector<2x64xf32>
    %505 = vector.extract_strided_slice %504 {offsets = [0, 0], sizes = [2, 32], strides = [1, 1]} : vector<2x64xf32> to vector<2x32xf32>
    %506 = vector.extract_strided_slice %504 {offsets = [0, 32], sizes = [2, 32], strides = [1, 1]} : vector<2x64xf32> to vector<2x32xf32>
    %507 = vector.extract_strided_slice %489 {offsets = [0, 64], sizes = [2, 32], strides = [1, 1]} : vector<2x96xf32> to vector<2x32xf32>
    %508 = vector.extract_strided_slice %493 {offsets = [0, 64], sizes = [2, 32], strides = [1, 1]} : vector<2x96xf32> to vector<2x32xf32>
    %509 = arith.mulf %505, %508 : vector<2x32xf32>
    %510 = arith.addf %507, %509 : vector<2x32xf32>
    %511 = math.tanh %510 : vector<2x32xf32>
    %cst_131 = arith.constant 1.000000e+00 : f32
    %512 = vector.broadcast %cst_131 : f32 to vector<2x32xf32>
    %513 = arith.subf %512, %506 : vector<2x32xf32>
    %514 = arith.mulf %513, %511 : vector<2x32xf32>
    %515 = arith.mulf %506, %468 : vector<2x32xf32>
    %516 = arith.addf %514, %515 : vector<2x32xf32>
    %517 = vector.extract_strided_slice %490 {offsets = [0, 0], sizes = [2, 64], strides = [1, 1]} : vector<2x96xf32> to vector<2x64xf32>
    %518 = vector.extract_strided_slice %496 {offsets = [0, 0], sizes = [2, 64], strides = [1, 1]} : vector<2x96xf32> to vector<2x64xf32>
    %519 = arith.addf %517, %518 : vector<2x64xf32>
    %520 = arith.negf %519 : vector<2x64xf32>
    %521 = math.exp %520 : vector<2x64xf32>
    %cst_132 = arith.constant 1.000000e+00 : f32
    %522 = vector.broadcast %cst_132 : f32 to vector<2x64xf32>
    %523 = arith.addf %522, %521 : vector<2x64xf32>
    %524 = arith.divf %522, %523 : vector<2x64xf32>
    %525 = vector.extract_strided_slice %524 {offsets = [0, 0], sizes = [2, 32], strides = [1, 1]} : vector<2x64xf32> to vector<2x32xf32>
    %526 = vector.extract_strided_slice %524 {offsets = [0, 32], sizes = [2, 32], strides = [1, 1]} : vector<2x64xf32> to vector<2x32xf32>
    %527 = vector.extract_strided_slice %490 {offsets = [0, 64], sizes = [2, 32], strides = [1, 1]} : vector<2x96xf32> to vector<2x32xf32>
    %528 = vector.extract_strided_slice %496 {offsets = [0, 64], sizes = [2, 32], strides = [1, 1]} : vector<2x96xf32> to vector<2x32xf32>
    %529 = arith.mulf %525, %528 : vector<2x32xf32>
    %530 = arith.addf %527, %529 : vector<2x32xf32>
    %531 = math.tanh %530 : vector<2x32xf32>
    %cst_133 = arith.constant 1.000000e+00 : f32
    %532 = vector.broadcast %cst_133 : f32 to vector<2x32xf32>
    %533 = arith.subf %532, %526 : vector<2x32xf32>
    %534 = arith.mulf %533, %531 : vector<2x32xf32>
    %535 = arith.mulf %526, %488 : vector<2x32xf32>
    %536 = arith.addf %534, %535 : vector<2x32xf32>
    %537 = vector.extract_strided_slice %426 {offsets = [4, 0], sizes = [2, 96], strides = [1, 1]} : vector<16x96xf32> to vector<2x96xf32>
    %538 = vector.extract_strided_slice %434 {offsets = [10, 0], sizes = [2, 96], strides = [1, 1]} : vector<16x96xf32> to vector<2x96xf32>
    %cst_134 = arith.constant dense<0.000000e+00> : vector<2x96xf32>
    %539 = tpu.matmul %516, %435, %cst_134 {dimension_numbers = #tpu.dot_dimension_numbers<[1], [0], [0], [1], [0, 0, 1, 1], [], []>} : vector<2x32xf32>, vector<32x96xf32>, vector<2x96xf32> -> vector<2x96xf32>
    %540 = vector.broadcast %437 : vector<1x96xf32> to vector<2x96xf32>
    %541 = arith.addf %539, %540 : vector<2x96xf32>
    %cst_135 = arith.constant dense<0.000000e+00> : vector<2x96xf32>
    %542 = tpu.matmul %536, %436, %cst_135 {dimension_numbers = #tpu.dot_dimension_numbers<[1], [0], [0], [1], [0, 0, 1, 1], [], []>} : vector<2x32xf32>, vector<32x96xf32>, vector<2x96xf32> -> vector<2x96xf32>
    %543 = vector.broadcast %438 : vector<1x96xf32> to vector<2x96xf32>
    %544 = arith.addf %542, %543 : vector<2x96xf32>
    %545 = vector.extract_strided_slice %537 {offsets = [0, 0], sizes = [2, 64], strides = [1, 1]} : vector<2x96xf32> to vector<2x64xf32>
    %546 = vector.extract_strided_slice %541 {offsets = [0, 0], sizes = [2, 64], strides = [1, 1]} : vector<2x96xf32> to vector<2x64xf32>
    %547 = arith.addf %545, %546 : vector<2x64xf32>
    %548 = arith.negf %547 : vector<2x64xf32>
    %549 = math.exp %548 : vector<2x64xf32>
    %cst_136 = arith.constant 1.000000e+00 : f32
    %550 = vector.broadcast %cst_136 : f32 to vector<2x64xf32>
    %551 = arith.addf %550, %549 : vector<2x64xf32>
    %552 = arith.divf %550, %551 : vector<2x64xf32>
    %553 = vector.extract_strided_slice %552 {offsets = [0, 0], sizes = [2, 32], strides = [1, 1]} : vector<2x64xf32> to vector<2x32xf32>
    %554 = vector.extract_strided_slice %552 {offsets = [0, 32], sizes = [2, 32], strides = [1, 1]} : vector<2x64xf32> to vector<2x32xf32>
    %555 = vector.extract_strided_slice %537 {offsets = [0, 64], sizes = [2, 32], strides = [1, 1]} : vector<2x96xf32> to vector<2x32xf32>
    %556 = vector.extract_strided_slice %541 {offsets = [0, 64], sizes = [2, 32], strides = [1, 1]} : vector<2x96xf32> to vector<2x32xf32>
    %557 = arith.mulf %553, %556 : vector<2x32xf32>
    %558 = arith.addf %555, %557 : vector<2x32xf32>
    %559 = math.tanh %558 : vector<2x32xf32>
    %cst_137 = arith.constant 1.000000e+00 : f32
    %560 = vector.broadcast %cst_137 : f32 to vector<2x32xf32>
    %561 = arith.subf %560, %554 : vector<2x32xf32>
    %562 = arith.mulf %561, %559 : vector<2x32xf32>
    %563 = arith.mulf %554, %516 : vector<2x32xf32>
    %564 = arith.addf %562, %563 : vector<2x32xf32>
    %565 = vector.extract_strided_slice %538 {offsets = [0, 0], sizes = [2, 64], strides = [1, 1]} : vector<2x96xf32> to vector<2x64xf32>
    %566 = vector.extract_strided_slice %544 {offsets = [0, 0], sizes = [2, 64], strides = [1, 1]} : vector<2x96xf32> to vector<2x64xf32>
    %567 = arith.addf %565, %566 : vector<2x64xf32>
    %568 = arith.negf %567 : vector<2x64xf32>
    %569 = math.exp %568 : vector<2x64xf32>
    %cst_138 = arith.constant 1.000000e+00 : f32
    %570 = vector.broadcast %cst_138 : f32 to vector<2x64xf32>
    %571 = arith.addf %570, %569 : vector<2x64xf32>
    %572 = arith.divf %570, %571 : vector<2x64xf32>
    %573 = vector.extract_strided_slice %572 {offsets = [0, 0], sizes = [2, 32], strides = [1, 1]} : vector<2x64xf32> to vector<2x32xf32>
    %574 = vector.extract_strided_slice %572 {offsets = [0, 32], sizes = [2, 32], strides = [1, 1]} : vector<2x64xf32> to vector<2x32xf32>
    %575 = vector.extract_strided_slice %538 {offsets = [0, 64], sizes = [2, 32], strides = [1, 1]} : vector<2x96xf32> to vector<2x32xf32>
    %576 = vector.extract_strided_slice %544 {offsets = [0, 64], sizes = [2, 32], strides = [1, 1]} : vector<2x96xf32> to vector<2x32xf32>
    %577 = arith.mulf %573, %576 : vector<2x32xf32>
    %578 = arith.addf %575, %577 : vector<2x32xf32>
    %579 = math.tanh %578 : vector<2x32xf32>
    %cst_139 = arith.constant 1.000000e+00 : f32
    %580 = vector.broadcast %cst_139 : f32 to vector<2x32xf32>
    %581 = arith.subf %580, %574 : vector<2x32xf32>
    %582 = arith.mulf %581, %579 : vector<2x32xf32>
    %583 = arith.mulf %574, %536 : vector<2x32xf32>
    %584 = arith.addf %582, %583 : vector<2x32xf32>
    %585 = vector.extract_strided_slice %426 {offsets = [6, 0], sizes = [2, 96], strides = [1, 1]} : vector<16x96xf32> to vector<2x96xf32>
    %586 = vector.extract_strided_slice %434 {offsets = [8, 0], sizes = [2, 96], strides = [1, 1]} : vector<16x96xf32> to vector<2x96xf32>
    %cst_140 = arith.constant dense<0.000000e+00> : vector<2x96xf32>
    %587 = tpu.matmul %564, %435, %cst_140 {dimension_numbers = #tpu.dot_dimension_numbers<[1], [0], [0], [1], [0, 0, 1, 1], [], []>} : vector<2x32xf32>, vector<32x96xf32>, vector<2x96xf32> -> vector<2x96xf32>
    %588 = vector.broadcast %437 : vector<1x96xf32> to vector<2x96xf32>
    %589 = arith.addf %587, %588 : vector<2x96xf32>
    %cst_141 = arith.constant dense<0.000000e+00> : vector<2x96xf32>
    %590 = tpu.matmul %584, %436, %cst_141 {dimension_numbers = #tpu.dot_dimension_numbers<[1], [0], [0], [1], [0, 0, 1, 1], [], []>} : vector<2x32xf32>, vector<32x96xf32>, vector<2x96xf32> -> vector<2x96xf32>
    %591 = vector.broadcast %438 : vector<1x96xf32> to vector<2x96xf32>
    %592 = arith.addf %590, %591 : vector<2x96xf32>
    %593 = vector.extract_strided_slice %585 {offsets = [0, 0], sizes = [2, 64], strides = [1, 1]} : vector<2x96xf32> to vector<2x64xf32>
    %594 = vector.extract_strided_slice %589 {offsets = [0, 0], sizes = [2, 64], strides = [1, 1]} : vector<2x96xf32> to vector<2x64xf32>
    %595 = arith.addf %593, %594 : vector<2x64xf32>
    %596 = arith.negf %595 : vector<2x64xf32>
    %597 = math.exp %596 : vector<2x64xf32>
    %cst_142 = arith.constant 1.000000e+00 : f32
    %598 = vector.broadcast %cst_142 : f32 to vector<2x64xf32>
    %599 = arith.addf %598, %597 : vector<2x64xf32>
    %600 = arith.divf %598, %599 : vector<2x64xf32>
    %601 = vector.extract_strided_slice %600 {offsets = [0, 0], sizes = [2, 32], strides = [1, 1]} : vector<2x64xf32> to vector<2x32xf32>
    %602 = vector.extract_strided_slice %600 {offsets = [0, 32], sizes = [2, 32], strides = [1, 1]} : vector<2x64xf32> to vector<2x32xf32>
    %603 = vector.extract_strided_slice %585 {offsets = [0, 64], sizes = [2, 32], strides = [1, 1]} : vector<2x96xf32> to vector<2x32xf32>
    %604 = vector.extract_strided_slice %589 {offsets = [0, 64], sizes = [2, 32], strides = [1, 1]} : vector<2x96xf32> to vector<2x32xf32>
    %605 = arith.mulf %601, %604 : vector<2x32xf32>
    %606 = arith.addf %603, %605 : vector<2x32xf32>
    %607 = math.tanh %606 : vector<2x32xf32>
    %cst_143 = arith.constant 1.000000e+00 : f32
    %608 = vector.broadcast %cst_143 : f32 to vector<2x32xf32>
    %609 = arith.subf %608, %602 : vector<2x32xf32>
    %610 = arith.mulf %609, %607 : vector<2x32xf32>
    %611 = arith.mulf %602, %564 : vector<2x32xf32>
    %612 = arith.addf %610, %611 : vector<2x32xf32>
    %613 = vector.extract_strided_slice %586 {offsets = [0, 0], sizes = [2, 64], strides = [1, 1]} : vector<2x96xf32> to vector<2x64xf32>
    %614 = vector.extract_strided_slice %592 {offsets = [0, 0], sizes = [2, 64], strides = [1, 1]} : vector<2x96xf32> to vector<2x64xf32>
    %615 = arith.addf %613, %614 : vector<2x64xf32>
    %616 = arith.negf %615 : vector<2x64xf32>
    %617 = math.exp %616 : vector<2x64xf32>
    %cst_144 = arith.constant 1.000000e+00 : f32
    %618 = vector.broadcast %cst_144 : f32 to vector<2x64xf32>
    %619 = arith.addf %618, %617 : vector<2x64xf32>
    %620 = arith.divf %618, %619 : vector<2x64xf32>
    %621 = vector.extract_strided_slice %620 {offsets = [0, 0], sizes = [2, 32], strides = [1, 1]} : vector<2x64xf32> to vector<2x32xf32>
    %622 = vector.extract_strided_slice %620 {offsets = [0, 32], sizes = [2, 32], strides = [1, 1]} : vector<2x64xf32> to vector<2x32xf32>
    %623 = vector.extract_strided_slice %586 {offsets = [0, 64], sizes = [2, 32], strides = [1, 1]} : vector<2x96xf32> to vector<2x32xf32>
    %624 = vector.extract_strided_slice %592 {offsets = [0, 64], sizes = [2, 32], strides = [1, 1]} : vector<2x96xf32> to vector<2x32xf32>
    %625 = arith.mulf %621, %624 : vector<2x32xf32>
    %626 = arith.addf %623, %625 : vector<2x32xf32>
    %627 = math.tanh %626 : vector<2x32xf32>
    %cst_145 = arith.constant 1.000000e+00 : f32
    %628 = vector.broadcast %cst_145 : f32 to vector<2x32xf32>
    %629 = arith.subf %628, %622 : vector<2x32xf32>
    %630 = arith.mulf %629, %627 : vector<2x32xf32>
    %631 = arith.mulf %622, %584 : vector<2x32xf32>
    %632 = arith.addf %630, %631 : vector<2x32xf32>
    %633 = vector.extract_strided_slice %426 {offsets = [8, 0], sizes = [2, 96], strides = [1, 1]} : vector<16x96xf32> to vector<2x96xf32>
    %634 = vector.extract_strided_slice %434 {offsets = [6, 0], sizes = [2, 96], strides = [1, 1]} : vector<16x96xf32> to vector<2x96xf32>
    %cst_146 = arith.constant dense<0.000000e+00> : vector<2x96xf32>
    %635 = tpu.matmul %612, %435, %cst_146 {dimension_numbers = #tpu.dot_dimension_numbers<[1], [0], [0], [1], [0, 0, 1, 1], [], []>} : vector<2x32xf32>, vector<32x96xf32>, vector<2x96xf32> -> vector<2x96xf32>
    %636 = vector.broadcast %437 : vector<1x96xf32> to vector<2x96xf32>
    %637 = arith.addf %635, %636 : vector<2x96xf32>
    %cst_147 = arith.constant dense<0.000000e+00> : vector<2x96xf32>
    %638 = tpu.matmul %632, %436, %cst_147 {dimension_numbers = #tpu.dot_dimension_numbers<[1], [0], [0], [1], [0, 0, 1, 1], [], []>} : vector<2x32xf32>, vector<32x96xf32>, vector<2x96xf32> -> vector<2x96xf32>
    %639 = vector.broadcast %438 : vector<1x96xf32> to vector<2x96xf32>
    %640 = arith.addf %638, %639 : vector<2x96xf32>
    %641 = vector.extract_strided_slice %633 {offsets = [0, 0], sizes = [2, 64], strides = [1, 1]} : vector<2x96xf32> to vector<2x64xf32>
    %642 = vector.extract_strided_slice %637 {offsets = [0, 0], sizes = [2, 64], strides = [1, 1]} : vector<2x96xf32> to vector<2x64xf32>
    %643 = arith.addf %641, %642 : vector<2x64xf32>
    %644 = arith.negf %643 : vector<2x64xf32>
    %645 = math.exp %644 : vector<2x64xf32>
    %cst_148 = arith.constant 1.000000e+00 : f32
    %646 = vector.broadcast %cst_148 : f32 to vector<2x64xf32>
    %647 = arith.addf %646, %645 : vector<2x64xf32>
    %648 = arith.divf %646, %647 : vector<2x64xf32>
    %649 = vector.extract_strided_slice %648 {offsets = [0, 0], sizes = [2, 32], strides = [1, 1]} : vector<2x64xf32> to vector<2x32xf32>
    %650 = vector.extract_strided_slice %648 {offsets = [0, 32], sizes = [2, 32], strides = [1, 1]} : vector<2x64xf32> to vector<2x32xf32>
    %651 = vector.extract_strided_slice %633 {offsets = [0, 64], sizes = [2, 32], strides = [1, 1]} : vector<2x96xf32> to vector<2x32xf32>
    %652 = vector.extract_strided_slice %637 {offsets = [0, 64], sizes = [2, 32], strides = [1, 1]} : vector<2x96xf32> to vector<2x32xf32>
    %653 = arith.mulf %649, %652 : vector<2x32xf32>
    %654 = arith.addf %651, %653 : vector<2x32xf32>
    %655 = math.tanh %654 : vector<2x32xf32>
    %cst_149 = arith.constant 1.000000e+00 : f32
    %656 = vector.broadcast %cst_149 : f32 to vector<2x32xf32>
    %657 = arith.subf %656, %650 : vector<2x32xf32>
    %658 = arith.mulf %657, %655 : vector<2x32xf32>
    %659 = arith.mulf %650, %612 : vector<2x32xf32>
    %660 = arith.addf %658, %659 : vector<2x32xf32>
    %661 = vector.extract_strided_slice %634 {offsets = [0, 0], sizes = [2, 64], strides = [1, 1]} : vector<2x96xf32> to vector<2x64xf32>
    %662 = vector.extract_strided_slice %640 {offsets = [0, 0], sizes = [2, 64], strides = [1, 1]} : vector<2x96xf32> to vector<2x64xf32>
    %663 = arith.addf %661, %662 : vector<2x64xf32>
    %664 = arith.negf %663 : vector<2x64xf32>
    %665 = math.exp %664 : vector<2x64xf32>
    %cst_150 = arith.constant 1.000000e+00 : f32
    %666 = vector.broadcast %cst_150 : f32 to vector<2x64xf32>
    %667 = arith.addf %666, %665 : vector<2x64xf32>
    %668 = arith.divf %666, %667 : vector<2x64xf32>
    %669 = vector.extract_strided_slice %668 {offsets = [0, 0], sizes = [2, 32], strides = [1, 1]} : vector<2x64xf32> to vector<2x32xf32>
    %670 = vector.extract_strided_slice %668 {offsets = [0, 32], sizes = [2, 32], strides = [1, 1]} : vector<2x64xf32> to vector<2x32xf32>
    %671 = vector.extract_strided_slice %634 {offsets = [0, 64], sizes = [2, 32], strides = [1, 1]} : vector<2x96xf32> to vector<2x32xf32>
    %672 = vector.extract_strided_slice %640 {offsets = [0, 64], sizes = [2, 32], strides = [1, 1]} : vector<2x96xf32> to vector<2x32xf32>
    %673 = arith.mulf %669, %672 : vector<2x32xf32>
    %674 = arith.addf %671, %673 : vector<2x32xf32>
    %675 = math.tanh %674 : vector<2x32xf32>
    %cst_151 = arith.constant 1.000000e+00 : f32
    %676 = vector.broadcast %cst_151 : f32 to vector<2x32xf32>
    %677 = arith.subf %676, %670 : vector<2x32xf32>
    %678 = arith.mulf %677, %675 : vector<2x32xf32>
    %679 = arith.mulf %670, %632 : vector<2x32xf32>
    %680 = arith.addf %678, %679 : vector<2x32xf32>
    %681 = vector.extract_strided_slice %426 {offsets = [10, 0], sizes = [2, 96], strides = [1, 1]} : vector<16x96xf32> to vector<2x96xf32>
    %682 = vector.extract_strided_slice %434 {offsets = [4, 0], sizes = [2, 96], strides = [1, 1]} : vector<16x96xf32> to vector<2x96xf32>
    %cst_152 = arith.constant dense<0.000000e+00> : vector<2x96xf32>
    %683 = tpu.matmul %660, %435, %cst_152 {dimension_numbers = #tpu.dot_dimension_numbers<[1], [0], [0], [1], [0, 0, 1, 1], [], []>} : vector<2x32xf32>, vector<32x96xf32>, vector<2x96xf32> -> vector<2x96xf32>
    %684 = vector.broadcast %437 : vector<1x96xf32> to vector<2x96xf32>
    %685 = arith.addf %683, %684 : vector<2x96xf32>
    %cst_153 = arith.constant dense<0.000000e+00> : vector<2x96xf32>
    %686 = tpu.matmul %680, %436, %cst_153 {dimension_numbers = #tpu.dot_dimension_numbers<[1], [0], [0], [1], [0, 0, 1, 1], [], []>} : vector<2x32xf32>, vector<32x96xf32>, vector<2x96xf32> -> vector<2x96xf32>
    %687 = vector.broadcast %438 : vector<1x96xf32> to vector<2x96xf32>
    %688 = arith.addf %686, %687 : vector<2x96xf32>
    %689 = vector.extract_strided_slice %681 {offsets = [0, 0], sizes = [2, 64], strides = [1, 1]} : vector<2x96xf32> to vector<2x64xf32>
    %690 = vector.extract_strided_slice %685 {offsets = [0, 0], sizes = [2, 64], strides = [1, 1]} : vector<2x96xf32> to vector<2x64xf32>
    %691 = arith.addf %689, %690 : vector<2x64xf32>
    %692 = arith.negf %691 : vector<2x64xf32>
    %693 = math.exp %692 : vector<2x64xf32>
    %cst_154 = arith.constant 1.000000e+00 : f32
    %694 = vector.broadcast %cst_154 : f32 to vector<2x64xf32>
    %695 = arith.addf %694, %693 : vector<2x64xf32>
    %696 = arith.divf %694, %695 : vector<2x64xf32>
    %697 = vector.extract_strided_slice %696 {offsets = [0, 0], sizes = [2, 32], strides = [1, 1]} : vector<2x64xf32> to vector<2x32xf32>
    %698 = vector.extract_strided_slice %696 {offsets = [0, 32], sizes = [2, 32], strides = [1, 1]} : vector<2x64xf32> to vector<2x32xf32>
    %699 = vector.extract_strided_slice %681 {offsets = [0, 64], sizes = [2, 32], strides = [1, 1]} : vector<2x96xf32> to vector<2x32xf32>
    %700 = vector.extract_strided_slice %685 {offsets = [0, 64], sizes = [2, 32], strides = [1, 1]} : vector<2x96xf32> to vector<2x32xf32>
    %701 = arith.mulf %697, %700 : vector<2x32xf32>
    %702 = arith.addf %699, %701 : vector<2x32xf32>
    %703 = math.tanh %702 : vector<2x32xf32>
    %cst_155 = arith.constant 1.000000e+00 : f32
    %704 = vector.broadcast %cst_155 : f32 to vector<2x32xf32>
    %705 = arith.subf %704, %698 : vector<2x32xf32>
    %706 = arith.mulf %705, %703 : vector<2x32xf32>
    %707 = arith.mulf %698, %660 : vector<2x32xf32>
    %708 = arith.addf %706, %707 : vector<2x32xf32>
    %709 = vector.extract_strided_slice %682 {offsets = [0, 0], sizes = [2, 64], strides = [1, 1]} : vector<2x96xf32> to vector<2x64xf32>
    %710 = vector.extract_strided_slice %688 {offsets = [0, 0], sizes = [2, 64], strides = [1, 1]} : vector<2x96xf32> to vector<2x64xf32>
    %711 = arith.addf %709, %710 : vector<2x64xf32>
    %712 = arith.negf %711 : vector<2x64xf32>
    %713 = math.exp %712 : vector<2x64xf32>
    %cst_156 = arith.constant 1.000000e+00 : f32
    %714 = vector.broadcast %cst_156 : f32 to vector<2x64xf32>
    %715 = arith.addf %714, %713 : vector<2x64xf32>
    %716 = arith.divf %714, %715 : vector<2x64xf32>
    %717 = vector.extract_strided_slice %716 {offsets = [0, 0], sizes = [2, 32], strides = [1, 1]} : vector<2x64xf32> to vector<2x32xf32>
    %718 = vector.extract_strided_slice %716 {offsets = [0, 32], sizes = [2, 32], strides = [1, 1]} : vector<2x64xf32> to vector<2x32xf32>
    %719 = vector.extract_strided_slice %682 {offsets = [0, 64], sizes = [2, 32], strides = [1, 1]} : vector<2x96xf32> to vector<2x32xf32>
    %720 = vector.extract_strided_slice %688 {offsets = [0, 64], sizes = [2, 32], strides = [1, 1]} : vector<2x96xf32> to vector<2x32xf32>
    %721 = arith.mulf %717, %720 : vector<2x32xf32>
    %722 = arith.addf %719, %721 : vector<2x32xf32>
    %723 = math.tanh %722 : vector<2x32xf32>
    %cst_157 = arith.constant 1.000000e+00 : f32
    %724 = vector.broadcast %cst_157 : f32 to vector<2x32xf32>
    %725 = arith.subf %724, %718 : vector<2x32xf32>
    %726 = arith.mulf %725, %723 : vector<2x32xf32>
    %727 = arith.mulf %718, %680 : vector<2x32xf32>
    %728 = arith.addf %726, %727 : vector<2x32xf32>
    %729 = vector.extract_strided_slice %426 {offsets = [12, 0], sizes = [2, 96], strides = [1, 1]} : vector<16x96xf32> to vector<2x96xf32>
    %730 = vector.extract_strided_slice %434 {offsets = [2, 0], sizes = [2, 96], strides = [1, 1]} : vector<16x96xf32> to vector<2x96xf32>
    %cst_158 = arith.constant dense<0.000000e+00> : vector<2x96xf32>
    %731 = tpu.matmul %708, %435, %cst_158 {dimension_numbers = #tpu.dot_dimension_numbers<[1], [0], [0], [1], [0, 0, 1, 1], [], []>} : vector<2x32xf32>, vector<32x96xf32>, vector<2x96xf32> -> vector<2x96xf32>
    %732 = vector.broadcast %437 : vector<1x96xf32> to vector<2x96xf32>
    %733 = arith.addf %731, %732 : vector<2x96xf32>
    %cst_159 = arith.constant dense<0.000000e+00> : vector<2x96xf32>
    %734 = tpu.matmul %728, %436, %cst_159 {dimension_numbers = #tpu.dot_dimension_numbers<[1], [0], [0], [1], [0, 0, 1, 1], [], []>} : vector<2x32xf32>, vector<32x96xf32>, vector<2x96xf32> -> vector<2x96xf32>
    %735 = vector.broadcast %438 : vector<1x96xf32> to vector<2x96xf32>
    %736 = arith.addf %734, %735 : vector<2x96xf32>
    %737 = vector.extract_strided_slice %729 {offsets = [0, 0], sizes = [2, 64], strides = [1, 1]} : vector<2x96xf32> to vector<2x64xf32>
    %738 = vector.extract_strided_slice %733 {offsets = [0, 0], sizes = [2, 64], strides = [1, 1]} : vector<2x96xf32> to vector<2x64xf32>
    %739 = arith.addf %737, %738 : vector<2x64xf32>
    %740 = arith.negf %739 : vector<2x64xf32>
    %741 = math.exp %740 : vector<2x64xf32>
    %cst_160 = arith.constant 1.000000e+00 : f32
    %742 = vector.broadcast %cst_160 : f32 to vector<2x64xf32>
    %743 = arith.addf %742, %741 : vector<2x64xf32>
    %744 = arith.divf %742, %743 : vector<2x64xf32>
    %745 = vector.extract_strided_slice %744 {offsets = [0, 0], sizes = [2, 32], strides = [1, 1]} : vector<2x64xf32> to vector<2x32xf32>
    %746 = vector.extract_strided_slice %744 {offsets = [0, 32], sizes = [2, 32], strides = [1, 1]} : vector<2x64xf32> to vector<2x32xf32>
    %747 = vector.extract_strided_slice %729 {offsets = [0, 64], sizes = [2, 32], strides = [1, 1]} : vector<2x96xf32> to vector<2x32xf32>
    %748 = vector.extract_strided_slice %733 {offsets = [0, 64], sizes = [2, 32], strides = [1, 1]} : vector<2x96xf32> to vector<2x32xf32>
    %749 = arith.mulf %745, %748 : vector<2x32xf32>
    %750 = arith.addf %747, %749 : vector<2x32xf32>
    %751 = math.tanh %750 : vector<2x32xf32>
    %cst_161 = arith.constant 1.000000e+00 : f32
    %752 = vector.broadcast %cst_161 : f32 to vector<2x32xf32>
    %753 = arith.subf %752, %746 : vector<2x32xf32>
    %754 = arith.mulf %753, %751 : vector<2x32xf32>
    %755 = arith.mulf %746, %708 : vector<2x32xf32>
    %756 = arith.addf %754, %755 : vector<2x32xf32>
    %757 = vector.extract_strided_slice %730 {offsets = [0, 0], sizes = [2, 64], strides = [1, 1]} : vector<2x96xf32> to vector<2x64xf32>
    %758 = vector.extract_strided_slice %736 {offsets = [0, 0], sizes = [2, 64], strides = [1, 1]} : vector<2x96xf32> to vector<2x64xf32>
    %759 = arith.addf %757, %758 : vector<2x64xf32>
    %760 = arith.negf %759 : vector<2x64xf32>
    %761 = math.exp %760 : vector<2x64xf32>
    %cst_162 = arith.constant 1.000000e+00 : f32
    %762 = vector.broadcast %cst_162 : f32 to vector<2x64xf32>
    %763 = arith.addf %762, %761 : vector<2x64xf32>
    %764 = arith.divf %762, %763 : vector<2x64xf32>
    %765 = vector.extract_strided_slice %764 {offsets = [0, 0], sizes = [2, 32], strides = [1, 1]} : vector<2x64xf32> to vector<2x32xf32>
    %766 = vector.extract_strided_slice %764 {offsets = [0, 32], sizes = [2, 32], strides = [1, 1]} : vector<2x64xf32> to vector<2x32xf32>
    %767 = vector.extract_strided_slice %730 {offsets = [0, 64], sizes = [2, 32], strides = [1, 1]} : vector<2x96xf32> to vector<2x32xf32>
    %768 = vector.extract_strided_slice %736 {offsets = [0, 64], sizes = [2, 32], strides = [1, 1]} : vector<2x96xf32> to vector<2x32xf32>
    %769 = arith.mulf %765, %768 : vector<2x32xf32>
    %770 = arith.addf %767, %769 : vector<2x32xf32>
    %771 = math.tanh %770 : vector<2x32xf32>
    %cst_163 = arith.constant 1.000000e+00 : f32
    %772 = vector.broadcast %cst_163 : f32 to vector<2x32xf32>
    %773 = arith.subf %772, %766 : vector<2x32xf32>
    %774 = arith.mulf %773, %771 : vector<2x32xf32>
    %775 = arith.mulf %766, %728 : vector<2x32xf32>
    %776 = arith.addf %774, %775 : vector<2x32xf32>
    %777 = vector.extract_strided_slice %426 {offsets = [14, 0], sizes = [2, 96], strides = [1, 1]} : vector<16x96xf32> to vector<2x96xf32>
    %778 = vector.extract_strided_slice %434 {offsets = [0, 0], sizes = [2, 96], strides = [1, 1]} : vector<16x96xf32> to vector<2x96xf32>
    %cst_164 = arith.constant dense<0.000000e+00> : vector<2x96xf32>
    %779 = tpu.matmul %756, %435, %cst_164 {dimension_numbers = #tpu.dot_dimension_numbers<[1], [0], [0], [1], [0, 0, 1, 1], [], []>} : vector<2x32xf32>, vector<32x96xf32>, vector<2x96xf32> -> vector<2x96xf32>
    %780 = vector.broadcast %437 : vector<1x96xf32> to vector<2x96xf32>
    %781 = arith.addf %779, %780 : vector<2x96xf32>
    %cst_165 = arith.constant dense<0.000000e+00> : vector<2x96xf32>
    %782 = tpu.matmul %776, %436, %cst_165 {dimension_numbers = #tpu.dot_dimension_numbers<[1], [0], [0], [1], [0, 0, 1, 1], [], []>} : vector<2x32xf32>, vector<32x96xf32>, vector<2x96xf32> -> vector<2x96xf32>
    %783 = vector.broadcast %438 : vector<1x96xf32> to vector<2x96xf32>
    %784 = arith.addf %782, %783 : vector<2x96xf32>
    %785 = vector.extract_strided_slice %777 {offsets = [0, 0], sizes = [2, 64], strides = [1, 1]} : vector<2x96xf32> to vector<2x64xf32>
    %786 = vector.extract_strided_slice %781 {offsets = [0, 0], sizes = [2, 64], strides = [1, 1]} : vector<2x96xf32> to vector<2x64xf32>
    %787 = arith.addf %785, %786 : vector<2x64xf32>
    %788 = arith.negf %787 : vector<2x64xf32>
    %789 = math.exp %788 : vector<2x64xf32>
    %cst_166 = arith.constant 1.000000e+00 : f32
    %790 = vector.broadcast %cst_166 : f32 to vector<2x64xf32>
    %791 = arith.addf %790, %789 : vector<2x64xf32>
    %792 = arith.divf %790, %791 : vector<2x64xf32>
    %793 = vector.extract_strided_slice %792 {offsets = [0, 0], sizes = [2, 32], strides = [1, 1]} : vector<2x64xf32> to vector<2x32xf32>
    %794 = vector.extract_strided_slice %792 {offsets = [0, 32], sizes = [2, 32], strides = [1, 1]} : vector<2x64xf32> to vector<2x32xf32>
    %795 = vector.extract_strided_slice %777 {offsets = [0, 64], sizes = [2, 32], strides = [1, 1]} : vector<2x96xf32> to vector<2x32xf32>
    %796 = vector.extract_strided_slice %781 {offsets = [0, 64], sizes = [2, 32], strides = [1, 1]} : vector<2x96xf32> to vector<2x32xf32>
    %797 = arith.mulf %793, %796 : vector<2x32xf32>
    %798 = arith.addf %795, %797 : vector<2x32xf32>
    %799 = math.tanh %798 : vector<2x32xf32>
    %cst_167 = arith.constant 1.000000e+00 : f32
    %800 = vector.broadcast %cst_167 : f32 to vector<2x32xf32>
    %801 = arith.subf %800, %794 : vector<2x32xf32>
    %802 = arith.mulf %801, %799 : vector<2x32xf32>
    %803 = arith.mulf %794, %756 : vector<2x32xf32>
    %804 = arith.addf %802, %803 : vector<2x32xf32>
    %805 = vector.extract_strided_slice %778 {offsets = [0, 0], sizes = [2, 64], strides = [1, 1]} : vector<2x96xf32> to vector<2x64xf32>
    %806 = vector.extract_strided_slice %784 {offsets = [0, 0], sizes = [2, 64], strides = [1, 1]} : vector<2x96xf32> to vector<2x64xf32>
    %807 = arith.addf %805, %806 : vector<2x64xf32>
    %808 = arith.negf %807 : vector<2x64xf32>
    %809 = math.exp %808 : vector<2x64xf32>
    %cst_168 = arith.constant 1.000000e+00 : f32
    %810 = vector.broadcast %cst_168 : f32 to vector<2x64xf32>
    %811 = arith.addf %810, %809 : vector<2x64xf32>
    %812 = arith.divf %810, %811 : vector<2x64xf32>
    %813 = vector.extract_strided_slice %812 {offsets = [0, 0], sizes = [2, 32], strides = [1, 1]} : vector<2x64xf32> to vector<2x32xf32>
    %814 = vector.extract_strided_slice %812 {offsets = [0, 32], sizes = [2, 32], strides = [1, 1]} : vector<2x64xf32> to vector<2x32xf32>
    %815 = vector.extract_strided_slice %778 {offsets = [0, 64], sizes = [2, 32], strides = [1, 1]} : vector<2x96xf32> to vector<2x32xf32>
    %816 = vector.extract_strided_slice %784 {offsets = [0, 64], sizes = [2, 32], strides = [1, 1]} : vector<2x96xf32> to vector<2x32xf32>
    %817 = arith.mulf %813, %816 : vector<2x32xf32>
    %818 = arith.addf %815, %817 : vector<2x32xf32>
    %819 = math.tanh %818 : vector<2x32xf32>
    %cst_169 = arith.constant 1.000000e+00 : f32
    %820 = vector.broadcast %cst_169 : f32 to vector<2x32xf32>
    %821 = arith.subf %820, %814 : vector<2x32xf32>
    %822 = arith.mulf %821, %819 : vector<2x32xf32>
    %823 = arith.mulf %814, %776 : vector<2x32xf32>
    %824 = arith.addf %822, %823 : vector<2x32xf32>
    %c0_170 = arith.constant 0 : index
    %c0_171 = arith.constant 0 : index
    %825 = vector.load %arg17[%c0_170, %c0_171] : memref<64x5xf32, #tpu.memory_space<vmem>>, vector<32x5xf32>
    %cst_172 = arith.constant dense<0.000000e+00> : vector<2x5xf32>
    %826 = tpu.matmul %804, %825, %cst_172 {dimension_numbers = #tpu.dot_dimension_numbers<[1], [0], [0], [1], [0, 0, 1, 1], [], []>} : vector<2x32xf32>, vector<32x5xf32>, vector<2x5xf32> -> vector<2x5xf32>
    %c32_173 = arith.constant 32 : index
    %c0_174 = arith.constant 0 : index
    %827 = vector.load %arg17[%c32_173, %c0_174] : memref<64x5xf32, #tpu.memory_space<vmem>>, vector<32x5xf32>
    %cst_175 = arith.constant dense<0.000000e+00> : vector<2x5xf32>
    %828 = tpu.matmul %824, %827, %cst_175 {dimension_numbers = #tpu.dot_dimension_numbers<[1], [0], [0], [1], [0, 0, 1, 1], [], []>} : vector<2x32xf32>, vector<32x5xf32>, vector<2x5xf32> -> vector<2x5xf32>
    %829 = arith.addf %826, %828 : vector<2x5xf32>
    %c0_176 = arith.constant 0 : index
    %c0_177 = arith.constant 0 : index
    %830 = vector.load %arg18[%c0_176, %c0_177] : memref<1x5xf32, #tpu.memory_space<vmem>>, vector<1x5xf32>
    %831 = vector.broadcast %830 : vector<1x5xf32> to vector<2x5xf32>
    %832 = arith.addf %829, %831 : vector<2x5xf32>
    %c0_178 = arith.constant 0 : index
    %c0_179 = arith.constant 0 : index
    %833 = vector.load %arg19[%c0_178, %c0_179] : memref<2x5xf32, #tpu.memory_space<vmem>>, vector<2x5xf32>
    tpu.vector_store %arg19[%c0_178, %c0_179], %832 {strides = array<i32>} : memref<2x5xf32, #tpu.memory_space<vmem>>, vector<2x5xf32>,
    return
  }
}

</mosaic_0001>

<bundles_post_ra>
// kernel: tpu_custom_call.1
= control target key start
LH: loop header
LB: loop body
LE: loop exit
PB: predicated region body
PF: predicated region fallthrough
CT: control target
= control target key end

     0   :  { %s6689_s0 = inlined_call_operand.hbm [shape: f32[16,16], index: 0, kind: input, shape index: {}]   ;;  %s6690_s1 = inlined_call_operand.hbm [shape: f32[16,96], index: 1, kind: input, shape index: {}]   ;;  %s6691_s2 = inlined_call_operand.vmem [shape: f32[32,96], index: 2, kind: input, shape index: {}]   ;;  %s6692_s3 = inlined_call_operand.vmem [shape: f32[1,96], index: 3, kind: input, shape index: {}]   ;;  %s6693_s4 = inlined_call_operand.vmem [shape: f32[1,96], index: 4, kind: input, shape index: {}]   ;;  %s6694_s5 = inlined_call_operand.hbm [shape: f32[16,96], index: 5, kind: input, shape index: {}]   ;;  %s6695_s6 = inlined_call_operand.hbm [shape: f32[32,96], index: 6, kind: input, shape index: {}]   ;;  %s6696_s7 = inlined_call_operand.vmem [shape: f32[1,96], index: 7, kind: input, shape index: {}]   ;;  %s6697_s8 = inlined_call_operand.vmem [shape: f32[1,96], index: 8, kind: input, shape index: {}]   ;;  %s6698_s9 = inlined_call_operand.vmem [shape: f32[64,96], index: 9, kind: input, shape index: {}]   ;;  %s6699_s10 = inlined_call_operand.hbm [shape: f32[32,96], index: 10, kind: input, shape index: {}]   ;;  %s6700_s11 = inlined_call_operand.vmem [shape: f32[1,96], index: 11, kind: input, shape index: {}]   ;;  %s6701_s12 = inlined_call_operand.vmem [shape: f32[1,96], index: 12, kind: input, shape index: {}]   ;;  %s6702_s13 = inlined_call_operand.hbm [shape: f32[64,96], index: 13, kind: input, shape index: {}]   ;;  %s6703_s14 = inlined_call_operand.hbm [shape: f32[32,96], index: 14, kind: input, shape index: {}]   ;;  %s6704_s15 = inlined_call_operand.vmem [shape: f32[1,96], index: 15, kind: input, shape index: {}]   ;;  %s6705_s16 = inlined_call_operand.vmem [shape: f32[1,96], index: 16, kind: input, shape index: {}]   ;;  %s6706_s17 = inlined_call_operand.vmem [shape: f32[64,5], index: 17, kind: input, shape index: {}]   ;;  %s6707_s18 = inlined_call_operand.vmem [shape: f32[1,5], index: 18, kind: input, shape index: {}]   ;;  %s6708_s19 = inlined_call_operand.hbm [shape: f32[2,5], index: 19, kind: output, shape index: {}]  }
   0x1   :  { %6713 = sst [smem:[#allocation22_spill]] %s6689_s0 }
   0x2   :  { %6714 = sst [smem:[#allocation23_spill]] %s6690_s1 }
   0x3   :  { %6715 = sst [smem:[#allocation24_spill]] %s6691_s2 }
   0x4   :  { %6716 = sst [smem:[#allocation25_spill]] %s6692_s3 }
   0x5   :  { %6717 = sst [smem:[#allocation26_spill]] %s6708_s19 }
   0x6   :  { %24 = vsyncpa [#allocation5], 0 }
   0x7   :  { %25 = vsyncpa [#allocation8], 0 }
   0x8   :  { %26 = vsyncpa [#allocation11], 0 }
   0x9   :  { %27 = vsyncpa [#allocation14], 0 }
   0xa   :  { %28 = vsyncpa [#allocation6], 0  ;;  %s5674_s0 = smov [#allocation7]   ;;  %s5675_s20 = smov [#allocation10]  }
   0xb   :  { %s46_s30 = sshll.u32 %s5674_s0, 4  ;;  %s76_s21 = sshll.u32 %s5675_s20, 4  ;;  %s47_s30 = int_to_ptr.vmem [resolvable:$true] %s46_s30  ;;  %s5789_s21 = int_to_ptr.vmem [resolvable:$true] %s76_s21 }
   0xc   :  { %s6718_s2 = sld [smem:[#allocation23_spill]] }
  0x12   :  { %s5488_s23 = scalar_lea.hbm %s6718_s2, 256 }
  0x13   :  { %p5489_p0 = scmp.ne.s32.totalorder %s6718_s2, %s5488_s23  ;;  %p5492_p1 = scmp.lt.u32.totalorder %s5488_s23, %s6718_s2 }
  0x15   :  { %p5494_p2 = pnand %p5492_p1, %p5489_p0 }
  0x17   :  { %5497 = shalt.err (!%p5494_p2)
}
  0x18   :  { %s5498_s27 = scalar_lea.vmem %s47_s30, 256  ;;  %p5503_p4 = scmp.lt.s32.totalorder %s47_s30, %s47_s30 }
  0x19   :  { %p5499_p3 = scmp.ne.s32.totalorder %s47_s30, %s5498_s27  ;;  %p5504_p5 = scmp.lt.s32.totalorder %s5498_s27, %s5498_s27 }
  0x1b   :  { %p5505_p6 = por %p5504_p5, %p5503_p4 }
  0x1d   :  { %p5506_p7 = pnand %p5505_p6, %p5499_p3 }
  0x1f   :  { %5509 = shalt.err (!%p5506_p7)
}
  0x20   :  { %s5676_s28 = smov 128   ;;  %s5677_s29 = smov 8  }
  0x21   :  { %52 = dma.hbm_to_vmem [thread:$0]  %s6718_s2, 256, %s47_s30, [#allocation8], %s5676_s28, %s5676_s28, %s5677_s29  }
  0x22   :  { %s5510_s23 = scalar_lea.hbm %s6695_s6, 512 }
  0x23   :  { %p5511_p8 = scmp.ne.s32.totalorder %s6695_s6, %s5510_s23  ;;  %p5514_p9 = scmp.lt.u32.totalorder %s5510_s23, %s6695_s6 }
  0x25   :  { %p5516_p10 = pnand %p5514_p9, %p5511_p8 }
  0x27   :  { %5519 = shalt.err (!%p5516_p10)
}
  0x28   :  { %s5520_s27 = scalar_lea.vmem %s5789_s21, 512  ;;  %p5525_p12 = scmp.lt.s32.totalorder %s5789_s21, %s5789_s21 }
  0x29   :  { %p5521_p11 = scmp.ne.s32.totalorder %s5789_s21, %s5520_s27  ;;  %p5526_p13 = scmp.lt.s32.totalorder %s5520_s27, %s5520_s27 }
  0x2b   :  { %p5527_p0 = por %p5526_p13, %p5525_p12 }
  0x2d   :  { %p5528_p1 = pnand %p5527_p0, %p5521_p11 }
  0x2f   :  { %5531 = shalt.err (!%p5528_p1)
}
  0x30   :  { %82 = dma.hbm_to_vmem [thread:$0]  %s6695_s6, 512, %s5789_s21, [#allocation11], %s5676_s28, %s5676_s28, %s5677_s29  }
  0x31   :  { %s5678_s0 = smov [#allocation13]   ;;  %s5679_s1 = smov [#allocation4]  }
  0x32   :  { %s110_s20 = sshll.u32 %s5678_s0, 4  ;;  %s34_s22 = sshll.u32 %s5679_s1, 4  ;;  %s111_s20 = int_to_ptr.vmem [resolvable:$true] %s110_s20  ;;  %s5826_s22 = int_to_ptr.vmem [resolvable:$true] %s34_s22 }
  0x33   :  { %s5532_s25 = scalar_lea.hbm %s6702_s13, 1024 }
  0x34   :  { %p5533_p2 = scmp.ne.s32.totalorder %s6702_s13, %s5532_s25  ;;  %p5536_p3 = scmp.lt.u32.totalorder %s5532_s25, %s6702_s13 }
  0x36   :  { %p5538_p4 = pnand %p5536_p3, %p5533_p2 }
  0x38   :  { %5541 = shalt.err (!%p5538_p4)
}
  0x39   :  { %s5542_s6 = scalar_lea.vmem %s111_s20, 1024  ;;  %p5547_p6 = scmp.lt.s32.totalorder %s111_s20, %s111_s20 }
  0x3a   :  { %p5543_p5 = scmp.ne.s32.totalorder %s111_s20, %s5542_s6  ;;  %p5548_p7 = scmp.lt.s32.totalorder %s5542_s6, %s5542_s6 }
  0x3c   :  { %p5549_p8 = por %p5548_p7, %p5547_p6 }
  0x3e   :  { %p5550_p9 = pnand %p5549_p8, %p5543_p5 }
  0x40   :  { %5553 = shalt.err (!%p5550_p9)
}
  0x41   :  { %116 = dma.hbm_to_vmem [thread:$0]  %s6702_s13, 1024, %s111_s20, [#allocation14], %s5676_s28, %s5676_s28, %s5677_s29  }
  0x42   :  { %s6719_s19 = sld [smem:[#allocation22_spill]] }
  0x48   :  { %s5554_s1 = scalar_lea.hbm %s6719_s19, 256 }
  0x49   :  { %p5555_p10 = scmp.ne.s32.totalorder %s6719_s19, %s5554_s1  ;;  %p5558_p11 = scmp.lt.u32.totalorder %s5554_s1, %s6719_s19 }
  0x4b   :  { %p5560_p12 = pnand %p5558_p11, %p5555_p10 }
  0x4d   :  { %5563 = shalt.err (!%p5560_p12)
}
  0x4e   :  { %s5564_s26 = scalar_lea.vmem %s5826_s22, 256  ;;  %p5569_p0 = scmp.lt.s32.totalorder %s5826_s22, %s5826_s22 }
  0x4f   :  { %p5565_p13 = scmp.ne.s32.totalorder %s5826_s22, %s5564_s26  ;;  %p5570_p1 = scmp.lt.s32.totalorder %s5564_s26, %s5564_s26 }
  0x51   :  { %p5571_p2 = por %p5570_p1, %p5569_p0 }
  0x53   :  { %p5572_p3 = pnand %p5571_p2, %p5565_p13 }
  0x55   :  { %5575 = shalt.err (!%p5572_p3)
}
  0x56   :  { %40 = dma.hbm_to_vmem [thread:$0]  %s6719_s19, 256, %s5826_s22, [#allocation5], %s5676_s28, %s5676_s28, %s5677_s29  }
  0x57   :  { %s5680_s27 = smov [#allocation9]   ;;  %s5681_s21 = smov [#allocation12]  }
  0x58   :  { %s64_s6 = sshll.u32 %s5680_s27, 4  ;;  %s94_s30 = sshll.u32 %s5681_s21, 4  ;;  %s65_s6 = int_to_ptr.vmem [resolvable:$true] %s64_s6  ;;  %s5863_s30 = int_to_ptr.vmem [resolvable:$true] %s94_s30 }
  0x59   :  { %s5576_s1 = scalar_lea.hbm %s6694_s5, 256 }
  0x5a   :  { %p5577_p4 = scmp.ne.s32.totalorder %s6694_s5, %s5576_s1  ;;  %p5580_p5 = scmp.lt.u32.totalorder %s5576_s1, %s6694_s5 }
  0x5c   :  { %p5582_p6 = pnand %p5580_p5, %p5577_p4 }
  0x5e   :  { %5585 = shalt.err (!%p5582_p6)
}
  0x5f   :  { %s5586_s22 = scalar_lea.vmem %s65_s6, 256  ;;  %p5591_p8 = scmp.lt.s32.totalorder %s65_s6, %s65_s6 }
  0x60   :  { %p5587_p7 = scmp.ne.s32.totalorder %s65_s6, %s5586_s22  ;;  %p5592_p9 = scmp.lt.s32.totalorder %s5586_s22, %s5586_s22 }
  0x62   :  { %p5593_p10 = por %p5592_p9, %p5591_p8 }
  0x64   :  { %p5594_p11 = pnand %p5593_p10, %p5587_p7 }
  0x66   :  { %5597 = shalt.err (!%p5594_p11)
}
  0x67   :  { %70 = dma.hbm_to_vmem [thread:$0]  %s6694_s5, 256, %s65_s6, [#allocation8], %s5676_s28, %s5676_s28, %s5677_s29  }
  0x68   :  { %s5598_s27 = scalar_lea.hbm %s6699_s10, 512 }
  0x69   :  { %p5599_p12 = scmp.ne.s32.totalorder %s6699_s10, %s5598_s27  ;;  %p5602_p13 = scmp.lt.u32.totalorder %s5598_s27, %s6699_s10 }
  0x6b   :  { %p5604_p0 = pnand %p5602_p13, %p5599_p12 }
  0x6d   :  { %5607 = shalt.err (!%p5604_p0)
}
  0x6e   :  { %s5608_s23 = scalar_lea.vmem %s5863_s30, 512  ;;  %p5613_p2 = scmp.lt.s32.totalorder %s5863_s30, %s5863_s30 }
  0x6f   :  { %p5609_p1 = scmp.ne.s32.totalorder %s5863_s30, %s5608_s23  ;;  %p5614_p3 = scmp.lt.s32.totalorder %s5608_s23, %s5608_s23 }
  0x71   :  { %p5615_p4 = por %p5614_p3, %p5613_p2 }
  0x73   :  { %p5616_p5 = pnand %p5615_p4, %p5609_p1 }
  0x75   :  { %5619 = shalt.err (!%p5616_p5)
}
  0x76   :  { %100 = dma.hbm_to_vmem [thread:$0]  %s6699_s10, 512, %s5863_s30, [#allocation11], %s5676_s28, %s5676_s28, %s5677_s29  }
  0x77   :  { %s5682_s24 = smov [#allocation15]   ;;  %s5620_s19 = scalar_lea.hbm %s6703_s14, 512 }
  0x78   :  { %s122_s25 = sshll.u32 %s5682_s24, 4  ;;  %p5621_p6 = scmp.ne.s32.totalorder %s6703_s14, %s5620_s19  ;;  %s123_s25 = int_to_ptr.vmem [resolvable:$true] %s122_s25 }
  0x79   :  { %p5624_p7 = scmp.lt.u32.totalorder %s5620_s19, %s6703_s14 }
  0x7b   :  { %p5626_p8 = pnand %p5624_p7, %p5621_p6 }
  0x7d   :  { %5629 = shalt.err (!%p5626_p8)
}
  0x7e   :  { %s5630_s21 = scalar_lea.vmem %s123_s25, 512  ;;  %p5635_p10 = scmp.lt.s32.totalorder %s123_s25, %s123_s25 }
  0x7f   :  { %p5631_p9 = scmp.ne.s32.totalorder %s123_s25, %s5630_s21  ;;  %p5636_p11 = scmp.lt.s32.totalorder %s5630_s21, %s5630_s21 }
  0x81   :  { %p5637_p12 = por %p5636_p11, %p5635_p10 }
  0x83   :  { %p5638_p13 = pnand %p5637_p12, %p5631_p9 }
  0x85   :  { %5641 = shalt.err (!%p5638_p13)
}
  0x86   :  { %128 = dma.hbm_to_vmem [thread:$0]  %s6703_s14, 512, %s123_s25, [#allocation14], %s5676_s28, %s5676_s28, %s5677_s29  }
  0x87   :  { %5664 = dma.done.wait [#allocation5], 256  }
  0x88   :  { %5665 = vsyncadd [#allocation5], 4294967040 }
  0x89   :  { %5666 = dma.done.wait [#allocation8], 512  }
  0x8a   :  { %5667 = vsyncadd [#allocation8], 4294966784 }
  0x8b   :  { %5668 = dma.done.wait [#allocation11], 1024  }
  0x8c   :  { %5669 = vsyncadd [#allocation11], 4294966272 }
  0x8d   :  { %5670 = dma.done.wait [#allocation14], 1536  }
  0x8e   :  { %5671 = vsyncadd [#allocation14], 4294965760  ;;  %vm169_vm0 = vcmask 130048   ;;  %v251_v0 = vld [vmem:[#allocation9] sm:$0xff]  ;;  %v252_v1 = vld [vmem:[#allocation9 + $0x8] sm:$0xff]  ;;  %s6720_s29 = sld [smem:[#allocation24_spill]] }
  0x8f   :  { %v158_v2 = vld [vmem:[#allocation4] sm:$0xff]  ;;  %v5037_v3 = vpack.c.bf16 %v252_v1, %v251_v0  ;;  %v339_v4 = vld [vmem:[#allocation10] sm:$0xff]  ;;  %v340_v5 = vld [vmem:[#allocation10 + $0x8] sm:$0xff]  ;;  %v5683_v13 = vmov 0.0|0.0   ;;  %vm5684_vm1 = vmmov 0   ;;  %v5685_v20 = vmov 0.0  }
  0x90   :  { %4612 = vmatprep.mubr.msk.f32.mxu1 %vm169_vm0, %v158_v2  ;;  %4605 = vmatprep.mubr.msk.f32.mxu0 %vm169_vm0, %v158_v2  ;;  %v160_v6 = vld [vmem:[#allocation7] sm:$0xff]  ;;  %v161_v7 = vld [vmem:[#allocation7 + $0x8] sm:$0xff]  ;;  %v159_v11 = vld [vmem:[#allocation4 + $0x8] sm:$0xff]  ;;  %v5923_v12 = vpack.c.bf16 %v340_v5, %v339_v4  ;;  %s6721_s19 = sld [smem:[#allocation25_spill]]  ;;  %s5686_s27 = smov 64   ;;  %vm351_vm2 = vcmask 261120  }
  0x91   :  { %5038 = vmatprep.subr.bf16.mxu1 %v5037_v3  ;;  %v5033_v8 = vpack.c.bf16 %v161_v7, %v160_v6  ;;  %v341_v14 = vld [vmem:[#allocation10 + $0x10] sm:$0xff]  ;;  %v342_v15 = vld [vmem:[#allocation10 + $0x18] sm:$0xff]  ;;  %vm559_vm3 = vcmask 254976   ;;  %vm565_vm4 = vcmask 261126   ;;  %vm778_vm5 = vcmask 257026   ;;  %s5688_s24 = smov [#allocation16]  }
  0x92   :  { %5040 = vmatpush3.bf16.msra.mxu1 %v5037_v3  ;;  %v5937_v19 = vpack.c.bf16 %v342_v15, %v341_v14  ;;  %v4319_v22 = vld [vmem:[%s6696_s7] ss:$0 sm:$0xff]  ;;  %vm784_vm6 = vcmask 259076   ;;  %s4304_s25 = sshll.u32 %s5688_s24, 4  ;;  %vm4296_vm7 = vcmask 33792   ;;  %s4305_s25 = int_to_ptr.vmem [resolvable:$true] %s4304_s25 }
  0x93   :  { %5047 = vmatprep.subr.bf16.mxu1 %v5683_v13  ;;  %5034 = vmatprep.subr.bf16.mxu0 %v5033_v8  ;;  %v5980_v30 = vld [vmem:[%s6697_s8] ss:$0 sm:$0xff]  ;;  %p5647_p1 = scmp.lt.s32.totalorder %s4305_s25, %s4305_s25 }
  0x94   :  { %v335_v9 = vld [vmem:[%s6720_s29] sm:$0xff]  ;;  %v336_v10 = vld [vmem:[%s6720_s29 + $0x8] sm:$0xff]  ;;  %5036 = vmatpush3.bf16.msra.mxu0 %v5033_v8  ;;  %v337_v17 = vld [vmem:[%s6720_s29 + $0x10] sm:$0xff] }
  0x95   :  { %v5926_v16 = vpack.c.bf16 %v336_v10, %v335_v9  ;;  %4613 = vmatmul.mubr.msk.f32.vlgmr.msra.gmra.mrb[0].mxu1 %vm169_vm0, %v159_v11  ;;  %5041 = vmatprep.subr.bf16.mxu0 %v5683_v13  ;;  %v338_v18 = vld [vmem:[%s6720_s29 + $0x18] sm:$0xff]  ;;  %v5986_v34 = vld [vmem:[%s6693_s4] ss:$0 sm:$0xff]  ;;  %s5687_s4 = smov 96  }
  0x96   :  { %5049 = vmatpush3.bf16.msra.mxu1 %v5923_v12  ;;  %4634 = vmatprep.mubr.msk.f32.mxu1 %vm5684_vm1, %v5685_v20  ;;  %v5944_v21 = vpack.c.bf16 %v338_v18, %v337_v17  ;;  %v4316_v24 = vld [vmem:[%s6721_s19] ss:$0 sm:$0xff] }
  0x97   :  { %5050 = vmatprep.subr.bf16.mxu1 %v5683_v13  ;;  %4606 = vmatmul.mubr.msk.f32.vlgmr.msra.gmra.mrb[0].mxu0 %vm169_vm0, %v159_v11 }
  0x98   :  { %5043 = vmatpush3.bf16.msra.mxu0 %v5926_v16  ;;  %4623 = vmatprep.mubr.msk.f32.mxu0 %vm5684_vm1, %v5685_v20 }
  0x99   :  { %5044 = vmatprep.subr.bf16.mxu0 %v5683_v13 }
  0x9a   :  { %5052 = vmatpush3.bf16.msra.mxu1 %v5937_v19 }
  0x9b   :  { %5059 = vmatprep.subr.bf16.mxu1 %v5683_v13 }
  0x9c   :  { %5046 = vmatpush3.bf16.msra.mxu0 %v5944_v21 }
  0x9d   :  { %4635 = vmatmul.mubr.f32.vlgmr.msra.gmra.mrb[2].mxu1 %v5685_v20  ;;  %5053 = vmatprep.subr.bf16.mxu0 %v5683_v13 }
  0x9e   :  { %5061 = vmatpush3.bf16.msra.mxu1 %v5923_v12  ;;  %4656 = vmatprep.mubr.msk.f32.mxu1 %vm5684_vm1, %v5685_v20 }
  0x9f   :  { %4624 = vmatmul.mubr.f32.vlgmr.msra.gmra.mrb[2].mxu0 %v5685_v20  ;;  %5062 = vmatprep.subr.bf16.mxu1 %v5683_v13 }
  0xa0   :  { %5055 = vmatpush3.bf16.msra.mxu0 %v5926_v16  ;;  %4645 = vmatprep.mubr.msk.f32.mxu0 %vm5684_vm1, %v5685_v20 }
  0xa1   :  { %5056 = vmatprep.subr.bf16.mxu0 %v5683_v13 }
  0xa2   :  { %5064 = vmatpush3.bf16.msra.mxu1 %v5937_v19 }
  0xa3   :  { %5071 = vmatprep.subr.bf16.mxu1 %v5683_v13 }
  0xa4   :  { %5058 = vmatpush3.bf16.msra.mxu0 %v5944_v21 }
  0xa5   :  { %5065 = vmatprep.subr.bf16.mxu0 %v5683_v13 }
 0x168   :  { %v4614_v23 = vpop.f32.mrb[0].mxu1 }
 0x169   :  { %v326_v25 = vpop.f32.mrb[1].mxu1  ;;  %v5991_v39 = vadd.f32 %v4614_v23, %v4319_v22 }
 0x16a   :  { %v5973_v26 = vadd.f32 %v4319_v22, %v326_v25  ;;  %v4607_v27 = vpop.f32.mrb[0].mxu0 }
 0x16b   :  { %v5975_v28 = vadd.f32 %v4607_v27, %v4316_v24  ;;  %v242_v29 = vpop.f32.mrb[1].mxu0 }
 0x16c   :  { %v5994_v41 = vadd.f32 %v4316_v24, %v242_v29 }
 0x170   :  { %v497_v31 = vpop.f32.mrb[2].mxu1 }
 0x171   :  { %v498_v32 = vadd.f32 %v5980_v30, %v497_v31  ;;  %v4636_v33 = vpop.f32.mrb[3].mxu1 }
 0x172   :  { %v421_v35 = vpop.f32.mrb[2].mxu0 }
 0x173   :  { %v528_v36 = vrot.slane %v498_v32, 2  ;;  %v4625_v37 = vpop.f32.mrb[3].mxu0  ;;  %v422_v38 = vadd.f32 %v5986_v34, %v421_v35 }
 0x175   :  { %537 = vrot.lane.b32.xlu0 %v528_v36, %s5686_s27  ;;  %v530_v40 = vadd.f32 %v528_v36, %v5991_v39  ;;  %v501_v43 = vadd.f32 %v422_v38, %v5994_v41 }
 0x177   :  { %v4325_v42 = vmul.f32 -1.442695, %v530_v40  ;;  %v4324_v44 = vmul.f32 -1.442695, %v501_v43 }
 0x179   :  { %509 = vrot.lane.b32.xlu0 %v422_v38, %s5686_s27  ;;  %5296 = vpow2.f32 %v4325_v42 }
 0x17a   :  { %5298 = vpow2.f32 %v4324_v44 }
 0x183   :  { %v5297_v45 = vpop.eup %5296 }
 0x184   :  { %v534_v46 = vadd.f32 1.0, %v5297_v45  ;;  %v5299_v47 = vpop.eup %5298 }
 0x185   :  { %v505_v48 = vadd.f32 1.0, %v5299_v47 }
 0x186   :  { %5300 = vrcp.f32 %v534_v46 }
 0x187   :  { %5302 = vrcp.f32 %v505_v48 }
 0x190   :  { %v5301_v49 = vpop.eup %5300 }
 0x191   :  { %v5303_v52 = vpop.eup %5302  ;;  %v547_v61 = vsub.f32 1.0, %v5301_v49  ;;  %v553_v63 = vmul.f32 0.0, %v5301_v49 }
 0x192   :  { %v519_v2 = vsub.f32 1.0, %v5303_v52  ;;  %v525_v4 = vmul.f32 0.0, %v5303_v52 }
 0x1e7   :  { %v538_v50 = vpop.permute.xlu0 %537 }
 0x1e8   :  { %v540_v51 = vmul.f32 %v5301_v49, %v538_v50 }
 0x1ea   :  { %542 = vrot.lane.b32.xlu1 %v540_v51, %s5686_s27 }
 0x1eb   :  { %v510_v53 = vpop.permute.xlu0 %509 }
 0x1ec   :  { %v512_v54 = vmul.f32 %v5303_v52, %v510_v53 }
 0x1ee   :  { %514 = vrot.lane.b32.xlu1 %v512_v54, %s5686_s27 }
 0x25c   :  { %v543_v55 = vpop.permute.xlu1 %542 }
 0x25d   :  { %v545_v56 = vadd.f32 %v543_v55, %v5991_v39 }
 0x25f   :  { %5304 = vtanh.f32 %v545_v56 }
 0x260   :  { %v515_v57 = vpop.permute.xlu1 %514 }
 0x261   :  { %v517_v58 = vadd.f32 %v515_v57, %v5994_v41 }
 0x263   :  { %5306 = vtanh.f32 %v517_v58 }
 0x269   :  { %v5305_v59 = vpop.eup %5304 }
 0x26a   :  { %549 = vrot.lane.b32.xlu0 %v5305_v59, %s5687_s4 }
 0x26d   :  { %v5307_v60 = vpop.eup %5306 }
 0x26e   :  { %521 = vrot.lane.b32.xlu1 %v5307_v60, %s5687_s4 }
 0x2dc   :  { %v550_v62 = vpop.permute.xlu0 %549 }
 0x2dd   :  { %v552_v0 = vmul.f32 %v550_v62, %v547_v61 }
 0x2df   :  { %v6003_v1 = vadd.f32 %v553_v63, %v552_v0 }
 0x2e0   :  { %v522_v3 = vpop.permute.xlu1 %521 }
 0x2e1   :  { %v524_v5 = vmul.f32 %v522_v3, %v519_v2  ;;  %v639_v6 = vrot.slane %v6003_v1, 6  ;;  %v770_v51 = vrot.slane %v6003_v1, 2 }
 0x2e3   :  { %v6006_v7 = vadd.f32 %v525_v4, %v524_v5  ;;  %640 = vrot.lane.b32.xlu0 %v639_v6, %s5687_s4 }
 0x2e5   :  { %556 = vrot.lane.b32.xlu1 %v6006_v7, %s5687_s4  ;;  %v740_v53 = vrot.slane %v6006_v7, 6 }
 0x355   :  { %v641_v8 = vpop.permute.xlu0 %640 }
 0x356   :  { %4657 = vmatmul.mubr.msk.f32.vlgmr.msra.gmra.mrb[4].mxu1 %vm351_vm2, %v641_v8 }
 0x357   :  { %v557_v9 = vpop.permute.xlu1 %556  ;;  %5073 = vmatpush3.bf16.msra.mxu1 %v5923_v12  ;;  %4678 = vmatprep.mubr.msk.f32.mxu1 %vm5684_vm1, %v5685_v20 }
 0x358   :  { %560 = vst.msk [vmem:[#allocation2] sm:$0x3] %vm559_vm3, %v557_v9  ;;  %4646 = vmatmul.mubr.msk.f32.vlgmr.msra.gmra.mrb[4].mxu0 %vm351_vm2, %v557_v9  ;;  %5074 = vmatprep.subr.bf16.mxu1 %v5683_v13 }
 0x359   :  { %5067 = vmatpush3.bf16.msra.mxu0 %v5926_v16  ;;  %4667 = vmatprep.mubr.msk.f32.mxu0 %vm5684_vm1, %v5685_v20 }
 0x35a   :  { %5068 = vmatprep.subr.bf16.mxu0 %v5683_v13 }
 0x35b   :  { %5076 = vmatpush3.bf16.msra.mxu1 %v5937_v19 }
 0x35c   :  { %5083 = vmatprep.subr.bf16.mxu1 %v5683_v13 }
 0x35d   :  { %5070 = vmatpush3.bf16.msra.mxu0 %v5944_v21 }
 0x35e   :  { %5077 = vmatprep.subr.bf16.mxu0 %v5683_v13 }
 0x429   :  { %v710_v10 = vpop.f32.mrb[4].mxu1 }
 0x42a   :  { %v711_v11 = vadd.f32 %v5980_v30, %v710_v10  ;;  %v4658_v14 = vpop.f32.mrb[5].mxu1 }
 0x42b   :  { %v635_v15 = vpop.f32.mrb[4].mxu0 }
 0x42c   :  { %v745_v17 = vrot.slane %v711_v11, 4  ;;  %v636_v18 = vadd.f32 %v5986_v34, %v635_v15  ;;  %v4647_v22 = vpop.f32.mrb[5].mxu0 }
 0x42e   :  { %v715_v23 = vrot.slane %v636_v18, 6  ;;  %754 = vrot.lane.b32.xlu0 %v745_v17, %s5686_s27  ;;  %v747_v24 = vadd.f32 %v745_v17, %v5991_v39 }
 0x430   :  { %724 = vrot.lane.b32.xlu1 %v715_v23, %s5686_s27  ;;  %v717_v25 = vadd.f32 %v715_v23, %v5994_v41  ;;  %v4329_v27 = vmul.f32 -1.442695, %v747_v24 }
 0x432   :  { %v4328_v29 = vmul.f32 -1.442695, %v717_v25  ;;  %5308 = vpow2.f32 %v4329_v27 }
 0x434   :  { %5310 = vpow2.f32 %v4328_v29 }
 0x43c   :  { %v5309_v31 = vpop.eup %5308 }
 0x43d   :  { %v751_v33 = vadd.f32 1.0, %v5309_v31 }
 0x43e   :  { %v5311_v32 = vpop.eup %5310 }
 0x43f   :  { %v721_v35 = vadd.f32 1.0, %v5311_v32  ;;  %5312 = vrcp.f32 %v751_v33 }
 0x441   :  { %5314 = vrcp.f32 %v721_v35 }
 0x449   :  { %v5313_v36 = vpop.eup %5312 }
 0x44a   :  { %v764_v50 = vsub.f32 1.0, %v5313_v36  ;;  %v772_v54 = vmul.f32 %v5313_v36, %v770_v51 }
 0x44b   :  { %v5315_v40 = vpop.eup %5314 }
 0x44c   :  { %v734_v56 = vsub.f32 1.0, %v5315_v40  ;;  %v742_v60 = vmul.f32 %v5315_v40, %v740_v53 }
 0x4a0   :  { %v755_v37 = vpop.permute.xlu0 %754 }
 0x4a1   :  { %v757_v38 = vmul.f32 %v5313_v36, %v755_v37 }
 0x4a2   :  { %v725_v42 = vpop.permute.xlu1 %724 }
 0x4a3   :  { %v727_v43 = vmul.f32 %v5315_v40, %v725_v42  ;;  %759 = vrot.lane.b32.xlu0 %v757_v38, %s5686_s27 }
 0x4a5   :  { %729 = vrot.lane.b32.xlu1 %v727_v43, %s5686_s27 }
 0x515   :  { %v760_v44 = vpop.permute.xlu0 %759 }
 0x516   :  { %v762_v45 = vadd.f32 %v760_v44, %v5991_v39 }
 0x517   :  { %v730_v46 = vpop.permute.xlu1 %729 }
 0x518   :  { %5316 = vtanh.f32 %v762_v45  ;;  %v732_v47 = vadd.f32 %v730_v46, %v5994_v41 }
 0x51a   :  { %5318 = vtanh.f32 %v732_v47 }
 0x522   :  { %v5317_v48 = vpop.eup %5316 }
 0x523   :  { %766 = vrot.lane.b32.xlu0 %v5317_v48, %s5687_s4 }
 0x524   :  { %v5319_v49 = vpop.eup %5318 }
 0x525   :  { %736 = vrot.lane.b32.xlu1 %v5319_v49, %s5687_s4 }
 0x595   :  { %v767_v52 = vpop.permute.xlu0 %766 }
 0x596   :  { %v769_v55 = vmul.f32 %v767_v52, %v764_v50 }
 0x597   :  { %v737_v57 = vpop.permute.xlu1 %736 }
 0x598   :  { %v6040_v58 = vadd.f32 %v772_v54, %v769_v55  ;;  %v739_v59 = vmul.f32 %v737_v57, %v734_v56 }
 0x59a   :  { %v6042_v61 = vadd.f32 %v742_v60, %v739_v59  ;;  %v861_v62 = vrot.slane %v6040_v58, 4  ;;  %v992_v44 = vrot.slane %v6040_v58, 2 }
 0x59c   :  { %862 = vrot.lane.b32.xlu0 %v861_v62, %s5687_s4  ;;  %v786_v63 = vrot.slane %v6042_v61, 2  ;;  %v962_v49 = vrot.slane %v6042_v61, 6 }
 0x59e   :  { %787 = vrot.lane.b32.xlu1 %v786_v63, %s5687_s4 }
 0x60e   :  { %v863_v0 = vpop.permute.xlu0 %862 }
 0x60f   :  { %4679 = vmatmul.mubr.msk.f32.vlgmr.msra.gmra.mrb[6].mxu1 %vm351_vm2, %v863_v0 }
 0x610   :  { %v788_v2 = vpop.permute.xlu1 %787  ;;  %5085 = vmatpush3.bf16.msra.mxu1 %v5923_v12  ;;  %4700 = vmatprep.mubr.msk.f32.mxu1 %vm5684_vm1, %v5685_v20 }
 0x611   :  { %4668 = vmatmul.mubr.msk.f32.vlgmr.msra.gmra.mrb[6].mxu0 %vm351_vm2, %v788_v2  ;;  %5086 = vmatprep.subr.bf16.mxu1 %v5683_v13 }
 0x612   :  { %5079 = vmatpush3.bf16.msra.mxu0 %v5926_v16  ;;  %4689 = vmatprep.mubr.msk.f32.mxu0 %vm5684_vm1, %v5685_v20 }
 0x613   :  { %5080 = vmatprep.subr.bf16.mxu0 %v5683_v13 }
 0x614   :  { %5088 = vmatpush3.bf16.msra.mxu1 %v5937_v19 }
 0x615   :  { %5095 = vmatprep.subr.bf16.mxu1 %v5683_v13 }
 0x616   :  { %5082 = vmatpush3.bf16.msra.mxu0 %v5944_v21 }
 0x617   :  { %5089 = vmatprep.subr.bf16.mxu0 %v5683_v13 }
 0x6e2   :  { %v932_v3 = vpop.f32.mrb[6].mxu1 }
 0x6e3   :  { %v933_v4 = vadd.f32 %v5980_v30, %v932_v3  ;;  %v4680_v5 = vpop.f32.mrb[7].mxu1 }
 0x6e4   :  { %v857_v6 = vpop.f32.mrb[6].mxu0 }
 0x6e5   :  { %v967_v7 = vrot.slane %v933_v4, 6  ;;  %v858_v8 = vadd.f32 %v5986_v34, %v857_v6  ;;  %v4669_v9 = vpop.f32.mrb[7].mxu0 }
 0x6e7   :  { %v937_v10 = vrot.slane %v858_v8, 4  ;;  %976 = vrot.lane.b32.xlu0 %v967_v7, %s5686_s27  ;;  %v969_v11 = vadd.f32 %v967_v7, %v5991_v39 }
 0x6e9   :  { %946 = vrot.lane.b32.xlu1 %v937_v10, %s5686_s27  ;;  %v939_v14 = vadd.f32 %v937_v10, %v5994_v41  ;;  %v4333_v15 = vmul.f32 -1.442695, %v969_v11 }
 0x6eb   :  { %v4332_v17 = vmul.f32 -1.442695, %v939_v14  ;;  %5320 = vpow2.f32 %v4333_v15 }
 0x6ed   :  { %5322 = vpow2.f32 %v4332_v17 }
 0x6f5   :  { %v5321_v18 = vpop.eup %5320 }
 0x6f6   :  { %v973_v23 = vadd.f32 1.0, %v5321_v18 }
 0x6f7   :  { %v5323_v22 = vpop.eup %5322 }
 0x6f8   :  { %v943_v24 = vadd.f32 1.0, %v5323_v22  ;;  %5324 = vrcp.f32 %v973_v23 }
 0x6fa   :  { %5326 = vrcp.f32 %v943_v24 }
 0x702   :  { %v5325_v25 = vpop.eup %5324 }
 0x703   :  { %v986_v43 = vsub.f32 1.0, %v5325_v25  ;;  %v994_v46 = vmul.f32 %v5325_v25, %v992_v44 }
 0x704   :  { %v5327_v31 = vpop.eup %5326 }
 0x705   :  { %v956_v48 = vsub.f32 1.0, %v5327_v31  ;;  %v964_v52 = vmul.f32 %v5327_v31, %v962_v49 }
 0x759   :  { %v977_v27 = vpop.permute.xlu0 %976 }
 0x75a   :  { %v979_v29 = vmul.f32 %v5325_v25, %v977_v27 }
 0x75b   :  { %v947_v32 = vpop.permute.xlu1 %946 }
 0x75c   :  { %v949_v33 = vmul.f32 %v5327_v31, %v947_v32  ;;  %981 = vrot.lane.b32.xlu0 %v979_v29, %s5686_s27 }
 0x75e   :  { %951 = vrot.lane.b32.xlu1 %v949_v33, %s5686_s27 }
 0x7ce   :  { %v982_v35 = vpop.permute.xlu0 %981 }
 0x7cf   :  { %v984_v36 = vadd.f32 %v982_v35, %v5991_v39 }
 0x7d0   :  { %v952_v37 = vpop.permute.xlu1 %951 }
 0x7d1   :  { %5328 = vtanh.f32 %v984_v36  ;;  %v954_v38 = vadd.f32 %v952_v37, %v5994_v41 }
 0x7d3   :  { %5330 = vtanh.f32 %v954_v38 }
 0x7db   :  { %v5329_v40 = vpop.eup %5328 }
 0x7dc   :  { %988 = vrot.lane.b32.xlu0 %v5329_v40, %s5687_s4 }
 0x7dd   :  { %v5331_v42 = vpop.eup %5330 }
 0x7de   :  { %958 = vrot.lane.b32.xlu1 %v5331_v42, %s5687_s4 }
 0x84e   :  { %v989_v45 = vpop.permute.xlu0 %988 }
 0x84f   :  { %v991_v47 = vmul.f32 %v989_v45, %v986_v43 }
 0x850   :  { %v959_v50 = vpop.permute.xlu1 %958 }
 0x851   :  { %v6076_v51 = vadd.f32 %v994_v46, %v991_v47  ;;  %v961_v53 = vmul.f32 %v959_v50, %v956_v48 }
 0x853   :  { %v6078_v54 = vadd.f32 %v964_v52, %v961_v53  ;;  %v1081_v55 = vrot.slane %v6076_v51, 2 }
 0x855   :  { %1082 = vrot.lane.b32.xlu0 %v1081_v55, %s5687_s4  ;;  %v1006_v56 = vrot.slane %v6078_v54, 4 }
 0x857   :  { %1007 = vrot.lane.b32.xlu1 %v1006_v56, %s5687_s4 }
 0x8c7   :  { %v1083_v57 = vpop.permute.xlu0 %1082 }
 0x8c8   :  { %4701 = vmatmul.mubr.msk.f32.vlgmr.msra.gmra.mrb[8].mxu1 %vm351_vm2, %v1083_v57 }
 0x8c9   :  { %v1008_v59 = vpop.permute.xlu1 %1007  ;;  %5097 = vmatpush3.bf16.msra.mxu1 %v5923_v12  ;;  %4722 = vmatprep.mubr.msk.f32.mxu1 %vm5684_vm1, %v5685_v20 }
 0x8ca   :  { %4690 = vmatmul.mubr.msk.f32.vlgmr.msra.gmra.mrb[8].mxu0 %vm351_vm2, %v1008_v59  ;;  %5098 = vmatprep.subr.bf16.mxu1 %v5683_v13 }
 0x8cb   :  { %5091 = vmatpush3.bf16.msra.mxu0 %v5926_v16  ;;  %4711 = vmatprep.mubr.msk.f32.mxu0 %vm5684_vm1, %v5685_v20 }
 0x8cc   :  { %5092 = vmatprep.subr.bf16.mxu0 %v5683_v13 }
 0x8cd   :  { %5100 = vmatpush3.bf16.msra.mxu1 %v5937_v19 }
 0x8ce   :  { %5107 = vmatprep.subr.bf16.mxu1 %v5683_v13 }
 0x8cf   :  { %5094 = vmatpush3.bf16.msra.mxu0 %v5944_v21 }
 0x8d0   :  { %5101 = vmatprep.subr.bf16.mxu0 %v5683_v13 }
 0x99b   :  { %v1152_v60 = vpop.f32.mrb[8].mxu1 }
 0x99c   :  { %v1153_v62 = vadd.f32 %v5980_v30, %v1152_v60  ;;  %v4702_v63 = vpop.f32.mrb[9].mxu1 }
 0x99d   :  { %v1077_v0 = vpop.f32.mrb[8].mxu0 }
 0x99e   :  { %v1078_v2 = vadd.f32 %v5986_v34, %v1077_v0  ;;  %1194 = vrot.lane.b32.xlu0 %v1153_v62, %s5686_s27  ;;  %v4691_v3 = vpop.f32.mrb[9].mxu0  ;;  %v1186_v5 = vadd.f32 %v1153_v62, %v5991_v39 }
 0x9a0   :  { %v1157_v4 = vrot.slane %v1078_v2, 2  ;;  %v4337_v6 = vmul.f32 -1.442695, %v1186_v5 }
 0x9a2   :  { %1166 = vrot.lane.b32.xlu1 %v1157_v4, %s5686_s27  ;;  %v1159_v7 = vadd.f32 %v1157_v4, %v5994_v41  ;;  %5332 = vpow2.f32 %v4337_v6 }
 0x9a4   :  { %v4336_v8 = vmul.f32 -1.442695, %v1159_v7 }
 0x9a6   :  { %5334 = vpow2.f32 %v4336_v8 }
 0x9ac   :  { %v5333_v9 = vpop.eup %5332 }
 0x9ad   :  { %v1190_v10 = vadd.f32 1.0, %v5333_v9 }
 0x9af   :  { %5336 = vrcp.f32 %v1190_v10 }
 0x9b0   :  { %v5335_v11 = vpop.eup %5334 }
 0x9b1   :  { %v1163_v14 = vadd.f32 1.0, %v5335_v11 }
 0x9b3   :  { %5338 = vrcp.f32 %v1163_v14 }
 0x9b9   :  { %v5337_v15 = vpop.eup %5336 }
 0x9ba   :  { %v1204_v35 = vsub.f32 1.0, %v5337_v15  ;;  %v1211_v37 = vmul.f32 %v5337_v15, %v1081_v55 }
 0x9bd   :  { %v5339_v22 = vpop.eup %5338 }
 0x9be   :  { %v1176_v42 = vsub.f32 1.0, %v5339_v22 }
 0xa10   :  { %v1195_v17 = vpop.permute.xlu0 %1194 }
 0xa11   :  { %v1197_v18 = vmul.f32 %v5337_v15, %v1195_v17 }
 0xa13   :  { %1199 = vrot.lane.b32.xlu0 %v1197_v18, %s5686_s27 }
 0xa14   :  { %v1167_v23 = vpop.permute.xlu1 %1166 }
 0xa15   :  { %v1169_v24 = vmul.f32 %v5339_v22, %v1167_v23 }
 0xa17   :  { %1171 = vrot.lane.b32.xlu1 %v1169_v24, %s5686_s27 }
 0xa85   :  { %v1200_v25 = vpop.permute.xlu0 %1199 }
 0xa86   :  { %v1202_v27 = vadd.f32 %v1200_v25, %v5991_v39  ;;  %v1182_v39 = vrot.slane %v6078_v54, 6 }
 0xa88   :  { %5340 = vtanh.f32 %v1202_v27  ;;  %v1184_v44 = vmul.f32 %v5339_v22, %v1182_v39 }
 0xa89   :  { %v1172_v29 = vpop.permute.xlu1 %1171 }
 0xa8a   :  { %v1174_v31 = vadd.f32 %v1172_v29, %v5994_v41 }
 0xa8c   :  { %5342 = vtanh.f32 %v1174_v31 }
 0xa92   :  { %v5341_v32 = vpop.eup %5340 }
 0xa93   :  { %1206 = vrot.lane.b32.xlu0 %v5341_v32, %s5687_s4 }
 0xa96   :  { %v5343_v33 = vpop.eup %5342 }
 0xa97   :  { %1178 = vrot.lane.b32.xlu1 %v5343_v33, %s5687_s4 }
 0xb05   :  { %v1207_v36 = vpop.permute.xlu0 %1206 }
 0xb06   :  { %v1209_v38 = vmul.f32 %v1207_v36, %v1204_v35 }
 0xb08   :  { %v6110_v40 = vadd.f32 %v1211_v37, %v1209_v38 }
 0xb09   :  { %v1179_v43 = vpop.permute.xlu1 %1178 }
 0xb0a   :  { %v1181_v45 = vmul.f32 %v1179_v43, %v1176_v42  ;;  %1219 = vrot.lane.b32.xlu0 %v6110_v40, %s5687_s4  ;;  %v1423_v23 = vrot.slane %v6110_v40, 2 }
 0xb0c   :  { %v6115_v41 = vadd.f32 %v1184_v44, %v1181_v45 }
 0xb0e   :  { %v1223_v46 = vrot.slane %v6115_v41, 6 }
 0xb10   :  { %1224 = vrot.lane.b32.xlu1 %v1223_v46, %s5687_s4 }
 0xb7c   :  { %v1220_v47 = vpop.permute.xlu0 %1219 }
 0xb7d   :  { %1222 = vst.msk [vmem:[#allocation3 + $0x8] sm:$0x3] %vm559_vm3, %v1220_v47  ;;  %4723 = vmatmul.mubr.msk.f32.vlgmr.msra.gmra.mrb[10].mxu1 %vm351_vm2, %v1220_v47 }
 0xb7e   :  { %5109 = vmatpush3.bf16.msra.mxu1 %v5923_v12  ;;  %4744 = vmatprep.mubr.msk.f32.mxu1 %vm5684_vm1, %v5685_v20 }
 0xb7f   :  { %5110 = vmatprep.subr.bf16.mxu1 %v5683_v13 }
 0xb82   :  { %v1225_v48 = vpop.permute.xlu1 %1224  ;;  %5112 = vmatpush3.bf16.msra.mxu1 %v5937_v19 }
 0xb83   :  { %4712 = vmatmul.mubr.msk.f32.vlgmr.msra.gmra.mrb[10].mxu0 %vm351_vm2, %v1225_v48  ;;  %5119 = vmatprep.subr.bf16.mxu1 %v5683_v13 }
 0xb84   :  { %5103 = vmatpush3.bf16.msra.mxu0 %v5926_v16  ;;  %4733 = vmatprep.mubr.msk.f32.mxu0 %vm5684_vm1, %v5685_v20 }
 0xb85   :  { %5104 = vmatprep.subr.bf16.mxu0 %v5683_v13 }
 0xb88   :  { %5106 = vmatpush3.bf16.msra.mxu0 %v5944_v21 }
 0xb89   :  { %5113 = vmatprep.subr.bf16.mxu0 %v5683_v13 }
 0xc50   :  { %v1366_v49 = vpop.f32.mrb[10].mxu1 }
 0xc51   :  { %v1367_v50 = vadd.f32 %v5980_v30, %v1366_v49  ;;  %v4724_v52 = vpop.f32.mrb[11].mxu1 }
 0xc53   :  { %v1398_v53 = vrot.slane %v1367_v50, 2 }
 0xc55   :  { %1407 = vrot.lane.b32.xlu0 %v1398_v53, %s5686_s27  ;;  %v1400_v59 = vadd.f32 %v1398_v53, %v5973_v26 }
 0xc56   :  { %v1294_v55 = vpop.f32.mrb[10].mxu0 }
 0xc57   :  { %v1295_v56 = vadd.f32 %v5986_v34, %v1294_v55  ;;  %v4713_v57 = vpop.f32.mrb[11].mxu0  ;;  %v4341_v60 = vmul.f32 -1.442695, %v1400_v59 }
 0xc59   :  { %1378 = vrot.lane.b32.xlu1 %v1295_v56, %s5686_s27  ;;  %v1370_v62 = vadd.f32 %v1295_v56, %v5975_v28  ;;  %5344 = vpow2.f32 %v4341_v60 }
 0xc5b   :  { %v4340_v63 = vmul.f32 -1.442695, %v1370_v62 }
 0xc5d   :  { %5346 = vpow2.f32 %v4340_v63 }
 0xc63   :  { %v5345_v0 = vpop.eup %5344 }
 0xc64   :  { %v1404_v2 = vadd.f32 1.0, %v5345_v0 }
 0xc66   :  { %5348 = vrcp.f32 %v1404_v2 }
 0xc67   :  { %v5347_v3 = vpop.eup %5346 }
 0xc68   :  { %v1374_v4 = vadd.f32 1.0, %v5347_v3 }
 0xc6a   :  { %5350 = vrcp.f32 %v1374_v4 }
 0xc70   :  { %v5349_v5 = vpop.eup %5348 }
 0xc71   :  { %v1417_v24 = vsub.f32 1.0, %v5349_v5  ;;  %v1425_v27 = vmul.f32 %v5349_v5, %v1423_v23 }
 0xc74   :  { %v5351_v8 = vpop.eup %5350 }
 0xc75   :  { %v1388_v32 = vsub.f32 1.0, %v5351_v8  ;;  %v1395_v35 = vmul.f32 %v5351_v8, %v1223_v46 }
 0xcc7   :  { %v1408_v6 = vpop.permute.xlu0 %1407 }
 0xcc8   :  { %v1410_v7 = vmul.f32 %v5349_v5, %v1408_v6 }
 0xcca   :  { %1412 = vrot.lane.b32.xlu0 %v1410_v7, %s5686_s27 }
 0xccb   :  { %v1379_v9 = vpop.permute.xlu1 %1378 }
 0xccc   :  { %v1381_v10 = vmul.f32 %v5351_v8, %v1379_v9 }
 0xcce   :  { %1383 = vrot.lane.b32.xlu1 %v1381_v10, %s5686_s27 }
 0xd3c   :  { %v1413_v11 = vpop.permute.xlu0 %1412 }
 0xd3d   :  { %v1415_v14 = vadd.f32 %v1413_v11, %v5973_v26 }
 0xd3f   :  { %5352 = vtanh.f32 %v1415_v14 }
 0xd40   :  { %v1384_v15 = vpop.permute.xlu1 %1383 }
 0xd41   :  { %v1386_v17 = vadd.f32 %v1384_v15, %v5975_v28 }
 0xd43   :  { %5354 = vtanh.f32 %v1386_v17 }
 0xd49   :  { %v5353_v18 = vpop.eup %5352 }
 0xd4a   :  { %1419 = vrot.lane.b32.xlu0 %v5353_v18, %s5687_s4 }
 0xd4d   :  { %v5355_v22 = vpop.eup %5354 }
 0xd4e   :  { %1390 = vrot.lane.b32.xlu1 %v5355_v22, %s5687_s4 }
 0xdbc   :  { %v1420_v25 = vpop.permute.xlu0 %1419 }
 0xdbd   :  { %v1422_v29 = vmul.f32 %v1420_v25, %v1417_v24 }
 0xdbf   :  { %v6149_v31 = vadd.f32 %v1425_v27, %v1422_v29 }
 0xdc0   :  { %v1391_v33 = vpop.permute.xlu1 %1390 }
 0xdc1   :  { %v1393_v36 = vmul.f32 %v1391_v33, %v1388_v32  ;;  %v1509_v37 = vrot.slane %v6149_v31, 6  ;;  %v1640_v14 = vrot.slane %v6149_v31, 2 }
 0xdc3   :  { %v6154_v38 = vadd.f32 %v1395_v35, %v1393_v36  ;;  %1510 = vrot.lane.b32.xlu0 %v1509_v37, %s5687_s4 }
 0xdc5   :  { %1428 = vrot.lane.b32.xlu1 %v6154_v38, %s5687_s4  ;;  %v1610_v17 = vrot.slane %v6154_v38, 6 }
 0xe35   :  { %v1511_v40 = vpop.permute.xlu0 %1510 }
 0xe36   :  { %4745 = vmatmul.mubr.msk.f32.vlgmr.msra.gmra.mrb[12].mxu1 %vm351_vm2, %v1511_v40 }
 0xe37   :  { %v1429_v42 = vpop.permute.xlu1 %1428  ;;  %5121 = vmatpush3.bf16.msra.mxu1 %v5923_v12  ;;  %4766 = vmatprep.mubr.msk.f32.mxu1 %vm5684_vm1, %v5685_v20 }
 0xe38   :  { %1431 = vst.msk [vmem:[#allocation2 + $0x8] sm:$0x3] %vm559_vm3, %v1429_v42  ;;  %4734 = vmatmul.mubr.msk.f32.vlgmr.msra.gmra.mrb[12].mxu0 %vm351_vm2, %v1429_v42  ;;  %5122 = vmatprep.subr.bf16.mxu1 %v5683_v13 }
 0xe39   :  { %5115 = vmatpush3.bf16.msra.mxu0 %v5926_v16  ;;  %4755 = vmatprep.mubr.msk.f32.mxu0 %vm5684_vm1, %v5685_v20 }
 0xe3a   :  { %5116 = vmatprep.subr.bf16.mxu0 %v5683_v13 }
 0xe3b   :  { %5124 = vmatpush3.bf16.msra.mxu1 %v5937_v19 }
 0xe3c   :  { %5131 = vmatprep.subr.bf16.mxu1 %v5683_v13 }
 0xe3d   :  { %5118 = vmatpush3.bf16.msra.mxu0 %v5944_v21 }
 0xe3e   :  { %5125 = vmatprep.subr.bf16.mxu0 %v5683_v13 }
 0xf09   :  { %v1580_v39 = vpop.f32.mrb[12].mxu1 }
 0xf0a   :  { %v1581_v43 = vadd.f32 %v5980_v30, %v1580_v39  ;;  %v4746_v44 = vpop.f32.mrb[13].mxu1 }
 0xf0b   :  { %v1505_v45 = vpop.f32.mrb[12].mxu0 }
 0xf0c   :  { %v1615_v46 = vrot.slane %v1581_v43, 4  ;;  %v1506_v47 = vadd.f32 %v5986_v34, %v1505_v45  ;;  %v4735_v48 = vpop.f32.mrb[13].mxu0 }
 0xf0e   :  { %v1585_v49 = vrot.slane %v1506_v47, 6  ;;  %1624 = vrot.lane.b32.xlu0 %v1615_v46, %s5686_s27  ;;  %v1617_v50 = vadd.f32 %v1615_v46, %v5973_v26 }
 0xf10   :  { %1594 = vrot.lane.b32.xlu1 %v1585_v49, %s5686_s27  ;;  %v1587_v52 = vadd.f32 %v1585_v49, %v5975_v28  ;;  %v4345_v53 = vmul.f32 -1.442695, %v1617_v50 }
 0xf12   :  { %v4344_v55 = vmul.f32 -1.442695, %v1587_v52  ;;  %5356 = vpow2.f32 %v4345_v53 }
 0xf14   :  { %5358 = vpow2.f32 %v4344_v55 }
 0xf1c   :  { %v5357_v56 = vpop.eup %5356 }
 0xf1d   :  { %v1621_v59 = vadd.f32 1.0, %v5357_v56 }
 0xf1e   :  { %v5359_v57 = vpop.eup %5358 }
 0xf1f   :  { %v1591_v60 = vadd.f32 1.0, %v5359_v57  ;;  %5360 = vrcp.f32 %v1621_v59 }
 0xf21   :  { %5362 = vrcp.f32 %v1591_v60 }
 0xf29   :  { %v5361_v62 = vpop.eup %5360 }
 0xf2a   :  { %v1634_v11 = vsub.f32 1.0, %v5361_v62  ;;  %v1642_v18 = vmul.f32 %v5361_v62, %v1640_v14 }
 0xf2b   :  { %v5363_v2 = vpop.eup %5362 }
 0xf2c   :  { %v1604_v23 = vsub.f32 1.0, %v5363_v2  ;;  %v1612_v27 = vmul.f32 %v5363_v2, %v1610_v17 }
 0xf80   :  { %v1625_v63 = vpop.permute.xlu0 %1624 }
 0xf81   :  { %v1627_v0 = vmul.f32 %v5361_v62, %v1625_v63 }
 0xf82   :  { %v1595_v3 = vpop.permute.xlu1 %1594 }
 0xf83   :  { %v1597_v4 = vmul.f32 %v5363_v2, %v1595_v3  ;;  %1629 = vrot.lane.b32.xlu0 %v1627_v0, %s5686_s27 }
 0xf85   :  { %1599 = vrot.lane.b32.xlu1 %v1597_v4, %s5686_s27 }
 0xff5   :  { %v1630_v5 = vpop.permute.xlu0 %1629 }
 0xff6   :  { %v1632_v6 = vadd.f32 %v1630_v5, %v5973_v26 }
 0xff7   :  { %v1600_v7 = vpop.permute.xlu1 %1599 }
 0xff8   :  { %5364 = vtanh.f32 %v1632_v6  ;;  %v1602_v8 = vadd.f32 %v1600_v7, %v5975_v28 }
 0xffa   :  { %5366 = vtanh.f32 %v1602_v8 }
0x1002   :  { %v5365_v9 = vpop.eup %5364 }
0x1003   :  { %1636 = vrot.lane.b32.xlu0 %v5365_v9, %s5687_s4 }
0x1004   :  { %v5367_v10 = vpop.eup %5366 }
0x1005   :  { %1606 = vrot.lane.b32.xlu1 %v5367_v10, %s5687_s4 }
0x1075   :  { %v1637_v15 = vpop.permute.xlu0 %1636 }
0x1076   :  { %v1639_v22 = vmul.f32 %v1637_v15, %v1634_v11 }
0x1077   :  { %v1607_v24 = vpop.permute.xlu1 %1606 }
0x1078   :  { %v6188_v25 = vadd.f32 %v1642_v18, %v1639_v22  ;;  %v1609_v29 = vmul.f32 %v1607_v24, %v1604_v23 }
0x107a   :  { %v6190_v32 = vadd.f32 %v1612_v27, %v1609_v29  ;;  %v1729_v33 = vrot.slane %v6188_v25, 4  ;;  %v1860_v5 = vrot.slane %v6188_v25, 2 }
0x107c   :  { %1730 = vrot.lane.b32.xlu0 %v1729_v33, %s5687_s4  ;;  %v1654_v35 = vrot.slane %v6190_v32, 2  ;;  %v1830_v10 = vrot.slane %v6190_v32, 6 }
0x107e   :  { %1655 = vrot.lane.b32.xlu1 %v1654_v35, %s5687_s4 }
0x10ee   :  { %v1731_v36 = vpop.permute.xlu0 %1730 }
0x10ef   :  { %4767 = vmatmul.mubr.msk.f32.vlgmr.msra.gmra.mrb[14].mxu1 %vm351_vm2, %v1731_v36 }
0x10f0   :  { %v1656_v37 = vpop.permute.xlu1 %1655  ;;  %5133 = vmatpush3.bf16.msra.mxu1 %v5923_v12  ;;  %4788 = vmatprep.mubr.msk.f32.mxu1 %vm5684_vm1, %v5685_v20 }
0x10f1   :  { %4756 = vmatmul.mubr.msk.f32.vlgmr.msra.gmra.mrb[14].mxu0 %vm351_vm2, %v1656_v37  ;;  %5134 = vmatprep.subr.bf16.mxu1 %v5683_v13 }
0x10f2   :  { %5127 = vmatpush3.bf16.msra.mxu0 %v5926_v16  ;;  %4777 = vmatprep.mubr.msk.f32.mxu0 %vm5684_vm1, %v5685_v20 }
0x10f3   :  { %5128 = vmatprep.subr.bf16.mxu0 %v5683_v13 }
0x10f4   :  { %5136 = vmatpush3.bf16.msra.mxu1 %v5937_v19 }
0x10f6   :  { %5130 = vmatpush3.bf16.msra.mxu0 %v5944_v21 }
0x11c2   :  { %v1800_v38 = vpop.f32.mrb[14].mxu1 }
0x11c3   :  { %v1801_v12 = vadd.f32 %v5980_v30, %v1800_v38  ;;  %v4768_v40 = vpop.f32.mrb[15].mxu1 }
0x11c4   :  { %v1725_v42 = vpop.f32.mrb[14].mxu0 }
0x11c5   :  { %v1835_v39 = vrot.slane %v1801_v12, 6  ;;  %v1726_v43 = vadd.f32 %v5986_v34, %v1725_v42  ;;  %v4757_v44 = vpop.f32.mrb[15].mxu0 }
0x11c7   :  { %v1805_v45 = vrot.slane %v1726_v43, 4  ;;  %1844 = vrot.lane.b32.xlu0 %v1835_v39, %s5686_s27  ;;  %v1837_v16 = vadd.f32 %v1835_v39, %v5973_v26 }
0x11c9   :  { %1814 = vrot.lane.b32.xlu1 %v1805_v45, %s5686_s27  ;;  %v1807_v19 = vadd.f32 %v1805_v45, %v5975_v28  ;;  %v4349_v46 = vmul.f32 -1.442695, %v1837_v16 }
0x11cb   :  { %v4348_v21 = vmul.f32 -1.442695, %v1807_v19  ;;  %5368 = vpow2.f32 %v4349_v46 }
0x11cd   :  { %5370 = vpow2.f32 %v4348_v21 }
0x11d5   :  { %v5369_v47 = vpop.eup %5368 }
0x11d6   :  { %v1841_v49 = vadd.f32 1.0, %v5369_v47 }
0x11d7   :  { %v5371_v48 = vpop.eup %5370 }
0x11d8   :  { %v1811_v50 = vadd.f32 1.0, %v5371_v48  ;;  %5372 = vrcp.f32 %v1841_v49 }
0x11da   :  { %5374 = vrcp.f32 %v1811_v50 }
0x11e2   :  { %v5373_v52 = vpop.eup %5372 }
0x11e3   :  { %v1854_v4 = vsub.f32 1.0, %v5373_v52  ;;  %v1862_v7 = vmul.f32 %v5373_v52, %v1860_v5 }
0x11e4   :  { %v5375_v56 = vpop.eup %5374 }
0x11e5   :  { %v1824_v9 = vsub.f32 1.0, %v5375_v56  ;;  %v1832_v15 = vmul.f32 %v5375_v56, %v1830_v10 }
0x1239   :  { %v1845_v53 = vpop.permute.xlu0 %1844 }
0x123a   :  { %v1847_v55 = vmul.f32 %v5373_v52, %v1845_v53 }
0x123b   :  { %v1815_v57 = vpop.permute.xlu1 %1814 }
0x123c   :  { %v1817_v59 = vmul.f32 %v5375_v56, %v1815_v57  ;;  %1849 = vrot.lane.b32.xlu0 %v1847_v55, %s5686_s27 }
0x123e   :  { %1819 = vrot.lane.b32.xlu1 %v1817_v59, %s5686_s27  ;;  %v2281_v59 = vld [vmem:[#allocation13 + $0x38] sm:$0xff] }
0x12ae   :  { %v1850_v60 = vpop.permute.xlu0 %1849 }
0x12af   :  { %v1852_v62 = vadd.f32 %v1850_v60, %v5973_v26 }
0x12b0   :  { %v1820_v63 = vpop.permute.xlu1 %1819 }
0x12b1   :  { %5376 = vtanh.f32 %v1852_v62  ;;  %v1822_v0 = vadd.f32 %v1820_v63, %v5975_v28 }
0x12b3   :  { %5378 = vtanh.f32 %v1822_v0  ;;  %v2095_v0 = vld [vmem:[%s6698_s9] sm:$0xff] }
0x12bb   :  { %v5377_v2 = vpop.eup %5376 }
0x12bc   :  { %1856 = vrot.lane.b32.xlu0 %v5377_v2, %s5687_s4  ;;  %v2096_v2 = vld [vmem:[%s6698_s9 + $0x8] sm:$0xff] }
0x12bd   :  { %v5379_v3 = vpop.eup %5378 }
0x12be   :  { %1826 = vrot.lane.b32.xlu1 %v5379_v3, %s5687_s4  ;;  %v2274_v3 = vld [vmem:[#allocation13] sm:$0xff] }
0x132e   :  { %v1857_v6 = vpop.permute.xlu0 %1856 }
0x132f   :  { %v1859_v8 = vmul.f32 %v1857_v6, %v1854_v4  ;;  %v5145_v6 = vpack.c.bf16 %v2096_v2, %v2095_v0 }
0x1330   :  { %v1827_v11 = vpop.permute.xlu1 %1826 }
0x1331   :  { %v6222_v14 = vadd.f32 %v1862_v7, %v1859_v8  ;;  %v1829_v17 = vmul.f32 %v1827_v11, %v1824_v9  ;;  %v2275_v7 = vld [vmem:[#allocation13 + $0x8] sm:$0xff] }
0x1332   :  { %v5161_v8 = vpack.c.bf16 %v2275_v7, %v2274_v3 }
0x1333   :  { %v6224_v18 = vadd.f32 %v1832_v15, %v1829_v17  ;;  %v1949_v22 = vrot.slane %v6222_v14, 2 }
0x1335   :  { %1950 = vrot.lane.b32.xlu0 %v1949_v22, %s5687_s4  ;;  %v1874_v23 = vrot.slane %v6224_v18, 4  ;;  %v2050_v11 = vrot.slane %v6224_v18, 6 }
0x1337   :  { %1875 = vrot.lane.b32.xlu1 %v1874_v23, %s5687_s4 }
0x13a7   :  { %v1951_v24 = vpop.permute.xlu0 %1950 }
0x13a8   :  { %4789 = vmatmul.mubr.msk.f32.vlgmr.msra.gmra.mrb[16].mxu1 %vm351_vm2, %v1951_v24 }
0x13a9   :  { %v1876_v27 = vpop.permute.xlu1 %1875 }
0x13aa   :  { %4778 = vmatmul.mubr.msk.f32.vlgmr.msra.gmra.mrb[16].mxu0 %vm351_vm2, %v1876_v27 }
0x147b   :  { %v2020_v29 = vpop.f32.mrb[16].mxu1 }
0x147c   :  { %v2021_v33 = vadd.f32 %v5980_v30, %v2020_v29  ;;  %v4790_v35 = vpop.f32.mrb[17].mxu1 }
0x147d   :  { %v1945_v36 = vpop.f32.mrb[16].mxu0 }
0x147e   :  { %v1946_v37 = vadd.f32 %v5986_v34, %v1945_v36  ;;  %2062 = vrot.lane.b32.xlu0 %v2021_v33, %s5686_s27  ;;  %v4779_v38 = vpop.f32.mrb[17].mxu0  ;;  %v2054_v40 = vadd.f32 %v2021_v33, %v5973_v26 }
0x1480   :  { %v2025_v12 = vrot.slane %v1946_v37, 2  ;;  %v4353_v42 = vmul.f32 -1.442695, %v2054_v40  ;;  %v2276_v40 = vld [vmem:[#allocation13 + $0x10] sm:$0xff] }
0x1482   :  { %2034 = vrot.lane.b32.xlu1 %v2025_v12, %s5686_s27  ;;  %v2027_v39 = vadd.f32 %v2025_v12, %v5975_v28  ;;  %5380 = vpow2.f32 %v4353_v42  ;;  %v2277_v42 = vld [vmem:[#allocation13 + $0x18] sm:$0xff] }
0x1484   :  { %v4352_v43 = vmul.f32 -1.442695, %v2027_v39 }
0x1486   :  { %5382 = vpow2.f32 %v4352_v43 }
0x148c   :  { %v5381_v44 = vpop.eup %5380 }
0x148d   :  { %v2058_v30 = vadd.f32 1.0, %v5381_v44 }
0x148f   :  { %5384 = vrcp.f32 %v2058_v30  ;;  %v5165_v30 = vpack.c.bf16 %v2277_v42, %v2276_v40 }
0x1490   :  { %v5383_v45 = vpop.eup %5382 }
0x1491   :  { %v2031_v16 = vadd.f32 1.0, %v5383_v45 }
0x1493   :  { %5386 = vrcp.f32 %v2031_v16 }
0x1499   :  { %v5385_v34 = vpop.eup %5384 }
0x149a   :  { %v2072_v62 = vsub.f32 1.0, %v5385_v34  ;;  %v2079_v4 = vmul.f32 %v5385_v34, %v1949_v22 }
0x149d   :  { %v6241_v21 = vpop.eup %5386 }
0x149e   :  { %v2044_v10 = vsub.f32 1.0, %v6241_v21  ;;  %v2052_v23 = vmul.f32 %v6241_v21, %v2050_v11 }
0x14f0   :  { %v2063_v19 = vpop.permute.xlu0 %2062 }
0x14f1   :  { %v2065_v46 = vmul.f32 %v5385_v34, %v2063_v19  ;;  %v2441_v34 = vld [vmem:[#allocation12] sm:$0xff]  ;;  %v2442_v19 = vld [vmem:[#allocation12 + $0x8] sm:$0xff] }
0x14f3   :  { %2067 = vrot.lane.b32.xlu0 %v2065_v46, %s5686_s27  ;;  %v2445_v46 = vld [vmem:[#allocation15] sm:$0xff] }
0x14f4   :  { %v2035_v47 = vpop.permute.xlu1 %2034 }
0x14f5   :  { %v2037_v48 = vmul.f32 %v6241_v21, %v2035_v47  ;;  %v2446_v21 = vld [vmem:[#allocation15 + $0x8] sm:$0xff] }
0x14f7   :  { %2039 = vrot.lane.b32.xlu1 %v2037_v48, %s5686_s27  ;;  %v6323_v48 = vpack.c.bf16 %v2442_v19, %v2441_v34 }
0x1565   :  { %v2068_v49 = vpop.permute.xlu0 %2067 }
0x1566   :  { %v2070_v50 = vadd.f32 %v2068_v49, %v5973_v26  ;;  %v2099_v26 = vld [vmem:[%s6698_s9 + $0x20] sm:$0xff]  ;;  %v6325_v49 = vpack.c.bf16 %v2446_v21, %v2445_v46 }
0x1568   :  { %5388 = vtanh.f32 %v2070_v50  ;;  %v2443_v50 = vld [vmem:[#allocation12 + $0x10] sm:$0xff] }
0x1569   :  { %v2040_v52 = vpop.permute.xlu1 %2039 }
0x156a   :  { %v2042_v53 = vadd.f32 %v2040_v52, %v5975_v28  ;;  %v2100_v28 = vld [vmem:[%s6698_s9 + $0x28] sm:$0xff] }
0x156b   :  { %v2444_v52 = vld [vmem:[#allocation12 + $0x18] sm:$0xff] }
0x156c   :  { %5390 = vtanh.f32 %v2042_v53  ;;  %v2447_v53 = vld [vmem:[#allocation15 + $0x10] sm:$0xff] }
0x1572   :  { %v5389_v55 = vpop.eup %5388 }
0x1573   :  { %2074 = vrot.lane.b32.xlu0 %v5389_v55, %s5687_s4  ;;  %v2448_v55 = vld [vmem:[#allocation15 + $0x18] sm:$0xff] }
0x1576   :  { %v5391_v56 = vpop.eup %5390 }
0x1577   :  { %1433 = vrot.lane.b32.xlu0 %v6149_v31, %s5687_s4  ;;  %2046 = vrot.lane.b32.xlu1 %v5391_v56, %s5687_s4  ;;  %v5137_v31 = vpack.c.bf16 %v2100_v28, %v2099_v26  ;;  %v6331_v26 = vpack.c.bf16 %v2444_v52, %v2443_v50  ;;  %v6333_v28 = vpack.c.bf16 %v2448_v55, %v2447_v53 }
0x1579   :  { %5138 = vmatprep.subr.bf16.mxu0 %v5137_v31 }
0x157a   :  { %5140 = vmatpush3.bf16.msra.mxu0 %v5137_v31  ;;  %v4363_v31 = vld [vmem:[%s6704_s15] ss:$0 sm:$0xff] }
0x157b   :  { %1870 = vrot.lane.b32.xlu0 %v6222_v14, %s5687_s4  ;;  %1650 = vrot.lane.b32.xlu1 %v6188_v25, %s5687_s4 }
0x157f   :  { %562 = vrot.lane.b32.xlu0 %v6003_v1, %s5687_s4  ;;  %781 = vrot.lane.b32.xlu1 %v6040_v58, %s5687_s4  ;;  %v2278_v1 = vld [vmem:[#allocation13 + $0x20] sm:$0xff]  ;;  %v2279_v58 = vld [vmem:[#allocation13 + $0x28] sm:$0xff] }
0x1580   :  { %v5153_v25 = vpack.c.bf16 %v2279_v58, %v2278_v1  ;;  %v4358_v1 = vld [vmem:[%s6700_s11] ss:$0 sm:$0xff] }
0x1582   :  { %5154 = vmatprep.subr.bf16.mxu1 %v5153_v25 }
0x1583   :  { %1002 = vrot.lane.b32.xlu0 %v6076_v51, %s5687_s4  ;;  %v2101_v51 = vld [vmem:[%s6698_s9 + $0x30] sm:$0xff]  ;;  %5156 = vmatpush3.bf16.msra.mxu1 %v5153_v25 }
0x1587   :  { %997 = vrot.lane.b32.xlu0 %v6078_v54, %s5687_s4  ;;  %v2102_v54 = vld [vmem:[%s6698_s9 + $0x38] sm:$0xff] }
0x1588   :  { %v5141_v57 = vpack.c.bf16 %v2102_v54, %v2101_v51 }
0x158a   :  { %5142 = vmatprep.subr.bf16.mxu0 %v5141_v57 }
0x158b   :  { %1645 = vrot.lane.b32.xlu0 %v6190_v32, %s5687_s4  ;;  %v2280_v32 = vld [vmem:[#allocation13 + $0x30] sm:$0xff]  ;;  %5144 = vmatpush3.bf16.msra.mxu0 %v5141_v57 }
0x158c   :  { %v5157_v60 = vpack.c.bf16 %v2281_v59, %v2280_v32  ;;  %5146 = vmatprep.subr.bf16.mxu0 %v5145_v6  ;;  %v6372_v59 = vld [vmem:[%s6701_s12] ss:$0 sm:$0xff] }
0x158e   :  { %5158 = vmatprep.subr.bf16.mxu1 %v5157_v60 }
0x158f   :  { %5160 = vmatpush3.bf16.msra.mxu1 %v5157_v60  ;;  %v6377_v60 = vld [vmem:[%s6705_s16] ss:$0 sm:$0xff] }
0x1590   :  { %5162 = vmatprep.subr.bf16.mxu1 %v5161_v8 }
0x15e5   :  { %v2075_v63 = vpop.permute.xlu0 %2074 }
0x15e6   :  { %v2077_v5 = vmul.f32 %v2075_v63, %v2072_v62 }
0x15e8   :  { %v2080_v9 = vadd.f32 %v2079_v4, %v2077_v5 }
0x15e9   :  { %v1434_v15 = vpop.permute.xlu0 %1433  ;;  %v2047_v17 = vpop.permute.xlu1 %2046 }
0x15ea   :  { %1436 = vst.msk [vmem:[#allocation3] sm:$0xc0] %vm565_vm4, %v1434_v15  ;;  %v2049_v14 = vmul.f32 %v2047_v17, %v2044_v10  ;;  %2087 = vrot.lane.b32.xlu1 %v2080_v9, %s5687_s4 }
0x15ec   :  { %v2053_v22 = vadd.f32 %v2052_v23, %v2049_v14 }
0x15ed   :  { %v1871_v24 = vpop.permute.xlu0 %1870  ;;  %v1651_v27 = vpop.permute.xlu1 %1650 }
0x15ee   :  { %1873 = vst.msk [vmem:[#allocation3] sm:$0xc] %vm778_vm5, %v1871_v24  ;;  %775 = vrot.lane.b32.xlu1 %v6042_v61, %s5687_s4  ;;  %2082 = vrot.lane.b32.xlu0 %v2053_v22, %s5687_s4 }
0x15ef   :  { %1653 = vst.msk [vmem:[#allocation3] sm:$0x30] %vm784_vm6, %v1651_v27 }
0x15f1   :  { %v563_v29 = vpop.permute.xlu0 %562  ;;  %v782_v33 = vpop.permute.xlu1 %781 }
0x15f2   :  { %566 = vst.msk [vmem:[#allocation3 + $0x8] sm:$0xc0] %vm565_vm4, %v563_v29  ;;  %1214 = vrot.lane.b32.xlu1 %v6115_v41, %s5687_s4  ;;  %v2097_v41 = vld [vmem:[%s6698_s9 + $0x10] sm:$0xff] }
0x15f3   :  { %785 = vst.msk [vmem:[#allocation3 + $0x8] sm:$0x30] %vm784_vm6, %v782_v33 }
0x15f5   :  { %v1003_v35 = vpop.permute.xlu0 %1002 }
0x15f6   :  { %1005 = vst.msk [vmem:[#allocation3 + $0x8] sm:$0xc] %vm778_vm5, %v1003_v35  ;;  %1865 = vrot.lane.b32.xlu1 %v6224_v18, %s5687_s4  ;;  %v2098_v18 = vld [vmem:[%s6698_s9 + $0x18] sm:$0xff] }
0x15f7   :  { %v5149_v44 = vpack.c.bf16 %v2098_v18, %v2097_v41 }
0x15f9   :  { %v998_v36 = vpop.permute.xlu0 %997 }
0x15fa   :  { %1000 = vst.msk [vmem:[#allocation2] sm:$0x30] %vm784_vm6, %v998_v36 }
0x15fd   :  { %v1646_v61 = vpop.permute.xlu0 %1645  ;;  %v2094_v45 = vld [vmem:[#allocation3 + $0x8] sm:$0xff] }
0x15fe   :  { %1648 = vst.msk [vmem:[#allocation2 + $0x8] sm:$0xc] %vm778_vm5, %v1646_v61 }
0x165c   :  { %v2088_v37 = vpop.permute.xlu1 %2087 }
0x165d   :  { %2090 = vst.msk [vmem:[#allocation3] sm:$0x3] %vm559_vm3, %v2088_v37 }
0x1660   :  { %v2083_v38 = vpop.permute.xlu0 %2082  ;;  %v776_v12 = vpop.permute.xlu1 %775 }
0x1661   :  { %2085 = vst.msk [vmem:[#allocation2 + $0x8] sm:$0xc0] %vm565_vm4, %v2083_v38 }
0x1662   :  { %779 = vst.msk [vmem:[#allocation2] sm:$0xc] %vm778_vm5, %v776_v12 }
0x1664   :  { %v1215_v39 = vpop.permute.xlu1 %1214  ;;  %v2093_v43 = vld [vmem:[#allocation3] sm:$0xff] }
0x1665   :  { %1217 = vst.msk [vmem:[#allocation2] sm:$0xc0] %vm565_vm4, %v1215_v39  ;;  %4799 = vmatprep.mubr.msk.f32.mxu0 %vm351_vm2, %v2093_v43  ;;  %4821 = vmatprep.mubr.msk.f32.mxu1 %vm351_vm2, %v2093_v43 }
0x1666   :  { %4800 = vmatmul.mubr.msk.f32.vlgmr.msra.gmra.mrb[18].mxu0 %vm351_vm2, %v2094_v45  ;;  %4822 = vmatmul.mubr.msk.f32.vlgmr.msra.gmra.mrb[18].mxu1 %vm351_vm2, %v2094_v45 }
0x1667   :  { %5148 = vmatpush3.bf16.msra.mxu0 %v5145_v6  ;;  %5164 = vmatpush3.bf16.msra.mxu1 %v5161_v8 }
0x1668   :  { %v1866_v16 = vpop.permute.xlu1 %1865  ;;  %5150 = vmatprep.subr.bf16.mxu0 %v5149_v44  ;;  %5166 = vmatprep.subr.bf16.mxu1 %v5165_v30 }
0x1669   :  { %1868 = vst.msk [vmem:[#allocation2 + $0x8] sm:$0x30] %vm784_vm6, %v1866_v16 }
0x166b   :  { %5152 = vmatpush3.bf16.msra.mxu0 %v5149_v44  ;;  %5168 = vmatpush3.bf16.msra.mxu1 %v5165_v30 }
0x166c   :  { %v2091_v47 = vld [vmem:[#allocation2] sm:$0xff]  ;;  %5169 = vmatprep.subr.bf16.mxu0 %v5683_v13  ;;  %5175 = vmatprep.subr.bf16.mxu1 %v5683_v13 }
0x166d   :  { %4810 = vmatprep.mubr.msk.f32.mxu0 %vm351_vm2, %v2091_v47  ;;  %4832 = vmatprep.mubr.msk.f32.mxu1 %vm351_vm2, %v2091_v47 }
0x1670   :  { %v2092_v56 = vld [vmem:[#allocation2 + $0x8] sm:$0xff] }
0x1671   :  { %4811 = vmatmul.mubr.msk.f32.vlgmr.msra.gmra.mrb[18].mxu0 %vm351_vm2, %v2092_v56  ;;  %4833 = vmatmul.mubr.msk.f32.vlgmr.msra.gmra.mrb[18].mxu1 %vm351_vm2, %v2092_v56 }
0x1672   :  { %5171 = vmatpush3.bf16.msra.mxu0 %v6323_v48  ;;  %5177 = vmatpush3.bf16.msra.mxu1 %v6325_v49 }
0x1673   :  { %5172 = vmatprep.subr.bf16.mxu0 %v5683_v13  ;;  %5178 = vmatprep.subr.bf16.mxu1 %v5683_v13 }
0x1674   :  { %4843 = vmatprep.mubr.msk.f32.mxu0 %vm5684_vm1, %v5685_v20  ;;  %4854 = vmatprep.mubr.msk.f32.mxu1 %vm5684_vm1, %v5685_v20 }
0x1676   :  { %5174 = vmatpush3.bf16.msra.mxu0 %v6331_v26  ;;  %5180 = vmatpush3.bf16.msra.mxu1 %v6333_v28 }
0x1677   :  { %5181 = vmatprep.subr.bf16.mxu0 %v5683_v13  ;;  %5187 = vmatprep.subr.bf16.mxu1 %v5683_v13 }
0x1679   :  { %4844 = vmatmul.mubr.f32.vlgmr.msra.gmra.mrb[20].mxu0 %v5685_v20  ;;  %4855 = vmatmul.mubr.f32.vlgmr.msra.gmra.mrb[20].mxu1 %v5685_v20 }
0x167a   :  { %5183 = vmatpush3.bf16.msra.mxu0 %v6323_v48  ;;  %5189 = vmatpush3.bf16.msra.mxu1 %v6325_v49 }
0x167b   :  { %5184 = vmatprep.subr.bf16.mxu0 %v5683_v13  ;;  %4865 = vmatprep.mubr.msk.f32.mxu0 %vm5684_vm1, %v5685_v20 }
0x167c   :  { %5190 = vmatprep.subr.bf16.mxu1 %v5683_v13  ;;  %4876 = vmatprep.mubr.msk.f32.mxu1 %vm5684_vm1, %v5685_v20 }
0x167e   :  { %5186 = vmatpush3.bf16.msra.mxu0 %v6331_v26  ;;  %5192 = vmatpush3.bf16.msra.mxu1 %v6333_v28 }
0x167f   :  { %5193 = vmatprep.subr.bf16.mxu0 %v5683_v13  ;;  %5199 = vmatprep.subr.bf16.mxu1 %v5683_v13 }
0x1744   :  { %v4812_v58 = vpop.f32.mrb[18].mxu0  ;;  %v4834_v25 = vpop.f32.mrb[18].mxu1 }
0x1745   :  { %v6365_v51 = vadd.f32 %v4812_v58, %v4358_v1  ;;  %v2256_v54 = vpop.f32.mrb[19].mxu0  ;;  %v2423_v32 = vpop.f32.mrb[19].mxu1  ;;  %v6385_v7 = vadd.f32 %v4834_v25, %v4363_v31 }
0x1746   :  { %v6367_v57 = vadd.f32 %v4363_v31, %v2423_v32  ;;  %v6383_v6 = vadd.f32 %v4358_v1, %v2256_v54 }
0x174c   :  { %v2523_v62 = vpop.f32.mrb[20].mxu0  ;;  %v2599_v63 = vpop.f32.mrb[20].mxu1 }
0x174d   :  { %v2524_v0 = vadd.f32 %v6372_v59, %v2523_v62  ;;  %v2600_v2 = vadd.f32 %v6377_v60, %v2599_v63  ;;  %v4845_v3 = vpop.f32.mrb[21].mxu0  ;;  %v4856_v4 = vpop.f32.mrb[21].mxu1 }
0x174f   :  { %v2630_v5 = vrot.slane %v2600_v2, 2  ;;  %2611 = vrot.lane.b32.xlu1 %v2524_v0, %s5686_s27  ;;  %v2603_v8 = vadd.f32 %v2524_v0, %v6383_v6 }
0x1751   :  { %2639 = vrot.lane.b32.xlu0 %v2630_v5, %s5686_s27  ;;  %v2632_v9 = vadd.f32 %v2630_v5, %v6385_v7  ;;  %v4366_v10 = vmul.f32 -1.442695, %v2603_v8 }
0x1753   :  { %v4367_v11 = vmul.f32 -1.442695, %v2632_v9  ;;  %5392 = vpow2.f32 %v4366_v10 }
0x1755   :  { %5394 = vpow2.f32 %v4367_v11 }
0x175d   :  { %v5393_v15 = vpop.eup %5392 }
0x175e   :  { %v2607_v23 = vadd.f32 1.0, %v5393_v15 }
0x175f   :  { %v5395_v17 = vpop.eup %5394 }
0x1760   :  { %v2636_v14 = vadd.f32 1.0, %v5395_v17  ;;  %5396 = vrcp.f32 %v2607_v23 }
0x1762   :  { %5398 = vrcp.f32 %v2636_v14 }
0x176a   :  { %v5397_v22 = vpop.eup %5396 }
0x176b   :  { %v2621_v18 = vsub.f32 1.0, %v5397_v22  ;;  %v2627_v42 = vmul.f32 0.0, %v5397_v22 }
0x176c   :  { %v5399_v29 = vpop.eup %5398 }
0x176d   :  { %v2649_v43 = vsub.f32 1.0, %v5399_v29  ;;  %v2655_v45 = vmul.f32 0.0, %v5399_v29 }
0x17c1   :  { %v2612_v24 = vpop.permute.xlu1 %2611 }
0x17c2   :  { %v2614_v27 = vmul.f32 %v5397_v22, %v2612_v24 }
0x17c3   :  { %v2640_v33 = vpop.permute.xlu0 %2639 }
0x17c4   :  { %v2642_v35 = vmul.f32 %v5399_v29, %v2640_v33  ;;  %2616 = vrot.lane.b32.xlu1 %v2614_v27, %s5686_s27 }
0x17c6   :  { %2644 = vrot.lane.b32.xlu0 %v2642_v35, %s5686_s27 }
0x1836   :  { %v2617_v36 = vpop.permute.xlu1 %2616 }
0x1837   :  { %v2619_v61 = vadd.f32 %v2617_v36, %v6383_v6 }
0x1838   :  { %v2645_v37 = vpop.permute.xlu0 %2644 }
0x1839   :  { %5400 = vtanh.f32 %v2619_v61  ;;  %v2647_v38 = vadd.f32 %v2645_v37, %v6385_v7 }
0x183b   :  { %5402 = vtanh.f32 %v2647_v38 }
0x1843   :  { %v5401_v12 = vpop.eup %5400 }
0x1844   :  { %2623 = vrot.lane.b32.xlu1 %v5401_v12, %s5687_s4 }
0x1845   :  { %v5403_v41 = vpop.eup %5402 }
0x1846   :  { %2651 = vrot.lane.b32.xlu0 %v5403_v41, %s5687_s4 }
0x18b6   :  { %v2624_v40 = vpop.permute.xlu1 %2623 }
0x18b7   :  { %v2626_v39 = vmul.f32 %v2624_v40, %v2621_v18 }
0x18b8   :  { %v2652_v44 = vpop.permute.xlu0 %2651 }
0x18b9   :  { %v6395_v30 = vadd.f32 %v2627_v42, %v2626_v39  ;;  %v2654_v16 = vmul.f32 %v2652_v44, %v2649_v43 }
0x18bb   :  { %v6397_v34 = vadd.f32 %v2655_v45, %v2654_v16  ;;  %2658 = vrot.lane.b32.xlu1 %v6395_v30, %s5687_s4  ;;  %v2834_v24 = vrot.slane %v6395_v30, 6 }
0x18bd   :  { %v2733_v19 = vrot.slane %v6397_v34, 6  ;;  %v2864_v36 = vrot.slane %v6397_v34, 2 }
0x18bf   :  { %2734 = vrot.lane.b32.xlu0 %v2733_v19, %s5687_s4 }
0x192d   :  { %v2659_v46 = vpop.permute.xlu1 %2658 }
0x192e   :  { %4866 = vmatmul.mubr.msk.f32.vlgmr.msra.gmra.mrb[22].mxu0 %vm351_vm2, %v2659_v46 }
0x192f   :  { %5195 = vmatpush3.bf16.msra.mxu0 %v6323_v48  ;;  %4887 = vmatprep.mubr.msk.f32.mxu0 %vm5684_vm1, %v5685_v20 }
0x1930   :  { %5196 = vmatprep.subr.bf16.mxu0 %v5683_v13 }
0x1931   :  { %v2735_v21 = vpop.permute.xlu0 %2734 }
0x1932   :  { %4877 = vmatmul.mubr.msk.f32.vlgmr.msra.gmra.mrb[22].mxu1 %vm351_vm2, %v2735_v21 }
0x1933   :  { %5198 = vmatpush3.bf16.msra.mxu0 %v6331_v26  ;;  %5201 = vmatpush3.bf16.msra.mxu1 %v6325_v49 }
0x1934   :  { %5202 = vmatprep.subr.bf16.mxu1 %v5683_v13  ;;  %4898 = vmatprep.mubr.msk.f32.mxu1 %vm5684_vm1, %v5685_v20 }
0x1935   :  { %5205 = vmatprep.subr.bf16.mxu0 %v5683_v13 }
0x1937   :  { %5204 = vmatpush3.bf16.msra.mxu1 %v6333_v28 }
0x1938   :  { %5211 = vmatprep.subr.bf16.mxu1 %v5683_v13 }
0x1a01   :  { %v2728_v47 = vpop.f32.mrb[22].mxu0 }
0x1a02   :  { %v2729_v50 = vadd.f32 %v6372_v59, %v2728_v47  ;;  %v4867_v52 = vpop.f32.mrb[23].mxu0 }
0x1a04   :  { %v2809_v53 = vrot.slane %v2729_v50, 6 }
0x1a05   :  { %v2804_v55 = vpop.f32.mrb[22].mxu1 }
0x1a06   :  { %v2805_v56 = vadd.f32 %v6377_v60, %v2804_v55  ;;  %v4878_v1 = vpop.f32.mrb[23].mxu1  ;;  %2818 = vrot.lane.b32.xlu1 %v2809_v53, %s5686_s27  ;;  %v2811_v58 = vadd.f32 %v2809_v53, %v6383_v6 }
0x1a08   :  { %v2839_v31 = vrot.slane %v2805_v56, 4  ;;  %v4370_v25 = vmul.f32 -1.442695, %v2811_v58 }
0x1a0a   :  { %2848 = vrot.lane.b32.xlu0 %v2839_v31, %s5686_s27  ;;  %v2841_v54 = vadd.f32 %v2839_v31, %v6385_v7  ;;  %5404 = vpow2.f32 %v4370_v25 }
0x1a0c   :  { %v4371_v32 = vmul.f32 -1.442695, %v2841_v54 }
0x1a0e   :  { %5406 = vpow2.f32 %v4371_v32 }
0x1a14   :  { %v5405_v62 = vpop.eup %5404 }
0x1a15   :  { %v2815_v63 = vadd.f32 1.0, %v5405_v62 }
0x1a17   :  { %5408 = vrcp.f32 %v2815_v63 }
0x1a18   :  { %v5407_v0 = vpop.eup %5406 }
0x1a19   :  { %v2845_v2 = vadd.f32 1.0, %v5407_v0 }
0x1a1b   :  { %5410 = vrcp.f32 %v2845_v2 }
0x1a21   :  { %v5409_v3 = vpop.eup %5408 }
0x1a22   :  { %v2828_v27 = vsub.f32 1.0, %v5409_v3  ;;  %v2836_v35 = vmul.f32 %v5409_v3, %v2834_v24 }
0x1a25   :  { %v5411_v8 = vpop.eup %5410 }
0x1a26   :  { %v2858_v37 = vsub.f32 1.0, %v5411_v8  ;;  %v2866_v12 = vmul.f32 %v5411_v8, %v2864_v36 }
0x1a78   :  { %v2819_v4 = vpop.permute.xlu1 %2818 }
0x1a79   :  { %v2821_v5 = vmul.f32 %v5409_v3, %v2819_v4 }
0x1a7b   :  { %2823 = vrot.lane.b32.xlu1 %v2821_v5, %s5686_s27 }
0x1a7c   :  { %v2849_v9 = vpop.permute.xlu0 %2848 }
0x1a7d   :  { %v2851_v10 = vmul.f32 %v5411_v8, %v2849_v9 }
0x1a7f   :  { %2853 = vrot.lane.b32.xlu0 %v2851_v10, %s5686_s27 }
0x1aed   :  { %v2824_v11 = vpop.permute.xlu1 %2823 }
0x1aee   :  { %v2826_v15 = vadd.f32 %v2824_v11, %v6383_v6 }
0x1af0   :  { %5412 = vtanh.f32 %v2826_v15 }
0x1af1   :  { %v2854_v17 = vpop.permute.xlu0 %2853 }
0x1af2   :  { %v2856_v23 = vadd.f32 %v2854_v17, %v6385_v7 }
0x1af4   :  { %5414 = vtanh.f32 %v2856_v23 }
0x1afa   :  { %v5413_v14 = vpop.eup %5412 }
0x1afb   :  { %2830 = vrot.lane.b32.xlu1 %v5413_v14, %s5687_s4 }
0x1afe   :  { %v5415_v22 = vpop.eup %5414 }
0x1aff   :  { %2860 = vrot.lane.b32.xlu0 %v5415_v22, %s5687_s4 }
0x1b6d   :  { %v2831_v29 = vpop.permute.xlu1 %2830 }
0x1b6e   :  { %v2833_v33 = vmul.f32 %v2831_v29, %v2828_v27 }
0x1b70   :  { %v6431_v61 = vadd.f32 %v2836_v35, %v2833_v33 }
0x1b71   :  { %v2861_v38 = vpop.permute.xlu0 %2860 }
0x1b72   :  { %v2863_v41 = vmul.f32 %v2861_v38, %v2858_v37  ;;  %v2869_v18 = vrot.slane %v6431_v61, 2  ;;  %v3046_v9 = vrot.slane %v6431_v61, 6 }
0x1b74   :  { %v6434_v40 = vadd.f32 %v2866_v12, %v2863_v41  ;;  %2870 = vrot.lane.b32.xlu1 %v2869_v18, %s5687_s4 }
0x1b76   :  { %v2945_v42 = vrot.slane %v6434_v40, 4  ;;  %v3076_v23 = vrot.slane %v6434_v40, 2 }
0x1b78   :  { %2946 = vrot.lane.b32.xlu0 %v2945_v42, %s5687_s4 }
0x1be6   :  { %v2871_v39 = vpop.permute.xlu1 %2870 }
0x1be7   :  { %4888 = vmatmul.mubr.msk.f32.vlgmr.msra.gmra.mrb[24].mxu0 %vm351_vm2, %v2871_v39 }
0x1be8   :  { %5207 = vmatpush3.bf16.msra.mxu0 %v6323_v48  ;;  %4909 = vmatprep.mubr.msk.f32.mxu0 %vm5684_vm1, %v5685_v20 }
0x1be9   :  { %5208 = vmatprep.subr.bf16.mxu0 %v5683_v13 }
0x1bea   :  { %v2947_v43 = vpop.permute.xlu0 %2946 }
0x1beb   :  { %4899 = vmatmul.mubr.msk.f32.vlgmr.msra.gmra.mrb[24].mxu1 %vm351_vm2, %v2947_v43 }
0x1bec   :  { %5210 = vmatpush3.bf16.msra.mxu0 %v6331_v26  ;;  %5213 = vmatpush3.bf16.msra.mxu1 %v6325_v49 }
0x1bed   :  { %5214 = vmatprep.subr.bf16.mxu1 %v5683_v13  ;;  %4920 = vmatprep.mubr.msk.f32.mxu1 %vm5684_vm1, %v5685_v20 }
0x1bee   :  { %5217 = vmatprep.subr.bf16.mxu0 %v5683_v13 }
0x1bf0   :  { %5216 = vmatpush3.bf16.msra.mxu1 %v6333_v28 }
0x1bf1   :  { %5223 = vmatprep.subr.bf16.mxu1 %v5683_v13 }
0x1cba   :  { %v2940_v44 = vpop.f32.mrb[24].mxu0 }
0x1cbb   :  { %v2941_v30 = vadd.f32 %v6372_v59, %v2940_v44  ;;  %v4889_v45 = vpop.f32.mrb[25].mxu0 }
0x1cbd   :  { %v3021_v16 = vrot.slane %v2941_v30, 4 }
0x1cbe   :  { %v3016_v34 = vpop.f32.mrb[24].mxu1 }
0x1cbf   :  { %v3017_v19 = vadd.f32 %v6377_v60, %v3016_v34  ;;  %v4900_v46 = vpop.f32.mrb[25].mxu1  ;;  %3030 = vrot.lane.b32.xlu1 %v3021_v16, %s5686_s27  ;;  %v3023_v47 = vadd.f32 %v3021_v16, %v6383_v6 }
0x1cc1   :  { %v3051_v21 = vrot.slane %v3017_v19, 6  ;;  %v4374_v50 = vmul.f32 -1.442695, %v3023_v47 }
0x1cc3   :  { %3060 = vrot.lane.b32.xlu0 %v3051_v21, %s5686_s27  ;;  %v3053_v52 = vadd.f32 %v3051_v21, %v6385_v7  ;;  %5416 = vpow2.f32 %v4374_v50 }
0x1cc5   :  { %v4375_v53 = vmul.f32 -1.442695, %v3053_v52 }
0x1cc7   :  { %5418 = vpow2.f32 %v4375_v53 }
0x1ccd   :  { %v5417_v55 = vpop.eup %5416 }
0x1cce   :  { %v3027_v56 = vadd.f32 1.0, %v5417_v55 }
0x1cd0   :  { %5420 = vrcp.f32 %v3027_v56 }
0x1cd1   :  { %v5419_v1 = vpop.eup %5418 }
0x1cd2   :  { %v3057_v31 = vadd.f32 1.0, %v5419_v1 }
0x1cd4   :  { %5422 = vrcp.f32 %v3057_v31 }
0x1cda   :  { %v5421_v58 = vpop.eup %5420 }
0x1cdb   :  { %v3040_v10 = vsub.f32 1.0, %v5421_v58  ;;  %v3048_v15 = vmul.f32 %v5421_v58, %v3046_v9 }
0x1cde   :  { %v5423_v32 = vpop.eup %5422 }
0x1cdf   :  { %v3070_v22 = vsub.f32 1.0, %v5423_v32  ;;  %v3078_v27 = vmul.f32 %v5423_v32, %v3076_v23 }
0x1d31   :  { %v3031_v25 = vpop.permute.xlu1 %3030 }
0x1d32   :  { %v3033_v54 = vmul.f32 %v5421_v58, %v3031_v25 }
0x1d34   :  { %3035 = vrot.lane.b32.xlu1 %v3033_v54, %s5686_s27 }
0x1d35   :  { %v3061_v62 = vpop.permute.xlu0 %3060 }
0x1d36   :  { %v3063_v63 = vmul.f32 %v5423_v32, %v3061_v62 }
0x1d38   :  { %3065 = vrot.lane.b32.xlu0 %v3063_v63, %s5686_s27 }
0x1da6   :  { %v3036_v0 = vpop.permute.xlu1 %3035 }
0x1da7   :  { %v3038_v2 = vadd.f32 %v3036_v0, %v6383_v6 }
0x1da9   :  { %5424 = vtanh.f32 %v3038_v2 }
0x1daa   :  { %v3066_v3 = vpop.permute.xlu0 %3065 }
0x1dab   :  { %v3068_v4 = vadd.f32 %v3066_v3, %v6385_v7 }
0x1dad   :  { %5426 = vtanh.f32 %v3068_v4 }
0x1db3   :  { %v5425_v5 = vpop.eup %5424 }
0x1db4   :  { %3042 = vrot.lane.b32.xlu1 %v5425_v5, %s5687_s4 }
0x1db7   :  { %v5427_v8 = vpop.eup %5426 }
0x1db8   :  { %3072 = vrot.lane.b32.xlu0 %v5427_v8, %s5687_s4 }
0x1e26   :  { %v3043_v11 = vpop.permute.xlu1 %3042 }
0x1e27   :  { %v3045_v17 = vmul.f32 %v3043_v11, %v3040_v10 }
0x1e29   :  { %v6467_v14 = vadd.f32 %v3048_v15, %v3045_v17 }
0x1e2a   :  { %v3073_v24 = vpop.permute.xlu0 %3072 }
0x1e2b   :  { %v3075_v29 = vmul.f32 %v3073_v24, %v3070_v22  ;;  %v3081_v33 = vrot.slane %v6467_v14, 4  ;;  %v3258_v32 = vrot.slane %v6467_v14, 6 }
0x1e2d   :  { %v6470_v35 = vadd.f32 %v3078_v27, %v3075_v29  ;;  %3082 = vrot.lane.b32.xlu1 %v3081_v33, %s5687_s4 }
0x1e2f   :  { %v3157_v36 = vrot.slane %v6470_v35, 2 }
0x1e31   :  { %3158 = vrot.lane.b32.xlu0 %v3157_v36, %s5687_s4 }
0x1e9f   :  { %v3083_v61 = vpop.permute.xlu1 %3082 }
0x1ea0   :  { %4910 = vmatmul.mubr.msk.f32.vlgmr.msra.gmra.mrb[26].mxu0 %vm351_vm2, %v3083_v61 }
0x1ea1   :  { %5219 = vmatpush3.bf16.msra.mxu0 %v6323_v48  ;;  %4931 = vmatprep.mubr.msk.f32.mxu0 %vm5684_vm1, %v5685_v20 }
0x1ea2   :  { %5220 = vmatprep.subr.bf16.mxu0 %v5683_v13 }
0x1ea3   :  { %v3159_v37 = vpop.permute.xlu0 %3158 }
0x1ea4   :  { %4921 = vmatmul.mubr.msk.f32.vlgmr.msra.gmra.mrb[26].mxu1 %vm351_vm2, %v3159_v37 }
0x1ea5   :  { %5225 = vmatpush3.bf16.msra.mxu1 %v6325_v49  ;;  %5222 = vmatpush3.bf16.msra.mxu0 %v6331_v26 }
0x1ea6   :  { %5226 = vmatprep.subr.bf16.mxu1 %v5683_v13  ;;  %4942 = vmatprep.mubr.msk.f32.mxu1 %vm5684_vm1, %v5685_v20 }
0x1ea7   :  { %5229 = vmatprep.subr.bf16.mxu0 %v5683_v13 }
0x1ea9   :  { %5228 = vmatpush3.bf16.msra.mxu1 %v6333_v28 }
0x1eaa   :  { %5235 = vmatprep.subr.bf16.mxu1 %v5683_v13 }
0x1f73   :  { %v3152_v38 = vpop.f32.mrb[26].mxu0 }
0x1f74   :  { %v3153_v12 = vadd.f32 %v6372_v59, %v3152_v38  ;;  %v4911_v41 = vpop.f32.mrb[27].mxu0 }
0x1f76   :  { %v3233_v18 = vrot.slane %v3153_v12, 2 }
0x1f77   :  { %v3228_v40 = vpop.f32.mrb[26].mxu1 }
0x1f78   :  { %v3229_v42 = vadd.f32 %v6377_v60, %v3228_v40  ;;  %v4922_v39 = vpop.f32.mrb[27].mxu1  ;;  %3242 = vrot.lane.b32.xlu1 %v3233_v18, %s5686_s27  ;;  %v3235_v43 = vadd.f32 %v3233_v18, %v6383_v6 }
0x1f7a   :  { %3270 = vrot.lane.b32.xlu0 %v3229_v42, %s5686_s27  ;;  %v3262_v44 = vadd.f32 %v3229_v42, %v6385_v7  ;;  %v4378_v30 = vmul.f32 -1.442695, %v3235_v43 }
0x1f7c   :  { %v4379_v45 = vmul.f32 -1.442695, %v3262_v44  ;;  %5428 = vpow2.f32 %v4378_v30 }
0x1f7e   :  { %5430 = vpow2.f32 %v4379_v45 }
0x1f86   :  { %v5429_v16 = vpop.eup %5428 }
0x1f87   :  { %v3239_v19 = vadd.f32 1.0, %v5429_v16 }
0x1f88   :  { %v5431_v34 = vpop.eup %5430 }
0x1f89   :  { %v3266_v46 = vadd.f32 1.0, %v5431_v34  ;;  %5432 = vrcp.f32 %v3239_v19 }
0x1f8b   :  { %5434 = vrcp.f32 %v3266_v46 }
0x1f93   :  { %v5433_v21 = vpop.eup %5432 }
0x1f94   :  { %v3252_v62 = vsub.f32 1.0, %v5433_v21  ;;  %v3260_v0 = vmul.f32 %v5433_v21, %v3258_v32 }
0x1f95   :  { %v5435_v52 = vpop.eup %5434 }
0x1f96   :  { %v3280_v3 = vsub.f32 1.0, %v5435_v52 }
0x1fea   :  { %v3243_v47 = vpop.permute.xlu1 %3242 }
0x1feb   :  { %v3245_v50 = vmul.f32 %v5433_v21, %v3243_v47 }
0x1fec   :  { %v3271_v53 = vpop.permute.xlu0 %3270 }
0x1fed   :  { %v3273_v55 = vmul.f32 %v5435_v52, %v3271_v53  ;;  %3247 = vrot.lane.b32.xlu1 %v3245_v50, %s5686_s27 }
0x1fef   :  { %3275 = vrot.lane.b32.xlu0 %v3273_v55, %s5686_s27 }
0x205f   :  { %v3248_v56 = vpop.permute.xlu1 %3247 }
0x2060   :  { %v3250_v1 = vadd.f32 %v3248_v56, %v6383_v6 }
0x2061   :  { %v3276_v31 = vpop.permute.xlu0 %3275 }
0x2062   :  { %5436 = vtanh.f32 %v3250_v1  ;;  %v3278_v58 = vadd.f32 %v3276_v31, %v6385_v7  ;;  %v3287_v7 = vmul.f32 %v5435_v52, %v3157_v36 }
0x2064   :  { %5438 = vtanh.f32 %v3278_v58 }
0x206c   :  { %v5437_v25 = vpop.eup %5436 }
0x206d   :  { %3254 = vrot.lane.b32.xlu1 %v5437_v25, %s5687_s4 }
0x206e   :  { %v5439_v54 = vpop.eup %5438 }
0x206f   :  { %3282 = vrot.lane.b32.xlu0 %v5439_v54, %s5687_s4 }
0x20df   :  { %v3255_v63 = vpop.permute.xlu1 %3254 }
0x20e0   :  { %v3257_v2 = vmul.f32 %v3255_v63, %v3252_v62 }
0x20e1   :  { %v3283_v4 = vpop.permute.xlu0 %3282 }
0x20e2   :  { %v6504_v6 = vadd.f32 %v3260_v0, %v3257_v2  ;;  %v3285_v5 = vmul.f32 %v3283_v4, %v3280_v3 }
0x20e4   :  { %v3290_v8 = vrot.slane %v6504_v6, 6  ;;  %v6509_v9 = vadd.f32 %v3287_v7, %v3285_v5 }
0x20e6   :  { %3366 = vrot.lane.b32.xlu0 %v6509_v9, %s5687_s4  ;;  %3291 = vrot.lane.b32.xlu1 %v3290_v8, %s5687_s4  ;;  %v3493_v47 = vrot.slane %v6509_v9, 2 }
0x2158   :  { %v3367_v10 = vpop.permute.xlu0 %3366  ;;  %v3292_v11 = vpop.permute.xlu1 %3291 }
0x2159   :  { %4932 = vmatmul.mubr.msk.f32.vlgmr.msra.gmra.mrb[28].mxu0 %vm351_vm2, %v3292_v11  ;;  %4943 = vmatmul.mubr.msk.f32.vlgmr.msra.gmra.mrb[28].mxu1 %vm351_vm2, %v3367_v10 }
0x215a   :  { %5231 = vmatpush3.bf16.msra.mxu0 %v6323_v48  ;;  %5237 = vmatpush3.bf16.msra.mxu1 %v6325_v49 }
0x215b   :  { %5232 = vmatprep.subr.bf16.mxu0 %v5683_v13  ;;  %4953 = vmatprep.mubr.msk.f32.mxu0 %vm5684_vm1, %v5685_v20 }
0x215c   :  { %5238 = vmatprep.subr.bf16.mxu1 %v5683_v13  ;;  %4964 = vmatprep.mubr.msk.f32.mxu1 %vm5684_vm1, %v5685_v20 }
0x215e   :  { %5234 = vmatpush3.bf16.msra.mxu0 %v6331_v26  ;;  %5240 = vmatpush3.bf16.msra.mxu1 %v6333_v28 }
0x215f   :  { %5241 = vmatprep.subr.bf16.mxu0 %v5683_v13  ;;  %5247 = vmatprep.subr.bf16.mxu1 %v5683_v13 }
0x222c   :  { %v3361_v15 = vpop.f32.mrb[28].mxu0  ;;  %v3436_v17 = vpop.f32.mrb[28].mxu1 }
0x222d   :  { %v3362_v23 = vadd.f32 %v6372_v59, %v3361_v15  ;;  %v3437_v14 = vadd.f32 %v6377_v60, %v3436_v17  ;;  %v4933_v22 = vpop.f32.mrb[29].mxu0  ;;  %v4944_v24 = vpop.f32.mrb[29].mxu1 }
0x222f   :  { %v3468_v27 = vrot.slane %v3437_v14, 2  ;;  %3448 = vrot.lane.b32.xlu1 %v3362_v23, %s5686_s27  ;;  %v3440_v29 = vadd.f32 %v3362_v23, %v6365_v51 }
0x2231   :  { %3477 = vrot.lane.b32.xlu0 %v3468_v27, %s5686_s27  ;;  %v3470_v33 = vadd.f32 %v3468_v27, %v6367_v57  ;;  %v4382_v35 = vmul.f32 -1.442695, %v3440_v29 }
0x2233   :  { %v4383_v36 = vmul.f32 -1.442695, %v3470_v33  ;;  %5440 = vpow2.f32 %v4382_v35 }
0x2235   :  { %5442 = vpow2.f32 %v4383_v36 }
0x223d   :  { %v5441_v61 = vpop.eup %5440 }
0x223e   :  { %v3444_v38 = vadd.f32 1.0, %v5441_v61 }
0x223f   :  { %v5443_v37 = vpop.eup %5442 }
0x2240   :  { %v3474_v12 = vadd.f32 1.0, %v5443_v37  ;;  %5444 = vrcp.f32 %v3444_v38 }
0x2242   :  { %5446 = vrcp.f32 %v3474_v12 }
0x224a   :  { %v5445_v41 = vpop.eup %5444 }
0x224b   :  { %v3458_v46 = vsub.f32 1.0, %v5445_v41  ;;  %v3465_v50 = vmul.f32 %v5445_v41, %v3290_v8 }
0x224c   :  { %v5447_v42 = vpop.eup %5446 }
0x224d   :  { %v3487_v53 = vsub.f32 1.0, %v5447_v42  ;;  %v3495_v1 = vmul.f32 %v5447_v42, %v3493_v47 }
0x22a1   :  { %v3449_v18 = vpop.permute.xlu1 %3448 }
0x22a2   :  { %v3451_v40 = vmul.f32 %v5445_v41, %v3449_v18 }
0x22a3   :  { %v3478_v39 = vpop.permute.xlu0 %3477 }
0x22a4   :  { %v3480_v43 = vmul.f32 %v5447_v42, %v3478_v39  ;;  %3453 = vrot.lane.b32.xlu1 %v3451_v40, %s5686_s27 }
0x22a6   :  { %3482 = vrot.lane.b32.xlu0 %v3480_v43, %s5686_s27 }
0x2316   :  { %v3454_v44 = vpop.permute.xlu1 %3453 }
0x2317   :  { %v3456_v30 = vadd.f32 %v3454_v44, %v6365_v51 }
0x2318   :  { %v3483_v45 = vpop.permute.xlu0 %3482 }
0x2319   :  { %5448 = vtanh.f32 %v3456_v30  ;;  %v3485_v16 = vadd.f32 %v3483_v45, %v6367_v57 }
0x231b   :  { %5450 = vtanh.f32 %v3485_v16 }
0x2323   :  { %v5449_v34 = vpop.eup %5448 }
0x2324   :  { %3460 = vrot.lane.b32.xlu1 %v5449_v34, %s5687_s4 }
0x2325   :  { %v5451_v19 = vpop.eup %5450 }
0x2326   :  { %3489 = vrot.lane.b32.xlu0 %v5451_v19, %s5687_s4 }
0x2396   :  { %v3461_v21 = vpop.permute.xlu1 %3460 }
0x2397   :  { %v3463_v52 = vmul.f32 %v3461_v21, %v3458_v46 }
0x2398   :  { %v3490_v55 = vpop.permute.xlu0 %3489 }
0x2399   :  { %v6541_v56 = vadd.f32 %v3465_v50, %v3463_v52  ;;  %v3492_v31 = vmul.f32 %v3490_v55, %v3487_v53 }
0x239b   :  { %v6543_v58 = vadd.f32 %v3495_v1, %v3492_v31  ;;  %3498 = vrot.lane.b32.xlu1 %v6541_v56, %s5687_s4  ;;  %v3674_v41 = vrot.slane %v6541_v56, 6 }
0x239d   :  { %v3573_v25 = vrot.slane %v6543_v58, 6  ;;  %v3704_v43 = vrot.slane %v6543_v58, 2 }
0x239f   :  { %3574 = vrot.lane.b32.xlu0 %v3573_v25, %s5687_s4 }
0x240d   :  { %v3499_v54 = vpop.permute.xlu1 %3498 }
0x240e   :  { %4954 = vmatmul.mubr.msk.f32.vlgmr.msra.gmra.mrb[30].mxu0 %vm351_vm2, %v3499_v54 }
0x240f   :  { %5243 = vmatpush3.bf16.msra.mxu0 %v6323_v48  ;;  %4975 = vmatprep.mubr.msk.f32.mxu0 %vm5684_vm1, %v5685_v20 }
0x2410   :  { %5244 = vmatprep.subr.bf16.mxu0 %v5683_v13 }
0x2411   :  { %v3575_v32 = vpop.permute.xlu0 %3574 }
0x2412   :  { %4965 = vmatmul.mubr.msk.f32.vlgmr.msra.gmra.mrb[30].mxu1 %vm351_vm2, %v3575_v32 }
0x2413   :  { %5246 = vmatpush3.bf16.msra.mxu0 %v6331_v26  ;;  %5249 = vmatpush3.bf16.msra.mxu1 %v6325_v49 }
0x2414   :  { %5250 = vmatprep.subr.bf16.mxu1 %v5683_v13  ;;  %4986 = vmatprep.mubr.msk.f32.mxu1 %vm5684_vm1, %v5685_v20 }
0x2415   :  { %5253 = vmatprep.subr.bf16.mxu0 %v5683_v13 }
0x2417   :  { %5252 = vmatpush3.bf16.msra.mxu1 %v6333_v28 }
0x2418   :  { %5259 = vmatprep.subr.bf16.mxu1 %v5683_v13 }
0x24e1   :  { %v3568_v62 = vpop.f32.mrb[30].mxu0 }
0x24e2   :  { %v3569_v63 = vadd.f32 %v6372_v59, %v3568_v62  ;;  %v4955_v0 = vpop.f32.mrb[31].mxu0 }
0x24e4   :  { %v3649_v2 = vrot.slane %v3569_v63, 6 }
0x24e5   :  { %v3644_v3 = vpop.f32.mrb[30].mxu1 }
0x24e6   :  { %v3645_v4 = vadd.f32 %v6377_v60, %v3644_v3  ;;  %v4966_v6 = vpop.f32.mrb[31].mxu1  ;;  %3658 = vrot.lane.b32.xlu1 %v3649_v2, %s5686_s27  ;;  %v3651_v5 = vadd.f32 %v3649_v2, %v6365_v51 }
0x24e8   :  { %v3679_v7 = vrot.slane %v3645_v4, 4  ;;  %v4386_v8 = vmul.f32 -1.442695, %v3651_v5 }
0x24ea   :  { %3688 = vrot.lane.b32.xlu0 %v3679_v7, %s5686_s27  ;;  %v3681_v9 = vadd.f32 %v3679_v7, %v6367_v57  ;;  %5452 = vpow2.f32 %v4386_v8 }
0x24ec   :  { %v4387_v10 = vmul.f32 -1.442695, %v3681_v9 }
0x24ee   :  { %5454 = vpow2.f32 %v4387_v10 }
0x24f4   :  { %v5453_v11 = vpop.eup %5452 }
0x24f5   :  { %v3655_v15 = vadd.f32 1.0, %v5453_v11 }
0x24f7   :  { %5456 = vrcp.f32 %v3655_v15 }
0x24f8   :  { %v5455_v17 = vpop.eup %5454 }
0x24f9   :  { %v3685_v23 = vadd.f32 1.0, %v5455_v17 }
0x24fb   :  { %5458 = vrcp.f32 %v3685_v23 }
0x2501   :  { %v5457_v14 = vpop.eup %5456 }
0x2502   :  { %v3668_v18 = vsub.f32 1.0, %v5457_v14  ;;  %v3676_v42 = vmul.f32 %v5457_v14, %v3674_v41 }
0x2505   :  { %v5459_v27 = vpop.eup %5458 }
0x2506   :  { %v3698_v30 = vsub.f32 1.0, %v5459_v27  ;;  %v3706_v34 = vmul.f32 %v5459_v27, %v3704_v43 }
0x2558   :  { %v3659_v22 = vpop.permute.xlu1 %3658 }
0x2559   :  { %v3661_v24 = vmul.f32 %v5457_v14, %v3659_v22 }
0x255b   :  { %3663 = vrot.lane.b32.xlu1 %v3661_v24, %s5686_s27 }
0x255c   :  { %v3689_v29 = vpop.permute.xlu0 %3688 }
0x255d   :  { %v3691_v33 = vmul.f32 %v5459_v27, %v3689_v29 }
0x255f   :  { %3693 = vrot.lane.b32.xlu0 %v3691_v33, %s5686_s27 }
0x25cd   :  { %v3664_v35 = vpop.permute.xlu1 %3663 }
0x25ce   :  { %v3666_v36 = vadd.f32 %v3664_v35, %v6365_v51 }
0x25d0   :  { %5460 = vtanh.f32 %v3666_v36 }
0x25d1   :  { %v3694_v61 = vpop.permute.xlu0 %3693 }
0x25d2   :  { %v3696_v37 = vadd.f32 %v3694_v61, %v6367_v57 }
0x25d4   :  { %5462 = vtanh.f32 %v3696_v37 }
0x25da   :  { %v5461_v38 = vpop.eup %5460 }
0x25db   :  { %3670 = vrot.lane.b32.xlu1 %v5461_v38, %s5687_s4 }
0x25de   :  { %v5463_v12 = vpop.eup %5462 }
0x25df   :  { %3700 = vrot.lane.b32.xlu0 %v5463_v12, %s5687_s4 }
0x264d   :  { %v3671_v40 = vpop.permute.xlu1 %3670 }
0x264e   :  { %v3673_v39 = vmul.f32 %v3671_v40, %v3668_v18 }
0x2650   :  { %v6577_v44 = vadd.f32 %v3676_v42, %v3673_v39 }
0x2651   :  { %v3701_v45 = vpop.permute.xlu0 %3700 }
0x2652   :  { %v3709_v16 = vrot.slane %v6577_v44, 2  ;;  %v3703_v19 = vmul.f32 %v3701_v45, %v3698_v30  ;;  %v3886_v17 = vrot.slane %v6577_v44, 6 }
0x2654   :  { %v6580_v46 = vadd.f32 %v3706_v34, %v3703_v19  ;;  %3710 = vrot.lane.b32.xlu1 %v3709_v16, %s5687_s4 }
0x2656   :  { %v3785_v21 = vrot.slane %v6580_v46, 4  ;;  %v3916_v27 = vrot.slane %v6580_v46, 2 }
0x2658   :  { %3786 = vrot.lane.b32.xlu0 %v3785_v21, %s5687_s4 }
0x26c6   :  { %v3711_v47 = vpop.permute.xlu1 %3710 }
0x26c7   :  { %4976 = vmatmul.mubr.msk.f32.vlgmr.msra.gmra.mrb[32].mxu0 %vm351_vm2, %v3711_v47 }
0x26c8   :  { %5255 = vmatpush3.bf16.msra.mxu0 %v6323_v48  ;;  %4997 = vmatprep.mubr.msk.f32.mxu0 %vm5684_vm1, %v5685_v20 }
0x26c9   :  { %5256 = vmatprep.subr.bf16.mxu0 %v5683_v13 }
0x26ca   :  { %v3787_v50 = vpop.permute.xlu0 %3786 }
0x26cb   :  { %4987 = vmatmul.mubr.msk.f32.vlgmr.msra.gmra.mrb[32].mxu1 %vm351_vm2, %v3787_v50 }
0x26cc   :  { %5258 = vmatpush3.bf16.msra.mxu0 %v6331_v26  ;;  %5261 = vmatpush3.bf16.msra.mxu1 %v6325_v49 }
0x26cd   :  { %5262 = vmatprep.subr.bf16.mxu1 %v5683_v13  ;;  %5008 = vmatprep.mubr.msk.f32.mxu1 %vm5684_vm1, %v5685_v20 }
0x26ce   :  { %5265 = vmatprep.subr.bf16.mxu0 %v5683_v13 }
0x26d0   :  { %5264 = vmatpush3.bf16.msra.mxu1 %v6333_v28 }
0x26d1   :  { %5271 = vmatprep.subr.bf16.mxu1 %v5683_v13 }
0x279a   :  { %v3780_v48 = vpop.f32.mrb[32].mxu0 }
0x279b   :  { %v3781_v52 = vadd.f32 %v6372_v59, %v3780_v48  ;;  %v4977_v53 = vpop.f32.mrb[33].mxu0 }
0x279d   :  { %v3861_v55 = vrot.slane %v3781_v52, 4 }
0x279e   :  { %v3856_v56 = vpop.f32.mrb[32].mxu1 }
0x279f   :  { %v3857_v26 = vadd.f32 %v6377_v60, %v3856_v56  ;;  %v4988_v49 = vpop.f32.mrb[33].mxu1  ;;  %3870 = vrot.lane.b32.xlu1 %v3861_v55, %s5686_s27  ;;  %v3863_v31 = vadd.f32 %v3861_v55, %v6365_v51 }
0x27a1   :  { %v3891_v1 = vrot.slane %v3857_v26, 6  ;;  %v4390_v58 = vmul.f32 -1.442695, %v3863_v31  ;;  %v4133_v31 = vld [vmem:[%s6706_s17 + $0x20] sm:$0xff] }
0x27a3   :  { %3900 = vrot.lane.b32.xlu0 %v3891_v1, %s5686_s27  ;;  %v3893_v28 = vadd.f32 %v3891_v1, %v6367_v57  ;;  %5464 = vpow2.f32 %v4390_v58  ;;  %v4134_v58 = vld [vmem:[%s6706_s17 + $0x28] sm:$0xff] }
0x27a5   :  { %v4391_v25 = vmul.f32 -1.442695, %v3893_v28  ;;  %v4129_v28 = vld [vmem:[%s6706_s17] sm:$0xff] }
0x27a7   :  { %5466 = vpow2.f32 %v4391_v25  ;;  %v5266_v25 = vpack.c.bf16 %v4134_v58, %v4133_v31 }
0x27ad   :  { %v5465_v54 = vpop.eup %5464 }
0x27ae   :  { %v3867_v32 = vadd.f32 1.0, %v5465_v54  ;;  %v4136_v54 = vld [vmem:[%s6706_s17 + $0x38] sm:$0xff] }
0x27b0   :  { %5468 = vrcp.f32 %v3867_v32 }
0x27b1   :  { %v5467_v62 = vpop.eup %5466 }
0x27b2   :  { %v3897_v63 = vadd.f32 1.0, %v5467_v62  ;;  %v4131_v62 = vld [vmem:[%s6706_s17 + $0x10] sm:$0xff] }
0x27b4   :  { %5470 = vrcp.f32 %v3897_v63  ;;  %v4132_v63 = vld [vmem:[%s6706_s17 + $0x18] sm:$0xff] }
0x27ba   :  { %v5469_v0 = vpop.eup %5468 }
0x27bb   :  { %v3880_v23 = vsub.f32 1.0, %v5469_v0  ;;  %v3888_v22 = vmul.f32 %v5469_v0, %v3886_v17 }
0x27be   :  { %v5471_v4 = vpop.eup %5470 }
0x27bf   :  { %v3910_v33 = vsub.f32 1.0, %v5471_v4  ;;  %v3918_v61 = vmul.f32 %v5471_v4, %v3916_v27 }
0x2811   :  { %v3871_v2 = vpop.permute.xlu1 %3870 }
0x2812   :  { %v3873_v3 = vmul.f32 %v5469_v0, %v3871_v2  ;;  %v5275_v2 = vpack.c.bf16 %v4132_v63, %v4131_v62 }
0x2814   :  { %3875 = vrot.lane.b32.xlu1 %v3873_v3, %s5686_s27 }
0x2815   :  { %v3901_v6 = vpop.permute.xlu0 %3900 }
0x2816   :  { %v3903_v7 = vmul.f32 %v5471_v4, %v3901_v6 }
0x2818   :  { %3905 = vrot.lane.b32.xlu0 %v3903_v7, %s5686_s27 }
0x2886   :  { %v3876_v5 = vpop.permute.xlu1 %3875 }
0x2887   :  { %v3878_v8 = vadd.f32 %v3876_v5, %v6365_v51 }
0x2889   :  { %5472 = vtanh.f32 %v3878_v8 }
0x288a   :  { %v3906_v9 = vpop.permute.xlu0 %3905 }
0x288b   :  { %v3908_v10 = vadd.f32 %v3906_v9, %v6367_v57 }
0x288d   :  { %5474 = vtanh.f32 %v3908_v10 }
0x2893   :  { %v5473_v11 = vpop.eup %5472 }
0x2894   :  { %3882 = vrot.lane.b32.xlu1 %v5473_v11, %s5687_s4 }
0x2897   :  { %v5475_v15 = vpop.eup %5474 }
0x2898   :  { %3912 = vrot.lane.b32.xlu0 %v5475_v15, %s5687_s4 }
0x2906   :  { %v3883_v14 = vpop.permute.xlu1 %3882 }
0x2907   :  { %v3885_v24 = vmul.f32 %v3883_v14, %v3880_v23 }
0x2909   :  { %v6613_v29 = vadd.f32 %v3888_v22, %v3885_v24 }
0x290a   :  { %v3913_v35 = vpop.permute.xlu0 %3912 }
0x290b   :  { %v3921_v36 = vrot.slane %v6613_v29, 4  ;;  %v3915_v37 = vmul.f32 %v3913_v35, %v3910_v33  ;;  %v4098_v6 = vrot.slane %v6613_v29, 6  ;;  %v4398_v33 = vld [vmem:[%s6707_s18] ss:$0 sm:$0xff] }
0x290d   :  { %v6616_v38 = vadd.f32 %v3918_v61, %v3915_v37  ;;  %3922 = vrot.lane.b32.xlu1 %v3921_v36, %s5687_s4 }
0x290f   :  { %v3997_v12 = vrot.slane %v6616_v38, 2 }
0x2911   :  { %3998 = vrot.lane.b32.xlu0 %v3997_v12, %s5687_s4 }
0x297f   :  { %v3923_v41 = vpop.permute.xlu1 %3922 }
0x2980   :  { %4998 = vmatmul.mubr.msk.f32.vlgmr.msra.gmra.mrb[34].mxu0 %vm351_vm2, %v3923_v41 }
0x2981   :  { %5019 = vmatprep.mubr.msk.f32.mxu0 %vm5684_vm1, %v5685_v20  ;;  %5267 = vmatpush3.bf16.msra.mxu0 %v5266_v25 }
0x2982   :  { %5268 = vmatprep.subr.bf16.mxu0 %v5683_v13 }
0x2983   :  { %v3999_v18 = vpop.permute.xlu0 %3998 }
0x2984   :  { %5009 = vmatmul.mubr.msk.f32.vlgmr.msra.gmra.mrb[34].mxu1 %vm351_vm2, %v3999_v18 }
0x2985   :  { %5030 = vmatprep.mubr.msk.f32.mxu1 %vm5684_vm1, %v5685_v20 }
0x2a53   :  { %v3992_v40 = vpop.f32.mrb[34].mxu0 }
0x2a54   :  { %v3993_v42 = vadd.f32 %v6372_v59, %v3992_v40  ;;  %v4999_v39 = vpop.f32.mrb[35].mxu0 }
0x2a56   :  { %v4073_v43 = vrot.slane %v3993_v42, 2 }
0x2a57   :  { %v4068_v44 = vpop.f32.mrb[34].mxu1 }
0x2a58   :  { %v4069_v30 = vadd.f32 %v6377_v60, %v4068_v44  ;;  %v5010_v45 = vpop.f32.mrb[35].mxu1  ;;  %4082 = vrot.lane.b32.xlu1 %v4073_v43, %s5686_s27  ;;  %v4075_v16 = vadd.f32 %v4073_v43, %v6365_v51 }
0x2a5a   :  { %4110 = vrot.lane.b32.xlu0 %v4069_v30, %s5686_s27  ;;  %v4102_v34 = vadd.f32 %v4069_v30, %v6367_v57  ;;  %v4394_v19 = vmul.f32 -1.442695, %v4075_v16 }
0x2a5c   :  { %v4395_v46 = vmul.f32 -1.442695, %v4102_v34  ;;  %5476 = vpow2.f32 %v4394_v19 }
0x2a5e   :  { %5478 = vpow2.f32 %v4395_v46 }
0x2a66   :  { %v5477_v20 = vpop.eup %5476 }
0x2a67   :  { %v4079_v21 = vadd.f32 1.0, %v5477_v20 }
0x2a68   :  { %v5479_v59 = vpop.eup %5478 }
0x2a69   :  { %v4106_v47 = vadd.f32 1.0, %v5479_v59  ;;  %5480 = vrcp.f32 %v4079_v21 }
0x2a6b   :  { %5482 = vrcp.f32 %v4106_v47 }
0x2a73   :  { %v5481_v60 = vpop.eup %5480 }
0x2a74   :  { %v4092_v7 = vsub.f32 1.0, %v5481_v60  ;;  %v4100_v8 = vmul.f32 %v5481_v60, %v4098_v6 }
0x2a75   :  { %v5483_v52 = vpop.eup %5482 }
0x2a76   :  { %v4120_v10 = vsub.f32 1.0, %v5483_v52 }
0x2aca   :  { %v4083_v50 = vpop.permute.xlu1 %4082 }
0x2acb   :  { %v4085_v48 = vmul.f32 %v5481_v60, %v4083_v50 }
0x2acc   :  { %v4111_v53 = vpop.permute.xlu0 %4110 }
0x2acd   :  { %v4113_v55 = vmul.f32 %v5483_v52, %v4111_v53  ;;  %4087 = vrot.lane.b32.xlu1 %v4085_v48, %s5686_s27 }
0x2acf   :  { %4115 = vrot.lane.b32.xlu0 %v4113_v55, %s5686_s27 }
0x2b3f   :  { %v4088_v56 = vpop.permute.xlu1 %4087 }
0x2b40   :  { %v4090_v26 = vadd.f32 %v4088_v56, %v6365_v51  ;;  %v4130_v51 = vld [vmem:[%s6706_s17 + $0x8] sm:$0xff] }
0x2b41   :  { %v4116_v49 = vpop.permute.xlu0 %4115  ;;  %v5272_v32 = vpack.c.bf16 %v4130_v51, %v4129_v28 }
0x2b42   :  { %5484 = vtanh.f32 %v4090_v26  ;;  %v4118_v1 = vadd.f32 %v4116_v49, %v6367_v57  ;;  %v4135_v57 = vld [vmem:[%s6706_s17 + $0x30] sm:$0xff] }
0x2b43   :  { %v5269_v0 = vpack.c.bf16 %v4136_v54, %v4135_v57  ;;  %5273 = vmatpush3.bf16.msra.mxu1 %v5272_v32 }
0x2b44   :  { %5486 = vtanh.f32 %v4118_v1  ;;  %5274 = vmatprep.subr.bf16.mxu1 %v5683_v13  ;;  %v4127_v13 = vmul.f32 %v5483_v52, %v3997_v12 }
0x2b45   :  { %5270 = vmatpush3.bf16.msra.mxu0 %v5269_v0 }
0x2b47   :  { %5276 = vmatpush3.bf16.msra.mxu1 %v5275_v2 }
0x2b4c   :  { %v5485_v3 = vpop.eup %5484 }
0x2b4d   :  { %4094 = vrot.lane.b32.xlu1 %v5485_v3, %s5687_s4 }
0x2b4e   :  { %v5487_v4 = vpop.eup %5486 }
0x2b4f   :  { %4122 = vrot.lane.b32.xlu0 %v5487_v4, %s5687_s4 }
0x2bbf   :  { %v4095_v5 = vpop.permute.xlu1 %4094 }
0x2bc0   :  { %v4097_v9 = vmul.f32 %v4095_v5, %v4092_v7 }
0x2bc1   :  { %v4123_v11 = vpop.permute.xlu0 %4122 }
0x2bc2   :  { %v4101_v15 = vadd.f32 %v4100_v8, %v4097_v9  ;;  %v4125_v17 = vmul.f32 %v4123_v11, %v4120_v10 }
0x2bc4   :  { %v4213_v23 = vrot.slane %v4101_v15, 6  ;;  %v4128_v14 = vadd.f32 %v4127_v13, %v4125_v17 }
0x2bc6   :  { %4138 = vrot.lane.b32.xlu1 %v4128_v14, %s5687_s4  ;;  %4214 = vrot.lane.b32.xlu0 %v4213_v23, %s5687_s4  ;;  %s5642_s4 = scalar_lea.vmem %s4305_s25, 32 }
0x2bc7   :  { %p5643_p0 = scmp.ne.s32.totalorder %s4305_s25, %s5642_s4  ;;  %p5648_p2 = scmp.lt.s32.totalorder %s5642_s4, %s5642_s4 }
0x2bc9   :  { %p5649_p3 = por %p5648_p2, %p5647_p1 }
0x2bcb   :  { %p5650_p4 = pnand %p5649_p3, %p5643_p0 }
0x2c38   :  { %v4215_v22 = vpop.permute.xlu0 %4214  ;;  %v4139_v24 = vpop.permute.xlu1 %4138 }
0x2c39   :  { %5020 = vmatmul.mubr.msk.f32.vlgmr.msra.gmra.mrb[36].mxu0 %vm351_vm2, %v4139_v24  ;;  %5031 = vmatmul.mubr.msk.f32.vlgmr.msra.gmra.mrb[36].mxu1 %vm351_vm2, %v4215_v22 }
0x2d0c   :  { %v4208_v27 = vpop.f32.mrb[36].mxu0  ;;  %v4284_v29 = vpop.f32.mrb[36].mxu1 }
0x2d0d   :  { %v4285_v35 = vadd.f32 %v4284_v29, %v4208_v27  ;;  %v5021_v36 = vpop.f32.mrb[37].mxu0  ;;  %v5032_v61 = vpop.f32.mrb[37].mxu1 }
0x2d0f   :  { %v4295_v37 = vadd.f32 %v4398_v33, %v4285_v35 }
0x2d11   :  { %4297 = vst.msk [vmem:[#allocation16] sm:$0x3] %vm4296_vm7, %v4295_v37 }
0x2d12   :  { %5653 = shalt.err (!%p5650_p4)
}
0x2d13   :  { %s6722_s22 = sld [smem:[#allocation26_spill]] }
0x2d19   :  { %s5654_s18 = scalar_lea.hbm %s6722_s22, 32 }
0x2d1a   :  { %p5655_p5 = scmp.ne.s32.totalorder %s6722_s22, %s5654_s18  ;;  %p5658_p6 = scmp.lt.u32.totalorder %s5654_s18, %s6722_s22 }
0x2d1c   :  { %p5660_p7 = pnand %p5658_p6, %p5655_p5 }
0x2d1e   :  { %5663 = shalt.err (!%p5660_p7)
}
0x2d1f   :  { %4307 = dma.vmem_to_hbm [thread:$0]  %s4305_s25, 32, %s6722_s22, [#allocation6]  }
0x2d20   :  { %5672 = dma.done.wait [#allocation6], 32  }
0x2d21   :  { %5673 = vsyncadd [#allocation6], 4294967264 }
0x2d22   :  { %4311 = vsyncpa [#allocation5], 1 }
0x2d23   :  { %4312 = vsyncpa [#allocation8], 1 }
0x2d24   :  { %4313 = vsyncpa [#allocation11], 1 }
0x2d25   :  { %4314 = vsyncpa [#allocation14], 1 }
0x2d26   :  { %4315 = vsyncpa [#allocation6], 1 }

</bundles_post_ra>
